<compile_context>
chip_gen: v6e
topology: v6e:2x2x1
jax: 0.10.0
libtpu: 0.0.40
codegen_flags: <defaults>
</compile_context>

<pallas_src>
import functools

import numpy as np
import jax
import jax.numpy as jnp
from jax.experimental import pallas as pl
from jax.experimental.pallas import tpu as pltpu


# ----------------------------------------------------------------------------
# Fused Pallas kernel: two conv3x3 + BN(eval) + residual stages on one image
# ----------------------------------------------------------------------------
def _resblock_kernel(x_ref, w1_ref, a1_ref, w2_ref, a2_ref, mask_ref, out_ref,
                     scr_ref, y1_ref, *, K, H, W, neg_slope, use_mxu,
                     mxu_precision):
    """Fused ResBlock on one image, flattened zero-padded row layout.

    x_ref   : (1, C, Hp*Wp) f32        padded input, spatial rows flattened
    w*_ref  : (C, K*K*C)    conv dtype weights, [co, (dy*K+dx)*C + ci]
    a*_ref  : (C, 2)        f32        folded bias+BN+res_scale affine
    mask_ref: (1, NP)       f32        1.0 on real-pixel cols, 0.0 on pad cols
    out_ref : (1, C, Hp*Wp) f32        output in the SAME padded layout
    scr_ref : (C, Hp*Wp)    conv dtype stage-1 output, padded layout (scratch)
    y1_ref  : (C, NP)       f32        stage-1 residual for stage 2 (scratch)
    """
    C = x_ref.shape[1]
    pad = K // 2
    Wp = W + 2 * pad
    HWp = x_ref.shape[2]            # Hp * Wp
    NP = (H - 1) * Wp + W           # flattened output span (incl. pad cols)
    Q0 = pad * Wp + pad             # flat index of output center (h=0, w=0)

    mask = mask_ref[...]            # (1, NP)

    def conv_affine(slab, row, w_ref, a_ref):
        """3x3 conv + folded (bias + BN + res_scale) affine -> (C, NP) f32."""
        acc = jnp.zeros((C, NP), jnp.float32)
        for dy in range(K):
            for dx in range(K):
                t = dy * K + dx
                s = dy * Wp + dx
                if use_mxu:
                    # per-tap (C, C) x (C, NP) MXU matmul; no im2col buffer.
                    acc = acc + jnp.dot(w_ref[:, t * C:(t + 1) * C], slab(s),
                                        preferred_element_type=jnp.float32,
                                        precision=mxu_precision)
                else:
                    # tiny-C path: broadcast outer-product FMAs on the VPU.
                    for ci in range(C):
                        j = t * C + ci
                        acc = acc + (w_ref[:, j:j + 1].astype(jnp.float32)  # (C,1)
                                     * row(ci, s))                          # (1,NP)
        # folded conv bias + eval-mode BatchNorm + res_scale, per channel
        return acc * a_ref[:, 0:1] + a_ref[:, 1:2]

    # ---- stage 1: y1 = LeakyReLU(res_scale*BN(conv1(x)) + x) ---------------
    y1 = conv_affine(lambda s: x_ref[0, :, s:s + NP].astype(w1_ref.dtype),
                     lambda ci, s: x_ref[0, ci:ci + 1, s:s + NP].astype(jnp.float32),
                     w1_ref, a1_ref)
    y1 = y1 + x_ref[0, :, Q0:Q0 + NP].astype(jnp.float32)       # residual = x
    y1 = jnp.where(y1 >= 0, y1, neg_slope * y1)                 # LeakyReLU(0.1)

    # explicit f32 residual scratch (accounted in VMEM budget, not a spill)
    y1_ref[...] = y1

    # stage-1 output -> zero-padded flat layout (input of stage 2).  Only the
    # small borders are re-zeroed each step; the interior is fully rewritten
    # with pad columns masked to zero.
    if Q0 > 0:
        scr_ref[:, 0:Q0] = jnp.zeros((C, Q0), scr_ref.dtype)
        scr_ref[:, Q0 + NP:HWp] = jnp.zeros((C, HWp - Q0 - NP), scr_ref.dtype)
    scr_ref[:, Q0:Q0 + NP] = (y1 * mask).astype(scr_ref.dtype)

    # ---- stage 2: y2 = res_scale*BN(conv2(y1)) + y1 -------------------------
    y2 = conv_affine(lambda s: scr_ref[:, s:s + NP],
                     lambda ci, s: scr_ref[ci:ci + 1, s:s + NP].astype(jnp.float32),
                     w2_ref, a2_ref)
    y2 = y2 + y1_ref[...]

    # Persistent padded-layout output (chainable into the next ResBlock):
    # zero the borders, mask the interior pad columns.
    if Q0 > 0:
        out_ref[0, :, 0:Q0] = jnp.zeros((C, Q0), out_ref.dtype)
        out_ref[0, :, Q0 + NP:HWp] = jnp.zeros((C, HWp - Q0 - NP), out_ref.dtype)
    out_ref[0, :, Q0:Q0 + NP] = (y2 * mask).astype(out_ref.dtype)


# ----------------------------------------------------------------------------
# Host-side helpers / wrappers
# ----------------------------------------------------------------------------
def _fold_bn(conv_bias, gamma, beta, running_mean, running_var, eps, res_scale):
    """Fold conv bias + eval-mode BN + res_scale into per-channel (scale, shift)."""
    inv_std = 1.0 / jnp.sqrt(running_var + eps)
    scale = gamma * inv_std
    shift = (conv_bias - running_mean) * scale + beta
    return jnp.stack([scale * res_scale, shift * res_scale],
                     axis=1).astype(jnp.float32)                 # (C, 2)


def pad_nchw_to_flat(x_nchw, ksize=3):
    """NCHW -> zero-padded flattened (N, C, Hp*Wp) layout (network-entry pad)."""
    pad = ksize // 2
    N, C, H, W = x_nchw.shape
    xp = jnp.pad(x_nchw.astype(jnp.float32),
                 ((0, 0), (0, 0), (pad, pad), (pad, pad)))
    return xp.reshape(N, C, (H + 2 * pad) * (W + 2 * pad))


def unpad_flat_to_nchw(x_flat, H, W, ksize=3):
    """Padded flattened layout -> NCHW (network-exit un-pad)."""
    pad = ksize // 2
    N, C, _ = x_flat.shape
    Hp, Wp = H + 2 * pad, W + 2 * pad
    return x_flat.reshape(N, C, Hp, Wp)[:, :, pad:pad + H, pad:pad + W]


def resblock_forward_padded(x_pad_flat, params, *, H, W, ksize=3, res_scale=1.0,
                            eps=1e-5, conv_dtype=jnp.bfloat16,
                            mxu_min_channels=32):
    """ResBlock on the persistent padded flattened layout (N, C, Hp*Wp).

    Output is in the same layout with pad columns zeroed, so consecutive
    ResBlocks chain without HBM pad/unpad round-trips.
    """
    N, C, HWp = x_pad_flat.shape
    K = ksize
    pad = K // 2
    Hp, Wp = H + 2 * pad, W + 2 * pad
    assert HWp == Hp * Wp, "input must be in the padded flattened layout"
    NP = (H - 1) * Wp + W
    Q0 = pad * Wp + pad

    # Tiny-C convs go to the VPU; C >= mxu_min_channels uses per-tap matmuls.
    use_mxu = C >= mxu_min_channels
    f32_exact = np.dtype(conv_dtype) == np.dtype(jnp.float32)
    mxu_precision = jax.lax.Precision.HIGHEST if f32_exact else None

    def w_mat(w_hwio):
        # (kh, kw, ci, co) -> (co, (kh*K + kw)*C + ci), cast to conv dtype.
        return jnp.transpose(w_hwio, (3, 0, 1, 2)).reshape(
            C, K * K * C).astype(conv_dtype)

    w1 = w_mat(params["w1"])
    w2 = w_mat(params["w2"])
    a1 = _fold_bn(params["b1"], params["gamma1"], params["beta1"],
                  params["mean1"], params["var1"], eps, res_scale)
    a2 = _fold_bn(params["b2"], params["gamma2"], params["beta2"],
                  params["mean2"], params["var2"], eps, res_scale)

    # 1.0 on columns that correspond to a real pixel, 0.0 on padding columns.
    cols = (jnp.arange(NP) + Q0) % Wp
    mask = ((cols >= pad) & (cols < pad + W)).astype(jnp.float32).reshape(1, NP)

    kernel = functools.partial(_resblock_kernel, K=K, H=H, W=W, neg_slope=0.1,
                               use_mxu=use_mxu, mxu_precision=mxu_precision)

    return pl.pallas_call(
        kernel,
        out_shape=jax.ShapeDtypeStruct((N, C, Hp * Wp), jnp.float32),
        grid=(N,),
        in_specs=[
            pl.BlockSpec((1, C, Hp * Wp), lambda n: (n, 0, 0)),   # x (per image)
            pl.BlockSpec((C, K * K * C), lambda n: (0, 0)),       # w1 (resident)
            pl.BlockSpec((C, 2), lambda n: (0, 0)),               # affine1
            pl.BlockSpec((C, K * K * C), lambda n: (0, 0)),       # w2
            pl.BlockSpec((C, 2), lambda n: (0, 0)),               # affine2
            pl.BlockSpec((1, NP), lambda n: (0, 0)),              # pad-col mask
        ],
        out_specs=pl.BlockSpec((1, C, Hp * Wp), lambda n: (n, 0, 0)),
        scratch_shapes=[
            pltpu.VMEM((C, Hp * Wp), conv_dtype),   # stage-1 output (padded)
            pltpu.VMEM((C, NP), jnp.float32),       # stage-1 f32 residual
        ],
        compiler_params=pltpu.CompilerParams(
            # batch axis pipelines and shards across TensorCores (v7x)
            dimension_semantics=("parallel",),
            # small footprint now (no im2col scratch); re-derive per-generation
            # once spatial tiling lands (raise toward ~100 MiB on 128 MiB parts)
            vmem_limit_bytes=32 * 1024 * 1024,
        ),
    )(x_pad_flat, w1, a1, w2, a2, mask)


def resblock_forward(x_nchw, params, *, ksize=3, res_scale=1.0, eps=1e-5,
                     conv_dtype=jnp.bfloat16, mxu_min_channels=32):
    """Convenience wrapper: NCHW in / NCHW out (single-block usage)."""
    N, C, H, W = x_nchw.shape
    xf = pad_nchw_to_flat(x_nchw, ksize)
    of = resblock_forward_padded(xf, params, H=H, W=W, ksize=ksize,
                                 res_scale=res_scale, eps=eps,
                                 conv_dtype=conv_dtype,
                                 mxu_min_channels=mxu_min_channels)
    return unpad_flat_to_nchw(of, H, W, ksize)


# ----------------------------------------------------------------------------
# Pure-JAX reference (same eval-mode BN semantics) for verification
# ----------------------------------------------------------------------------
def _reference_forward(x_nchw, params, *, ksize=3, res_scale=1.0, eps=1e-5):
    x = jnp.transpose(x_nchw, (0, 2, 3, 1))

    def conv_bn(z, w, b, gamma, beta, mean, var):
        y = jax.lax.conv_general_dilated(
            z, w, window_strides=(1, 1), padding="SAME",
            dimension_numbers=("NHWC", "HWIO", "NHWC"),
            precision=jax.lax.Precision.HIGHEST)
        y = y + b[None, None, None, :]
        return (y - mean) / jnp.sqrt(var + eps) * gamma + beta

    out = conv_bn(x, params["w1"], params["b1"], params["gamma1"],
                  params["beta1"], params["mean1"], params["var1"]) * res_scale + x
    out = jnp.where(out >= 0, out, 0.1 * out)
    out = conv_bn(out, params["w2"], params["b2"], params["gamma2"],
                  params["beta2"], params["mean2"], params["var2"]) * res_scale + out
    return jnp.transpose(out, (0, 3, 1, 2))


if __name__ == "__main__":
    N, C, H, W = 2, 4, 16, 16       # n_feats = 4
    K = 3                           # kernel_size = 3

    key = jax.random.PRNGKey(0)
    ks = jax.random.split(key, 13)

    x = jax.random.normal(ks[0], (N, C, H, W), jnp.float32)

    params = {
        # conv weights stored in HWIO (kh, kw, Cin, Cout)
        "w1": 0.1 * jax.random.normal(ks[1], (K, K, C, C), jnp.float32),
        "b1": 0.1 * jax.random.normal(ks[2], (C,), jnp.float32),
        "gamma1": 1.0 + 0.1 * jax.random.normal(ks[3], (C,), jnp.float32),
        "beta1": 0.1 * jax.random.normal(ks[4], (C,), jnp.float32),
        "mean1": 0.1 * jax.random.normal(ks[5], (C,), jnp.float32),
        "var1": 0.5 + jnp.abs(jax.random.normal(ks[6], (C,), jnp.float32)),

        "w2": 0.1 * jax.random.normal(ks[7], (K, K, C, C), jnp.float32),
        "b2": 0.1 * jax.random.normal(ks[8], (C,), jnp.float32),
        "gamma2": 1.0 + 0.1 * jax.random.normal(ks[9], (C,), jnp.float32),
        "beta2": 0.1 * jax.random.normal(ks[10], (C,), jnp.float32),
        "mean2": 0.1 * jax.random.normal(ks[11], (C,), jnp.float32),
        "var2": 0.5 + jnp.abs(jax.random.normal(ks[12], (C,), jnp.float32)),
    }

    # Exact mode (f32 everywhere): tight check, incl. non-trivial res_scale
    # (exercises the folded res_scale affine at no extra compile cost).
    for rs in (1.0, 0.5):
        ref = _reference_forward(x, params, ksize=K, res_scale=rs)
        out = jax.block_until_ready(
            resblock_forward(x, params, ksize=K, res_scale=rs,
                             conv_dtype=jnp.float32))
        assert out.shape == (N, C, H, W)
        assert jnp.allclose(out, ref, atol=1e-4, rtol=1e-4), (
            f"f32 (res_scale={rs}) max abs err = {jnp.max(jnp.abs(out - ref))}")

    # bf16 conv operands (f32 accumulate / affine / residual): loose check.
    ref = _reference_forward(x, params, ksize=K, res_scale=1.0)
    out_bf16 = jax.block_until_ready(
        resblock_forward(x, params, ksize=K, res_scale=1.0,
                         conv_dtype=jnp.bfloat16))
    assert jnp.allclose(out_bf16, ref, atol=1e-1, rtol=1e-1), (
        f"bf16 max abs err = {jnp.max(jnp.abs(out_bf16 - ref))}")

    # Chained usage on the persistent padded layout: two ResBlocks back-to-back
    # with NO intermediate pad/unpad HBM round-trip.
    xf = pad_nchw_to_flat(x, ksize=K)
    h1 = resblock_forward_padded(xf, params, H=H, W=W, ksize=K,
                                 res_scale=1.0, conv_dtype=jnp.float32)
    h2 = resblock_forward_padded(h1, params, H=H, W=W, ksize=K,
                                 res_scale=1.0, conv_dtype=jnp.float32)
    out_chain = jax.block_until_ready(unpad_flat_to_nchw(h2, H, W, ksize=K))
    ref_chain = _reference_forward(
        _reference_forward(x, params, ksize=K, res_scale=1.0),
        params, ksize=K, res_scale=1.0)
    assert jnp.allclose(out_chain, ref_chain, atol=1e-3, rtol=1e-3), (
        f"chained max abs err = {jnp.max(jnp.abs(out_chain - ref_chain))}")

    print("KERNEL_OK")
</pallas_src>

<mosaic_0001>
module attributes {stable_mosaic.version = 11 : i64} {
  func.func @_resblock_kernel(%arg0: i32, %arg1: memref<1x4x324xf32, #tpu.memory_space<vmem>>, %arg2: memref<4x36xf32, #tpu.memory_space<vmem>>, %arg3: memref<4x2xf32, #tpu.memory_space<vmem>>, %arg4: memref<4x36xf32, #tpu.memory_space<vmem>>, %arg5: memref<4x2xf32, #tpu.memory_space<vmem>>, %arg6: memref<1x286xf32, #tpu.memory_space<vmem>>, %arg7: memref<1x4x324xf32, #tpu.memory_space<vmem>>, %arg8: memref<4x324xf32, #tpu.memory_space<vmem>>, %arg9: memref<4x286xf32, #tpu.memory_space<vmem>>) attributes {dimension_semantics = [#tpu.dimension_semantics<parallel>], iteration_bounds = array<i64: 2>, scalar_prefetch = 0 : i64, scratch_operands = 2 : i64, tpu.core_type = #tpu.core_type<tc>, window_params = [{transform_indices = @transform_0, window_bounds = array<i64: 1, 4, 324>}, {pipeline_mode = #tpu.pipeline_mode<synchronous>, transform_indices = @transform_1, window_bounds = array<i64: 4, 36>}, {pipeline_mode = #tpu.pipeline_mode<synchronous>, transform_indices = @transform_2, window_bounds = array<i64: 4, 2>}, {pipeline_mode = #tpu.pipeline_mode<synchronous>, transform_indices = @transform_3, window_bounds = array<i64: 4, 36>}, {pipeline_mode = #tpu.pipeline_mode<synchronous>, transform_indices = @transform_4, window_bounds = array<i64: 4, 2>}, {pipeline_mode = #tpu.pipeline_mode<synchronous>, transform_indices = @transform_5, window_bounds = array<i64: 1, 286>}, {transform_indices = @transform_6, window_bounds = array<i64: 1, 4, 324>}]} {
    %c0 = arith.constant 0 : index
    %c0_0 = arith.constant 0 : index
    %0 = vector.load %arg6[%c0, %c0_0] : memref<1x286xf32, #tpu.memory_space<vmem>>, vector<1x286xf32>
    %cst = arith.constant 0.000000e+00 : f32
    %1 = vector.broadcast %cst : f32 to vector<4x286xf32>
    %c0_1 = arith.constant 0 : index
    %c0_2 = arith.constant 0 : index
    %2 = vector.load %arg2[%c0_1, %c0_2] : memref<4x36xf32, #tpu.memory_space<vmem>>, vector<4x1xf32>
    %c0_3 = arith.constant 0 : index
    %c0_4 = arith.constant 0 : index
    %c0_5 = arith.constant 0 : index
    %3 = vector.load %arg1[%c0_3, %c0_4, %c0_5] : memref<1x4x324xf32, #tpu.memory_space<vmem>>, vector<1x1x286xf32>
    %4 = vector.shape_cast %3 : vector<1x1x286xf32> to vector<1x286xf32>
    %5 = vector.broadcast %2 : vector<4x1xf32> to vector<4x286xf32>
    %6 = vector.broadcast %4 : vector<1x286xf32> to vector<4x286xf32>
    %7 = arith.mulf %5, %6 : vector<4x286xf32>
    %8 = arith.addf %1, %7 : vector<4x286xf32>
    %c0_6 = arith.constant 0 : index
    %c1 = arith.constant 1 : index
    %9 = vector.load %arg2[%c0_6, %c1] : memref<4x36xf32, #tpu.memory_space<vmem>>, vector<4x1xf32>
    %c0_7 = arith.constant 0 : index
    %c1_8 = arith.constant 1 : index
    %c0_9 = arith.constant 0 : index
    %10 = vector.load %arg1[%c0_7, %c1_8, %c0_9] : memref<1x4x324xf32, #tpu.memory_space<vmem>>, vector<1x1x286xf32>
    %11 = vector.shape_cast %10 : vector<1x1x286xf32> to vector<1x286xf32>
    %12 = vector.broadcast %9 : vector<4x1xf32> to vector<4x286xf32>
    %13 = vector.broadcast %11 : vector<1x286xf32> to vector<4x286xf32>
    %14 = arith.mulf %12, %13 : vector<4x286xf32>
    %15 = arith.addf %8, %14 : vector<4x286xf32>
    %c0_10 = arith.constant 0 : index
    %c2 = arith.constant 2 : index
    %16 = vector.load %arg2[%c0_10, %c2] : memref<4x36xf32, #tpu.memory_space<vmem>>, vector<4x1xf32>
    %c0_11 = arith.constant 0 : index
    %c2_12 = arith.constant 2 : index
    %c0_13 = arith.constant 0 : index
    %17 = vector.load %arg1[%c0_11, %c2_12, %c0_13] : memref<1x4x324xf32, #tpu.memory_space<vmem>>, vector<1x1x286xf32>
    %18 = vector.shape_cast %17 : vector<1x1x286xf32> to vector<1x286xf32>
    %19 = vector.broadcast %16 : vector<4x1xf32> to vector<4x286xf32>
    %20 = vector.broadcast %18 : vector<1x286xf32> to vector<4x286xf32>
    %21 = arith.mulf %19, %20 : vector<4x286xf32>
    %22 = arith.addf %15, %21 : vector<4x286xf32>
    %c0_14 = arith.constant 0 : index
    %c3 = arith.constant 3 : index
    %23 = vector.load %arg2[%c0_14, %c3] : memref<4x36xf32, #tpu.memory_space<vmem>>, vector<4x1xf32>
    %c0_15 = arith.constant 0 : index
    %c3_16 = arith.constant 3 : index
    %c0_17 = arith.constant 0 : index
    %24 = vector.load %arg1[%c0_15, %c3_16, %c0_17] : memref<1x4x324xf32, #tpu.memory_space<vmem>>, vector<1x1x286xf32>
    %25 = vector.shape_cast %24 : vector<1x1x286xf32> to vector<1x286xf32>
    %26 = vector.broadcast %23 : vector<4x1xf32> to vector<4x286xf32>
    %27 = vector.broadcast %25 : vector<1x286xf32> to vector<4x286xf32>
    %28 = arith.mulf %26, %27 : vector<4x286xf32>
    %29 = arith.addf %22, %28 : vector<4x286xf32>
    %c0_18 = arith.constant 0 : index
    %c4 = arith.constant 4 : index
    %30 = vector.load %arg2[%c0_18, %c4] : memref<4x36xf32, #tpu.memory_space<vmem>>, vector<4x1xf32>
    %c0_19 = arith.constant 0 : index
    %c0_20 = arith.constant 0 : index
    %c1_21 = arith.constant 1 : index
    %31 = vector.load %arg1[%c0_19, %c0_20, %c1_21] : memref<1x4x324xf32, #tpu.memory_space<vmem>>, vector<1x1x286xf32>
    %32 = vector.shape_cast %31 : vector<1x1x286xf32> to vector<1x286xf32>
    %33 = vector.broadcast %30 : vector<4x1xf32> to vector<4x286xf32>
    %34 = vector.broadcast %32 : vector<1x286xf32> to vector<4x286xf32>
    %35 = arith.mulf %33, %34 : vector<4x286xf32>
    %36 = arith.addf %29, %35 : vector<4x286xf32>
    %c0_22 = arith.constant 0 : index
    %c5 = arith.constant 5 : index
    %37 = vector.load %arg2[%c0_22, %c5] : memref<4x36xf32, #tpu.memory_space<vmem>>, vector<4x1xf32>
    %c0_23 = arith.constant 0 : index
    %c1_24 = arith.constant 1 : index
    %c1_25 = arith.constant 1 : index
    %38 = vector.load %arg1[%c0_23, %c1_24, %c1_25] : memref<1x4x324xf32, #tpu.memory_space<vmem>>, vector<1x1x286xf32>
    %39 = vector.shape_cast %38 : vector<1x1x286xf32> to vector<1x286xf32>
    %40 = vector.broadcast %37 : vector<4x1xf32> to vector<4x286xf32>
    %41 = vector.broadcast %39 : vector<1x286xf32> to vector<4x286xf32>
    %42 = arith.mulf %40, %41 : vector<4x286xf32>
    %43 = arith.addf %36, %42 : vector<4x286xf32>
    %c0_26 = arith.constant 0 : index
    %c6 = arith.constant 6 : index
    %44 = vector.load %arg2[%c0_26, %c6] : memref<4x36xf32, #tpu.memory_space<vmem>>, vector<4x1xf32>
    %c0_27 = arith.constant 0 : index
    %c2_28 = arith.constant 2 : index
    %c1_29 = arith.constant 1 : index
    %45 = vector.load %arg1[%c0_27, %c2_28, %c1_29] : memref<1x4x324xf32, #tpu.memory_space<vmem>>, vector<1x1x286xf32>
    %46 = vector.shape_cast %45 : vector<1x1x286xf32> to vector<1x286xf32>
    %47 = vector.broadcast %44 : vector<4x1xf32> to vector<4x286xf32>
    %48 = vector.broadcast %46 : vector<1x286xf32> to vector<4x286xf32>
    %49 = arith.mulf %47, %48 : vector<4x286xf32>
    %50 = arith.addf %43, %49 : vector<4x286xf32>
    %c0_30 = arith.constant 0 : index
    %c7 = arith.constant 7 : index
    %51 = vector.load %arg2[%c0_30, %c7] : memref<4x36xf32, #tpu.memory_space<vmem>>, vector<4x1xf32>
    %c0_31 = arith.constant 0 : index
    %c3_32 = arith.constant 3 : index
    %c1_33 = arith.constant 1 : index
    %52 = vector.load %arg1[%c0_31, %c3_32, %c1_33] : memref<1x4x324xf32, #tpu.memory_space<vmem>>, vector<1x1x286xf32>
    %53 = vector.shape_cast %52 : vector<1x1x286xf32> to vector<1x286xf32>
    %54 = vector.broadcast %51 : vector<4x1xf32> to vector<4x286xf32>
    %55 = vector.broadcast %53 : vector<1x286xf32> to vector<4x286xf32>
    %56 = arith.mulf %54, %55 : vector<4x286xf32>
    %57 = arith.addf %50, %56 : vector<4x286xf32>
    %c0_34 = arith.constant 0 : index
    %c8 = arith.constant 8 : index
    %58 = vector.load %arg2[%c0_34, %c8] : memref<4x36xf32, #tpu.memory_space<vmem>>, vector<4x1xf32>
    %c0_35 = arith.constant 0 : index
    %c0_36 = arith.constant 0 : index
    %c2_37 = arith.constant 2 : index
    %59 = vector.load %arg1[%c0_35, %c0_36, %c2_37] : memref<1x4x324xf32, #tpu.memory_space<vmem>>, vector<1x1x286xf32>
    %60 = vector.shape_cast %59 : vector<1x1x286xf32> to vector<1x286xf32>
    %61 = vector.broadcast %58 : vector<4x1xf32> to vector<4x286xf32>
    %62 = vector.broadcast %60 : vector<1x286xf32> to vector<4x286xf32>
    %63 = arith.mulf %61, %62 : vector<4x286xf32>
    %64 = arith.addf %57, %63 : vector<4x286xf32>
    %c0_38 = arith.constant 0 : index
    %c9 = arith.constant 9 : index
    %65 = vector.load %arg2[%c0_38, %c9] : memref<4x36xf32, #tpu.memory_space<vmem>>, vector<4x1xf32>
    %c0_39 = arith.constant 0 : index
    %c1_40 = arith.constant 1 : index
    %c2_41 = arith.constant 2 : index
    %66 = vector.load %arg1[%c0_39, %c1_40, %c2_41] : memref<1x4x324xf32, #tpu.memory_space<vmem>>, vector<1x1x286xf32>
    %67 = vector.shape_cast %66 : vector<1x1x286xf32> to vector<1x286xf32>
    %68 = vector.broadcast %65 : vector<4x1xf32> to vector<4x286xf32>
    %69 = vector.broadcast %67 : vector<1x286xf32> to vector<4x286xf32>
    %70 = arith.mulf %68, %69 : vector<4x286xf32>
    %71 = arith.addf %64, %70 : vector<4x286xf32>
    %c0_42 = arith.constant 0 : index
    %c10 = arith.constant 10 : index
    %72 = vector.load %arg2[%c0_42, %c10] : memref<4x36xf32, #tpu.memory_space<vmem>>, vector<4x1xf32>
    %c0_43 = arith.constant 0 : index
    %c2_44 = arith.constant 2 : index
    %c2_45 = arith.constant 2 : index
    %73 = vector.load %arg1[%c0_43, %c2_44, %c2_45] : memref<1x4x324xf32, #tpu.memory_space<vmem>>, vector<1x1x286xf32>
    %74 = vector.shape_cast %73 : vector<1x1x286xf32> to vector<1x286xf32>
    %75 = vector.broadcast %72 : vector<4x1xf32> to vector<4x286xf32>
    %76 = vector.broadcast %74 : vector<1x286xf32> to vector<4x286xf32>
    %77 = arith.mulf %75, %76 : vector<4x286xf32>
    %78 = arith.addf %71, %77 : vector<4x286xf32>
    %c0_46 = arith.constant 0 : index
    %c11 = arith.constant 11 : index
    %79 = vector.load %arg2[%c0_46, %c11] : memref<4x36xf32, #tpu.memory_space<vmem>>, vector<4x1xf32>
    %c0_47 = arith.constant 0 : index
    %c3_48 = arith.constant 3 : index
    %c2_49 = arith.constant 2 : index
    %80 = vector.load %arg1[%c0_47, %c3_48, %c2_49] : memref<1x4x324xf32, #tpu.memory_space<vmem>>, vector<1x1x286xf32>
    %81 = vector.shape_cast %80 : vector<1x1x286xf32> to vector<1x286xf32>
    %82 = vector.broadcast %79 : vector<4x1xf32> to vector<4x286xf32>
    %83 = vector.broadcast %81 : vector<1x286xf32> to vector<4x286xf32>
    %84 = arith.mulf %82, %83 : vector<4x286xf32>
    %85 = arith.addf %78, %84 : vector<4x286xf32>
    %c0_50 = arith.constant 0 : index
    %c12 = arith.constant 12 : index
    %86 = vector.load %arg2[%c0_50, %c12] : memref<4x36xf32, #tpu.memory_space<vmem>>, vector<4x1xf32>
    %c0_51 = arith.constant 0 : index
    %c0_52 = arith.constant 0 : index
    %c18 = arith.constant 18 : index
    %87 = vector.load %arg1[%c0_51, %c0_52, %c18] : memref<1x4x324xf32, #tpu.memory_space<vmem>>, vector<1x1x286xf32>
    %88 = vector.shape_cast %87 : vector<1x1x286xf32> to vector<1x286xf32>
    %89 = vector.broadcast %86 : vector<4x1xf32> to vector<4x286xf32>
    %90 = vector.broadcast %88 : vector<1x286xf32> to vector<4x286xf32>
    %91 = arith.mulf %89, %90 : vector<4x286xf32>
    %92 = arith.addf %85, %91 : vector<4x286xf32>
    %c0_53 = arith.constant 0 : index
    %c13 = arith.constant 13 : index
    %93 = vector.load %arg2[%c0_53, %c13] : memref<4x36xf32, #tpu.memory_space<vmem>>, vector<4x1xf32>
    %c0_54 = arith.constant 0 : index
    %c1_55 = arith.constant 1 : index
    %c18_56 = arith.constant 18 : index
    %94 = vector.load %arg1[%c0_54, %c1_55, %c18_56] : memref<1x4x324xf32, #tpu.memory_space<vmem>>, vector<1x1x286xf32>
    %95 = vector.shape_cast %94 : vector<1x1x286xf32> to vector<1x286xf32>
    %96 = vector.broadcast %93 : vector<4x1xf32> to vector<4x286xf32>
    %97 = vector.broadcast %95 : vector<1x286xf32> to vector<4x286xf32>
    %98 = arith.mulf %96, %97 : vector<4x286xf32>
    %99 = arith.addf %92, %98 : vector<4x286xf32>
    %c0_57 = arith.constant 0 : index
    %c14 = arith.constant 14 : index
    %100 = vector.load %arg2[%c0_57, %c14] : memref<4x36xf32, #tpu.memory_space<vmem>>, vector<4x1xf32>
    %c0_58 = arith.constant 0 : index
    %c2_59 = arith.constant 2 : index
    %c18_60 = arith.constant 18 : index
    %101 = vector.load %arg1[%c0_58, %c2_59, %c18_60] : memref<1x4x324xf32, #tpu.memory_space<vmem>>, vector<1x1x286xf32>
    %102 = vector.shape_cast %101 : vector<1x1x286xf32> to vector<1x286xf32>
    %103 = vector.broadcast %100 : vector<4x1xf32> to vector<4x286xf32>
    %104 = vector.broadcast %102 : vector<1x286xf32> to vector<4x286xf32>
    %105 = arith.mulf %103, %104 : vector<4x286xf32>
    %106 = arith.addf %99, %105 : vector<4x286xf32>
    %c0_61 = arith.constant 0 : index
    %c15 = arith.constant 15 : index
    %107 = vector.load %arg2[%c0_61, %c15] : memref<4x36xf32, #tpu.memory_space<vmem>>, vector<4x1xf32>
    %c0_62 = arith.constant 0 : index
    %c3_63 = arith.constant 3 : index
    %c18_64 = arith.constant 18 : index
    %108 = vector.load %arg1[%c0_62, %c3_63, %c18_64] : memref<1x4x324xf32, #tpu.memory_space<vmem>>, vector<1x1x286xf32>
    %109 = vector.shape_cast %108 : vector<1x1x286xf32> to vector<1x286xf32>
    %110 = vector.broadcast %107 : vector<4x1xf32> to vector<4x286xf32>
    %111 = vector.broadcast %109 : vector<1x286xf32> to vector<4x286xf32>
    %112 = arith.mulf %110, %111 : vector<4x286xf32>
    %113 = arith.addf %106, %112 : vector<4x286xf32>
    %c0_65 = arith.constant 0 : index
    %c16 = arith.constant 16 : index
    %114 = vector.load %arg2[%c0_65, %c16] : memref<4x36xf32, #tpu.memory_space<vmem>>, vector<4x1xf32>
    %c0_66 = arith.constant 0 : index
    %c0_67 = arith.constant 0 : index
    %c19 = arith.constant 19 : index
    %115 = vector.load %arg1[%c0_66, %c0_67, %c19] : memref<1x4x324xf32, #tpu.memory_space<vmem>>, vector<1x1x286xf32>
    %116 = vector.shape_cast %115 : vector<1x1x286xf32> to vector<1x286xf32>
    %117 = vector.broadcast %114 : vector<4x1xf32> to vector<4x286xf32>
    %118 = vector.broadcast %116 : vector<1x286xf32> to vector<4x286xf32>
    %119 = arith.mulf %117, %118 : vector<4x286xf32>
    %120 = arith.addf %113, %119 : vector<4x286xf32>
    %c0_68 = arith.constant 0 : index
    %c17 = arith.constant 17 : index
    %121 = vector.load %arg2[%c0_68, %c17] : memref<4x36xf32, #tpu.memory_space<vmem>>, vector<4x1xf32>
    %c0_69 = arith.constant 0 : index
    %c1_70 = arith.constant 1 : index
    %c19_71 = arith.constant 19 : index
    %122 = vector.load %arg1[%c0_69, %c1_70, %c19_71] : memref<1x4x324xf32, #tpu.memory_space<vmem>>, vector<1x1x286xf32>
    %123 = vector.shape_cast %122 : vector<1x1x286xf32> to vector<1x286xf32>
    %124 = vector.broadcast %121 : vector<4x1xf32> to vector<4x286xf32>
    %125 = vector.broadcast %123 : vector<1x286xf32> to vector<4x286xf32>
    %126 = arith.mulf %124, %125 : vector<4x286xf32>
    %127 = arith.addf %120, %126 : vector<4x286xf32>
    %c0_72 = arith.constant 0 : index
    %c18_73 = arith.constant 18 : index
    %128 = vector.load %arg2[%c0_72, %c18_73] : memref<4x36xf32, #tpu.memory_space<vmem>>, vector<4x1xf32>
    %c0_74 = arith.constant 0 : index
    %c2_75 = arith.constant 2 : index
    %c19_76 = arith.constant 19 : index
    %129 = vector.load %arg1[%c0_74, %c2_75, %c19_76] : memref<1x4x324xf32, #tpu.memory_space<vmem>>, vector<1x1x286xf32>
    %130 = vector.shape_cast %129 : vector<1x1x286xf32> to vector<1x286xf32>
    %131 = vector.broadcast %128 : vector<4x1xf32> to vector<4x286xf32>
    %132 = vector.broadcast %130 : vector<1x286xf32> to vector<4x286xf32>
    %133 = arith.mulf %131, %132 : vector<4x286xf32>
    %134 = arith.addf %127, %133 : vector<4x286xf32>
    %c0_77 = arith.constant 0 : index
    %c19_78 = arith.constant 19 : index
    %135 = vector.load %arg2[%c0_77, %c19_78] : memref<4x36xf32, #tpu.memory_space<vmem>>, vector<4x1xf32>
    %c0_79 = arith.constant 0 : index
    %c3_80 = arith.constant 3 : index
    %c19_81 = arith.constant 19 : index
    %136 = vector.load %arg1[%c0_79, %c3_80, %c19_81] : memref<1x4x324xf32, #tpu.memory_space<vmem>>, vector<1x1x286xf32>
    %137 = vector.shape_cast %136 : vector<1x1x286xf32> to vector<1x286xf32>
    %138 = vector.broadcast %135 : vector<4x1xf32> to vector<4x286xf32>
    %139 = vector.broadcast %137 : vector<1x286xf32> to vector<4x286xf32>
    %140 = arith.mulf %138, %139 : vector<4x286xf32>
    %141 = arith.addf %134, %140 : vector<4x286xf32>
    %c0_82 = arith.constant 0 : index
    %c20 = arith.constant 20 : index
    %142 = vector.load %arg2[%c0_82, %c20] : memref<4x36xf32, #tpu.memory_space<vmem>>, vector<4x1xf32>
    %c0_83 = arith.constant 0 : index
    %c0_84 = arith.constant 0 : index
    %c20_85 = arith.constant 20 : index
    %143 = vector.load %arg1[%c0_83, %c0_84, %c20_85] : memref<1x4x324xf32, #tpu.memory_space<vmem>>, vector<1x1x286xf32>
    %144 = vector.shape_cast %143 : vector<1x1x286xf32> to vector<1x286xf32>
    %145 = vector.broadcast %142 : vector<4x1xf32> to vector<4x286xf32>
    %146 = vector.broadcast %144 : vector<1x286xf32> to vector<4x286xf32>
    %147 = arith.mulf %145, %146 : vector<4x286xf32>
    %148 = arith.addf %141, %147 : vector<4x286xf32>
    %c0_86 = arith.constant 0 : index
    %c21 = arith.constant 21 : index
    %149 = vector.load %arg2[%c0_86, %c21] : memref<4x36xf32, #tpu.memory_space<vmem>>, vector<4x1xf32>
    %c0_87 = arith.constant 0 : index
    %c1_88 = arith.constant 1 : index
    %c20_89 = arith.constant 20 : index
    %150 = vector.load %arg1[%c0_87, %c1_88, %c20_89] : memref<1x4x324xf32, #tpu.memory_space<vmem>>, vector<1x1x286xf32>
    %151 = vector.shape_cast %150 : vector<1x1x286xf32> to vector<1x286xf32>
    %152 = vector.broadcast %149 : vector<4x1xf32> to vector<4x286xf32>
    %153 = vector.broadcast %151 : vector<1x286xf32> to vector<4x286xf32>
    %154 = arith.mulf %152, %153 : vector<4x286xf32>
    %155 = arith.addf %148, %154 : vector<4x286xf32>
    %c0_90 = arith.constant 0 : index
    %c22 = arith.constant 22 : index
    %156 = vector.load %arg2[%c0_90, %c22] : memref<4x36xf32, #tpu.memory_space<vmem>>, vector<4x1xf32>
    %c0_91 = arith.constant 0 : index
    %c2_92 = arith.constant 2 : index
    %c20_93 = arith.constant 20 : index
    %157 = vector.load %arg1[%c0_91, %c2_92, %c20_93] : memref<1x4x324xf32, #tpu.memory_space<vmem>>, vector<1x1x286xf32>
    %158 = vector.shape_cast %157 : vector<1x1x286xf32> to vector<1x286xf32>
    %159 = vector.broadcast %156 : vector<4x1xf32> to vector<4x286xf32>
    %160 = vector.broadcast %158 : vector<1x286xf32> to vector<4x286xf32>
    %161 = arith.mulf %159, %160 : vector<4x286xf32>
    %162 = arith.addf %155, %161 : vector<4x286xf32>
    %c0_94 = arith.constant 0 : index
    %c23 = arith.constant 23 : index
    %163 = vector.load %arg2[%c0_94, %c23] : memref<4x36xf32, #tpu.memory_space<vmem>>, vector<4x1xf32>
    %c0_95 = arith.constant 0 : index
    %c3_96 = arith.constant 3 : index
    %c20_97 = arith.constant 20 : index
    %164 = vector.load %arg1[%c0_95, %c3_96, %c20_97] : memref<1x4x324xf32, #tpu.memory_space<vmem>>, vector<1x1x286xf32>
    %165 = vector.shape_cast %164 : vector<1x1x286xf32> to vector<1x286xf32>
    %166 = vector.broadcast %163 : vector<4x1xf32> to vector<4x286xf32>
    %167 = vector.broadcast %165 : vector<1x286xf32> to vector<4x286xf32>
    %168 = arith.mulf %166, %167 : vector<4x286xf32>
    %169 = arith.addf %162, %168 : vector<4x286xf32>
    %c0_98 = arith.constant 0 : index
    %c24 = arith.constant 24 : index
    %170 = vector.load %arg2[%c0_98, %c24] : memref<4x36xf32, #tpu.memory_space<vmem>>, vector<4x1xf32>
    %c0_99 = arith.constant 0 : index
    %c0_100 = arith.constant 0 : index
    %c36 = arith.constant 36 : index
    %171 = vector.load %arg1[%c0_99, %c0_100, %c36] : memref<1x4x324xf32, #tpu.memory_space<vmem>>, vector<1x1x286xf32>
    %172 = vector.shape_cast %171 : vector<1x1x286xf32> to vector<1x286xf32>
    %173 = vector.broadcast %170 : vector<4x1xf32> to vector<4x286xf32>
    %174 = vector.broadcast %172 : vector<1x286xf32> to vector<4x286xf32>
    %175 = arith.mulf %173, %174 : vector<4x286xf32>
    %176 = arith.addf %169, %175 : vector<4x286xf32>
    %c0_101 = arith.constant 0 : index
    %c25 = arith.constant 25 : index
    %177 = vector.load %arg2[%c0_101, %c25] : memref<4x36xf32, #tpu.memory_space<vmem>>, vector<4x1xf32>
    %c0_102 = arith.constant 0 : index
    %c1_103 = arith.constant 1 : index
    %c36_104 = arith.constant 36 : index
    %178 = vector.load %arg1[%c0_102, %c1_103, %c36_104] : memref<1x4x324xf32, #tpu.memory_space<vmem>>, vector<1x1x286xf32>
    %179 = vector.shape_cast %178 : vector<1x1x286xf32> to vector<1x286xf32>
    %180 = vector.broadcast %177 : vector<4x1xf32> to vector<4x286xf32>
    %181 = vector.broadcast %179 : vector<1x286xf32> to vector<4x286xf32>
    %182 = arith.mulf %180, %181 : vector<4x286xf32>
    %183 = arith.addf %176, %182 : vector<4x286xf32>
    %c0_105 = arith.constant 0 : index
    %c26 = arith.constant 26 : index
    %184 = vector.load %arg2[%c0_105, %c26] : memref<4x36xf32, #tpu.memory_space<vmem>>, vector<4x1xf32>
    %c0_106 = arith.constant 0 : index
    %c2_107 = arith.constant 2 : index
    %c36_108 = arith.constant 36 : index
    %185 = vector.load %arg1[%c0_106, %c2_107, %c36_108] : memref<1x4x324xf32, #tpu.memory_space<vmem>>, vector<1x1x286xf32>
    %186 = vector.shape_cast %185 : vector<1x1x286xf32> to vector<1x286xf32>
    %187 = vector.broadcast %184 : vector<4x1xf32> to vector<4x286xf32>
    %188 = vector.broadcast %186 : vector<1x286xf32> to vector<4x286xf32>
    %189 = arith.mulf %187, %188 : vector<4x286xf32>
    %190 = arith.addf %183, %189 : vector<4x286xf32>
    %c0_109 = arith.constant 0 : index
    %c27 = arith.constant 27 : index
    %191 = vector.load %arg2[%c0_109, %c27] : memref<4x36xf32, #tpu.memory_space<vmem>>, vector<4x1xf32>
    %c0_110 = arith.constant 0 : index
    %c3_111 = arith.constant 3 : index
    %c36_112 = arith.constant 36 : index
    %192 = vector.load %arg1[%c0_110, %c3_111, %c36_112] : memref<1x4x324xf32, #tpu.memory_space<vmem>>, vector<1x1x286xf32>
    %193 = vector.shape_cast %192 : vector<1x1x286xf32> to vector<1x286xf32>
    %194 = vector.broadcast %191 : vector<4x1xf32> to vector<4x286xf32>
    %195 = vector.broadcast %193 : vector<1x286xf32> to vector<4x286xf32>
    %196 = arith.mulf %194, %195 : vector<4x286xf32>
    %197 = arith.addf %190, %196 : vector<4x286xf32>
    %c0_113 = arith.constant 0 : index
    %c28 = arith.constant 28 : index
    %198 = vector.load %arg2[%c0_113, %c28] : memref<4x36xf32, #tpu.memory_space<vmem>>, vector<4x1xf32>
    %c0_114 = arith.constant 0 : index
    %c0_115 = arith.constant 0 : index
    %c37 = arith.constant 37 : index
    %199 = vector.load %arg1[%c0_114, %c0_115, %c37] : memref<1x4x324xf32, #tpu.memory_space<vmem>>, vector<1x1x286xf32>
    %200 = vector.shape_cast %199 : vector<1x1x286xf32> to vector<1x286xf32>
    %201 = vector.broadcast %198 : vector<4x1xf32> to vector<4x286xf32>
    %202 = vector.broadcast %200 : vector<1x286xf32> to vector<4x286xf32>
    %203 = arith.mulf %201, %202 : vector<4x286xf32>
    %204 = arith.addf %197, %203 : vector<4x286xf32>
    %c0_116 = arith.constant 0 : index
    %c29 = arith.constant 29 : index
    %205 = vector.load %arg2[%c0_116, %c29] : memref<4x36xf32, #tpu.memory_space<vmem>>, vector<4x1xf32>
    %c0_117 = arith.constant 0 : index
    %c1_118 = arith.constant 1 : index
    %c37_119 = arith.constant 37 : index
    %206 = vector.load %arg1[%c0_117, %c1_118, %c37_119] : memref<1x4x324xf32, #tpu.memory_space<vmem>>, vector<1x1x286xf32>
    %207 = vector.shape_cast %206 : vector<1x1x286xf32> to vector<1x286xf32>
    %208 = vector.broadcast %205 : vector<4x1xf32> to vector<4x286xf32>
    %209 = vector.broadcast %207 : vector<1x286xf32> to vector<4x286xf32>
    %210 = arith.mulf %208, %209 : vector<4x286xf32>
    %211 = arith.addf %204, %210 : vector<4x286xf32>
    %c0_120 = arith.constant 0 : index
    %c30 = arith.constant 30 : index
    %212 = vector.load %arg2[%c0_120, %c30] : memref<4x36xf32, #tpu.memory_space<vmem>>, vector<4x1xf32>
    %c0_121 = arith.constant 0 : index
    %c2_122 = arith.constant 2 : index
    %c37_123 = arith.constant 37 : index
    %213 = vector.load %arg1[%c0_121, %c2_122, %c37_123] : memref<1x4x324xf32, #tpu.memory_space<vmem>>, vector<1x1x286xf32>
    %214 = vector.shape_cast %213 : vector<1x1x286xf32> to vector<1x286xf32>
    %215 = vector.broadcast %212 : vector<4x1xf32> to vector<4x286xf32>
    %216 = vector.broadcast %214 : vector<1x286xf32> to vector<4x286xf32>
    %217 = arith.mulf %215, %216 : vector<4x286xf32>
    %218 = arith.addf %211, %217 : vector<4x286xf32>
    %c0_124 = arith.constant 0 : index
    %c31 = arith.constant 31 : index
    %219 = vector.load %arg2[%c0_124, %c31] : memref<4x36xf32, #tpu.memory_space<vmem>>, vector<4x1xf32>
    %c0_125 = arith.constant 0 : index
    %c3_126 = arith.constant 3 : index
    %c37_127 = arith.constant 37 : index
    %220 = vector.load %arg1[%c0_125, %c3_126, %c37_127] : memref<1x4x324xf32, #tpu.memory_space<vmem>>, vector<1x1x286xf32>
    %221 = vector.shape_cast %220 : vector<1x1x286xf32> to vector<1x286xf32>
    %222 = vector.broadcast %219 : vector<4x1xf32> to vector<4x286xf32>
    %223 = vector.broadcast %221 : vector<1x286xf32> to vector<4x286xf32>
    %224 = arith.mulf %222, %223 : vector<4x286xf32>
    %225 = arith.addf %218, %224 : vector<4x286xf32>
    %c0_128 = arith.constant 0 : index
    %c32 = arith.constant 32 : index
    %226 = vector.load %arg2[%c0_128, %c32] : memref<4x36xf32, #tpu.memory_space<vmem>>, vector<4x1xf32>
    %c0_129 = arith.constant 0 : index
    %c0_130 = arith.constant 0 : index
    %c38 = arith.constant 38 : index
    %227 = vector.load %arg1[%c0_129, %c0_130, %c38] : memref<1x4x324xf32, #tpu.memory_space<vmem>>, vector<1x1x286xf32>
    %228 = vector.shape_cast %227 : vector<1x1x286xf32> to vector<1x286xf32>
    %229 = vector.broadcast %226 : vector<4x1xf32> to vector<4x286xf32>
    %230 = vector.broadcast %228 : vector<1x286xf32> to vector<4x286xf32>
    %231 = arith.mulf %229, %230 : vector<4x286xf32>
    %232 = arith.addf %225, %231 : vector<4x286xf32>
    %c0_131 = arith.constant 0 : index
    %c33 = arith.constant 33 : index
    %233 = vector.load %arg2[%c0_131, %c33] : memref<4x36xf32, #tpu.memory_space<vmem>>, vector<4x1xf32>
    %c0_132 = arith.constant 0 : index
    %c1_133 = arith.constant 1 : index
    %c38_134 = arith.constant 38 : index
    %234 = vector.load %arg1[%c0_132, %c1_133, %c38_134] : memref<1x4x324xf32, #tpu.memory_space<vmem>>, vector<1x1x286xf32>
    %235 = vector.shape_cast %234 : vector<1x1x286xf32> to vector<1x286xf32>
    %236 = vector.broadcast %233 : vector<4x1xf32> to vector<4x286xf32>
    %237 = vector.broadcast %235 : vector<1x286xf32> to vector<4x286xf32>
    %238 = arith.mulf %236, %237 : vector<4x286xf32>
    %239 = arith.addf %232, %238 : vector<4x286xf32>
    %c0_135 = arith.constant 0 : index
    %c34 = arith.constant 34 : index
    %240 = vector.load %arg2[%c0_135, %c34] : memref<4x36xf32, #tpu.memory_space<vmem>>, vector<4x1xf32>
    %c0_136 = arith.constant 0 : index
    %c2_137 = arith.constant 2 : index
    %c38_138 = arith.constant 38 : index
    %241 = vector.load %arg1[%c0_136, %c2_137, %c38_138] : memref<1x4x324xf32, #tpu.memory_space<vmem>>, vector<1x1x286xf32>
    %242 = vector.shape_cast %241 : vector<1x1x286xf32> to vector<1x286xf32>
    %243 = vector.broadcast %240 : vector<4x1xf32> to vector<4x286xf32>
    %244 = vector.broadcast %242 : vector<1x286xf32> to vector<4x286xf32>
    %245 = arith.mulf %243, %244 : vector<4x286xf32>
    %246 = arith.addf %239, %245 : vector<4x286xf32>
    %c0_139 = arith.constant 0 : index
    %c35 = arith.constant 35 : index
    %247 = vector.load %arg2[%c0_139, %c35] : memref<4x36xf32, #tpu.memory_space<vmem>>, vector<4x1xf32>
    %c0_140 = arith.constant 0 : index
    %c3_141 = arith.constant 3 : index
    %c38_142 = arith.constant 38 : index
    %248 = vector.load %arg1[%c0_140, %c3_141, %c38_142] : memref<1x4x324xf32, #tpu.memory_space<vmem>>, vector<1x1x286xf32>
    %249 = vector.shape_cast %248 : vector<1x1x286xf32> to vector<1x286xf32>
    %250 = vector.broadcast %247 : vector<4x1xf32> to vector<4x286xf32>
    %251 = vector.broadcast %249 : vector<1x286xf32> to vector<4x286xf32>
    %252 = arith.mulf %250, %251 : vector<4x286xf32>
    %253 = arith.addf %246, %252 : vector<4x286xf32>
    %c0_143 = arith.constant 0 : index
    %c0_144 = arith.constant 0 : index
    %254 = vector.load %arg3[%c0_143, %c0_144] : memref<4x2xf32, #tpu.memory_space<vmem>>, vector<4x1xf32>
    %255 = vector.broadcast %254 : vector<4x1xf32> to vector<4x286xf32>
    %256 = arith.mulf %253, %255 : vector<4x286xf32>
    %c0_145 = arith.constant 0 : index
    %c1_146 = arith.constant 1 : index
    %257 = vector.load %arg3[%c0_145, %c1_146] : memref<4x2xf32, #tpu.memory_space<vmem>>, vector<4x1xf32>
    %258 = vector.broadcast %257 : vector<4x1xf32> to vector<4x286xf32>
    %259 = arith.addf %256, %258 : vector<4x286xf32>
    %c0_147 = arith.constant 0 : index
    %c0_148 = arith.constant 0 : index
    %c19_149 = arith.constant 19 : index
    %260 = vector.load %arg1[%c0_147, %c0_148, %c19_149] : memref<1x4x324xf32, #tpu.memory_space<vmem>>, vector<1x4x286xf32>
    %261 = vector.shape_cast %260 : vector<1x4x286xf32> to vector<4x286xf32>
    %262 = arith.addf %259, %261 : vector<4x286xf32>
    %cst_150 = arith.constant 0.000000e+00 : f32
    %263 = vector.broadcast %cst_150 : f32 to vector<4x286xf32>
    %264 = arith.cmpf oge, %262, %263 : vector<4x286xf32>
    %cst_151 = arith.constant 1.000000e-01 : f32
    %265 = vector.broadcast %cst_151 : f32 to vector<4x286xf32>
    %266 = arith.mulf %265, %262 : vector<4x286xf32>
    %267 = arith.select %264, %262, %266 : vector<4x286xi1>, vector<4x286xf32>
    %c0_152 = arith.constant 0 : index
    %c0_153 = arith.constant 0 : index
    %268 = vector.load %arg9[%c0_152, %c0_153] : memref<4x286xf32, #tpu.memory_space<vmem>>, vector<4x286xf32>
    tpu.vector_store %arg9[%c0_152, %c0_153], %267 {strides = array<i32>} : memref<4x286xf32, #tpu.memory_space<vmem>>, vector<4x286xf32>,
    %cst_154 = arith.constant 0.000000e+00 : f32
    %269 = vector.broadcast %cst_154 : f32 to vector<4x19xf32>
    %c0_155 = arith.constant 0 : index
    %c0_156 = arith.constant 0 : index
    %270 = vector.load %arg8[%c0_155, %c0_156] : memref<4x324xf32, #tpu.memory_space<vmem>>, vector<4x19xf32>
    tpu.vector_store %arg8[%c0_155, %c0_156], %269 {strides = array<i32>} : memref<4x324xf32, #tpu.memory_space<vmem>>, vector<4x19xf32>,
    %cst_157 = arith.constant 0.000000e+00 : f32
    %271 = vector.broadcast %cst_157 : f32 to vector<4x19xf32>
    %c0_158 = arith.constant 0 : index
    %c305 = arith.constant 305 : index
    %272 = vector.load %arg8[%c0_158, %c305] : memref<4x324xf32, #tpu.memory_space<vmem>>, vector<4x19xf32>
    tpu.vector_store %arg8[%c0_158, %c305], %271 {strides = array<i32>} : memref<4x324xf32, #tpu.memory_space<vmem>>, vector<4x19xf32>,
    %273 = vector.broadcast %0 : vector<1x286xf32> to vector<4x286xf32>
    %274 = arith.mulf %267, %273 : vector<4x286xf32>
    %c0_159 = arith.constant 0 : index
    %c19_160 = arith.constant 19 : index
    %275 = vector.load %arg8[%c0_159, %c19_160] : memref<4x324xf32, #tpu.memory_space<vmem>>, vector<4x286xf32>
    tpu.vector_store %arg8[%c0_159, %c19_160], %274 {strides = array<i32>} : memref<4x324xf32, #tpu.memory_space<vmem>>, vector<4x286xf32>,
    %cst_161 = arith.constant 0.000000e+00 : f32
    %276 = vector.broadcast %cst_161 : f32 to vector<4x286xf32>
    %c0_162 = arith.constant 0 : index
    %c0_163 = arith.constant 0 : index
    %277 = vector.load %arg4[%c0_162, %c0_163] : memref<4x36xf32, #tpu.memory_space<vmem>>, vector<4x1xf32>
    %c0_164 = arith.constant 0 : index
    %c0_165 = arith.constant 0 : index
    %278 = vector.load %arg8[%c0_164, %c0_165] : memref<4x324xf32, #tpu.memory_space<vmem>>, vector<1x286xf32>
    %279 = vector.broadcast %277 : vector<4x1xf32> to vector<4x286xf32>
    %280 = vector.broadcast %278 : vector<1x286xf32> to vector<4x286xf32>
    %281 = arith.mulf %279, %280 : vector<4x286xf32>
    %282 = arith.addf %276, %281 : vector<4x286xf32>
    %c0_166 = arith.constant 0 : index
    %c1_167 = arith.constant 1 : index
    %283 = vector.load %arg4[%c0_166, %c1_167] : memref<4x36xf32, #tpu.memory_space<vmem>>, vector<4x1xf32>
    %c1_168 = arith.constant 1 : index
    %c0_169 = arith.constant 0 : index
    %284 = vector.load %arg8[%c1_168, %c0_169] : memref<4x324xf32, #tpu.memory_space<vmem>>, vector<1x286xf32>
    %285 = vector.broadcast %283 : vector<4x1xf32> to vector<4x286xf32>
    %286 = vector.broadcast %284 : vector<1x286xf32> to vector<4x286xf32>
    %287 = arith.mulf %285, %286 : vector<4x286xf32>
    %288 = arith.addf %282, %287 : vector<4x286xf32>
    %c0_170 = arith.constant 0 : index
    %c2_171 = arith.constant 2 : index
    %289 = vector.load %arg4[%c0_170, %c2_171] : memref<4x36xf32, #tpu.memory_space<vmem>>, vector<4x1xf32>
    %c2_172 = arith.constant 2 : index
    %c0_173 = arith.constant 0 : index
    %290 = vector.load %arg8[%c2_172, %c0_173] : memref<4x324xf32, #tpu.memory_space<vmem>>, vector<1x286xf32>
    %291 = vector.broadcast %289 : vector<4x1xf32> to vector<4x286xf32>
    %292 = vector.broadcast %290 : vector<1x286xf32> to vector<4x286xf32>
    %293 = arith.mulf %291, %292 : vector<4x286xf32>
    %294 = arith.addf %288, %293 : vector<4x286xf32>
    %c0_174 = arith.constant 0 : index
    %c3_175 = arith.constant 3 : index
    %295 = vector.load %arg4[%c0_174, %c3_175] : memref<4x36xf32, #tpu.memory_space<vmem>>, vector<4x1xf32>
    %c3_176 = arith.constant 3 : index
    %c0_177 = arith.constant 0 : index
    %296 = vector.load %arg8[%c3_176, %c0_177] : memref<4x324xf32, #tpu.memory_space<vmem>>, vector<1x286xf32>
    %297 = vector.broadcast %295 : vector<4x1xf32> to vector<4x286xf32>
    %298 = vector.broadcast %296 : vector<1x286xf32> to vector<4x286xf32>
    %299 = arith.mulf %297, %298 : vector<4x286xf32>
    %300 = arith.addf %294, %299 : vector<4x286xf32>
    %c0_178 = arith.constant 0 : index
    %c4_179 = arith.constant 4 : index
    %301 = vector.load %arg4[%c0_178, %c4_179] : memref<4x36xf32, #tpu.memory_space<vmem>>, vector<4x1xf32>
    %c0_180 = arith.constant 0 : index
    %c1_181 = arith.constant 1 : index
    %302 = vector.load %arg8[%c0_180, %c1_181] : memref<4x324xf32, #tpu.memory_space<vmem>>, vector<1x286xf32>
    %303 = vector.broadcast %301 : vector<4x1xf32> to vector<4x286xf32>
    %304 = vector.broadcast %302 : vector<1x286xf32> to vector<4x286xf32>
    %305 = arith.mulf %303, %304 : vector<4x286xf32>
    %306 = arith.addf %300, %305 : vector<4x286xf32>
    %c0_182 = arith.constant 0 : index
    %c5_183 = arith.constant 5 : index
    %307 = vector.load %arg4[%c0_182, %c5_183] : memref<4x36xf32, #tpu.memory_space<vmem>>, vector<4x1xf32>
    %c1_184 = arith.constant 1 : index
    %c1_185 = arith.constant 1 : index
    %308 = vector.load %arg8[%c1_184, %c1_185] : memref<4x324xf32, #tpu.memory_space<vmem>>, vector<1x286xf32>
    %309 = vector.broadcast %307 : vector<4x1xf32> to vector<4x286xf32>
    %310 = vector.broadcast %308 : vector<1x286xf32> to vector<4x286xf32>
    %311 = arith.mulf %309, %310 : vector<4x286xf32>
    %312 = arith.addf %306, %311 : vector<4x286xf32>
    %c0_186 = arith.constant 0 : index
    %c6_187 = arith.constant 6 : index
    %313 = vector.load %arg4[%c0_186, %c6_187] : memref<4x36xf32, #tpu.memory_space<vmem>>, vector<4x1xf32>
    %c2_188 = arith.constant 2 : index
    %c1_189 = arith.constant 1 : index
    %314 = vector.load %arg8[%c2_188, %c1_189] : memref<4x324xf32, #tpu.memory_space<vmem>>, vector<1x286xf32>
    %315 = vector.broadcast %313 : vector<4x1xf32> to vector<4x286xf32>
    %316 = vector.broadcast %314 : vector<1x286xf32> to vector<4x286xf32>
    %317 = arith.mulf %315, %316 : vector<4x286xf32>
    %318 = arith.addf %312, %317 : vector<4x286xf32>
    %c0_190 = arith.constant 0 : index
    %c7_191 = arith.constant 7 : index
    %319 = vector.load %arg4[%c0_190, %c7_191] : memref<4x36xf32, #tpu.memory_space<vmem>>, vector<4x1xf32>
    %c3_192 = arith.constant 3 : index
    %c1_193 = arith.constant 1 : index
    %320 = vector.load %arg8[%c3_192, %c1_193] : memref<4x324xf32, #tpu.memory_space<vmem>>, vector<1x286xf32>
    %321 = vector.broadcast %319 : vector<4x1xf32> to vector<4x286xf32>
    %322 = vector.broadcast %320 : vector<1x286xf32> to vector<4x286xf32>
    %323 = arith.mulf %321, %322 : vector<4x286xf32>
    %324 = arith.addf %318, %323 : vector<4x286xf32>
    %c0_194 = arith.constant 0 : index
    %c8_195 = arith.constant 8 : index
    %325 = vector.load %arg4[%c0_194, %c8_195] : memref<4x36xf32, #tpu.memory_space<vmem>>, vector<4x1xf32>
    %c0_196 = arith.constant 0 : index
    %c2_197 = arith.constant 2 : index
    %326 = vector.load %arg8[%c0_196, %c2_197] : memref<4x324xf32, #tpu.memory_space<vmem>>, vector<1x286xf32>
    %327 = vector.broadcast %325 : vector<4x1xf32> to vector<4x286xf32>
    %328 = vector.broadcast %326 : vector<1x286xf32> to vector<4x286xf32>
    %329 = arith.mulf %327, %328 : vector<4x286xf32>
    %330 = arith.addf %324, %329 : vector<4x286xf32>
    %c0_198 = arith.constant 0 : index
    %c9_199 = arith.constant 9 : index
    %331 = vector.load %arg4[%c0_198, %c9_199] : memref<4x36xf32, #tpu.memory_space<vmem>>, vector<4x1xf32>
    %c1_200 = arith.constant 1 : index
    %c2_201 = arith.constant 2 : index
    %332 = vector.load %arg8[%c1_200, %c2_201] : memref<4x324xf32, #tpu.memory_space<vmem>>, vector<1x286xf32>
    %333 = vector.broadcast %331 : vector<4x1xf32> to vector<4x286xf32>
    %334 = vector.broadcast %332 : vector<1x286xf32> to vector<4x286xf32>
    %335 = arith.mulf %333, %334 : vector<4x286xf32>
    %336 = arith.addf %330, %335 : vector<4x286xf32>
    %c0_202 = arith.constant 0 : index
    %c10_203 = arith.constant 10 : index
    %337 = vector.load %arg4[%c0_202, %c10_203] : memref<4x36xf32, #tpu.memory_space<vmem>>, vector<4x1xf32>
    %c2_204 = arith.constant 2 : index
    %c2_205 = arith.constant 2 : index
    %338 = vector.load %arg8[%c2_204, %c2_205] : memref<4x324xf32, #tpu.memory_space<vmem>>, vector<1x286xf32>
    %339 = vector.broadcast %337 : vector<4x1xf32> to vector<4x286xf32>
    %340 = vector.broadcast %338 : vector<1x286xf32> to vector<4x286xf32>
    %341 = arith.mulf %339, %340 : vector<4x286xf32>
    %342 = arith.addf %336, %341 : vector<4x286xf32>
    %c0_206 = arith.constant 0 : index
    %c11_207 = arith.constant 11 : index
    %343 = vector.load %arg4[%c0_206, %c11_207] : memref<4x36xf32, #tpu.memory_space<vmem>>, vector<4x1xf32>
    %c3_208 = arith.constant 3 : index
    %c2_209 = arith.constant 2 : index
    %344 = vector.load %arg8[%c3_208, %c2_209] : memref<4x324xf32, #tpu.memory_space<vmem>>, vector<1x286xf32>
    %345 = vector.broadcast %343 : vector<4x1xf32> to vector<4x286xf32>
    %346 = vector.broadcast %344 : vector<1x286xf32> to vector<4x286xf32>
    %347 = arith.mulf %345, %346 : vector<4x286xf32>
    %348 = arith.addf %342, %347 : vector<4x286xf32>
    %c0_210 = arith.constant 0 : index
    %c12_211 = arith.constant 12 : index
    %349 = vector.load %arg4[%c0_210, %c12_211] : memref<4x36xf32, #tpu.memory_space<vmem>>, vector<4x1xf32>
    %c0_212 = arith.constant 0 : index
    %c18_213 = arith.constant 18 : index
    %350 = vector.load %arg8[%c0_212, %c18_213] : memref<4x324xf32, #tpu.memory_space<vmem>>, vector<1x286xf32>
    %351 = vector.broadcast %349 : vector<4x1xf32> to vector<4x286xf32>
    %352 = vector.broadcast %350 : vector<1x286xf32> to vector<4x286xf32>
    %353 = arith.mulf %351, %352 : vector<4x286xf32>
    %354 = arith.addf %348, %353 : vector<4x286xf32>
    %c0_214 = arith.constant 0 : index
    %c13_215 = arith.constant 13 : index
    %355 = vector.load %arg4[%c0_214, %c13_215] : memref<4x36xf32, #tpu.memory_space<vmem>>, vector<4x1xf32>
    %c1_216 = arith.constant 1 : index
    %c18_217 = arith.constant 18 : index
    %356 = vector.load %arg8[%c1_216, %c18_217] : memref<4x324xf32, #tpu.memory_space<vmem>>, vector<1x286xf32>
    %357 = vector.broadcast %355 : vector<4x1xf32> to vector<4x286xf32>
    %358 = vector.broadcast %356 : vector<1x286xf32> to vector<4x286xf32>
    %359 = arith.mulf %357, %358 : vector<4x286xf32>
    %360 = arith.addf %354, %359 : vector<4x286xf32>
    %c0_218 = arith.constant 0 : index
    %c14_219 = arith.constant 14 : index
    %361 = vector.load %arg4[%c0_218, %c14_219] : memref<4x36xf32, #tpu.memory_space<vmem>>, vector<4x1xf32>
    %c2_220 = arith.constant 2 : index
    %c18_221 = arith.constant 18 : index
    %362 = vector.load %arg8[%c2_220, %c18_221] : memref<4x324xf32, #tpu.memory_space<vmem>>, vector<1x286xf32>
    %363 = vector.broadcast %361 : vector<4x1xf32> to vector<4x286xf32>
    %364 = vector.broadcast %362 : vector<1x286xf32> to vector<4x286xf32>
    %365 = arith.mulf %363, %364 : vector<4x286xf32>
    %366 = arith.addf %360, %365 : vector<4x286xf32>
    %c0_222 = arith.constant 0 : index
    %c15_223 = arith.constant 15 : index
    %367 = vector.load %arg4[%c0_222, %c15_223] : memref<4x36xf32, #tpu.memory_space<vmem>>, vector<4x1xf32>
    %c3_224 = arith.constant 3 : index
    %c18_225 = arith.constant 18 : index
    %368 = vector.load %arg8[%c3_224, %c18_225] : memref<4x324xf32, #tpu.memory_space<vmem>>, vector<1x286xf32>
    %369 = vector.broadcast %367 : vector<4x1xf32> to vector<4x286xf32>
    %370 = vector.broadcast %368 : vector<1x286xf32> to vector<4x286xf32>
    %371 = arith.mulf %369, %370 : vector<4x286xf32>
    %372 = arith.addf %366, %371 : vector<4x286xf32>
    %c0_226 = arith.constant 0 : index
    %c16_227 = arith.constant 16 : index
    %373 = vector.load %arg4[%c0_226, %c16_227] : memref<4x36xf32, #tpu.memory_space<vmem>>, vector<4x1xf32>
    %c0_228 = arith.constant 0 : index
    %c19_229 = arith.constant 19 : index
    %374 = vector.load %arg8[%c0_228, %c19_229] : memref<4x324xf32, #tpu.memory_space<vmem>>, vector<1x286xf32>
    %375 = vector.broadcast %373 : vector<4x1xf32> to vector<4x286xf32>
    %376 = vector.broadcast %374 : vector<1x286xf32> to vector<4x286xf32>
    %377 = arith.mulf %375, %376 : vector<4x286xf32>
    %378 = arith.addf %372, %377 : vector<4x286xf32>
    %c0_230 = arith.constant 0 : index
    %c17_231 = arith.constant 17 : index
    %379 = vector.load %arg4[%c0_230, %c17_231] : memref<4x36xf32, #tpu.memory_space<vmem>>, vector<4x1xf32>
    %c1_232 = arith.constant 1 : index
    %c19_233 = arith.constant 19 : index
    %380 = vector.load %arg8[%c1_232, %c19_233] : memref<4x324xf32, #tpu.memory_space<vmem>>, vector<1x286xf32>
    %381 = vector.broadcast %379 : vector<4x1xf32> to vector<4x286xf32>
    %382 = vector.broadcast %380 : vector<1x286xf32> to vector<4x286xf32>
    %383 = arith.mulf %381, %382 : vector<4x286xf32>
    %384 = arith.addf %378, %383 : vector<4x286xf32>
    %c0_234 = arith.constant 0 : index
    %c18_235 = arith.constant 18 : index
    %385 = vector.load %arg4[%c0_234, %c18_235] : memref<4x36xf32, #tpu.memory_space<vmem>>, vector<4x1xf32>
    %c2_236 = arith.constant 2 : index
    %c19_237 = arith.constant 19 : index
    %386 = vector.load %arg8[%c2_236, %c19_237] : memref<4x324xf32, #tpu.memory_space<vmem>>, vector<1x286xf32>
    %387 = vector.broadcast %385 : vector<4x1xf32> to vector<4x286xf32>
    %388 = vector.broadcast %386 : vector<1x286xf32> to vector<4x286xf32>
    %389 = arith.mulf %387, %388 : vector<4x286xf32>
    %390 = arith.addf %384, %389 : vector<4x286xf32>
    %c0_238 = arith.constant 0 : index
    %c19_239 = arith.constant 19 : index
    %391 = vector.load %arg4[%c0_238, %c19_239] : memref<4x36xf32, #tpu.memory_space<vmem>>, vector<4x1xf32>
    %c3_240 = arith.constant 3 : index
    %c19_241 = arith.constant 19 : index
    %392 = vector.load %arg8[%c3_240, %c19_241] : memref<4x324xf32, #tpu.memory_space<vmem>>, vector<1x286xf32>
    %393 = vector.broadcast %391 : vector<4x1xf32> to vector<4x286xf32>
    %394 = vector.broadcast %392 : vector<1x286xf32> to vector<4x286xf32>
    %395 = arith.mulf %393, %394 : vector<4x286xf32>
    %396 = arith.addf %390, %395 : vector<4x286xf32>
    %c0_242 = arith.constant 0 : index
    %c20_243 = arith.constant 20 : index
    %397 = vector.load %arg4[%c0_242, %c20_243] : memref<4x36xf32, #tpu.memory_space<vmem>>, vector<4x1xf32>
    %c0_244 = arith.constant 0 : index
    %c20_245 = arith.constant 20 : index
    %398 = vector.load %arg8[%c0_244, %c20_245] : memref<4x324xf32, #tpu.memory_space<vmem>>, vector<1x286xf32>
    %399 = vector.broadcast %397 : vector<4x1xf32> to vector<4x286xf32>
    %400 = vector.broadcast %398 : vector<1x286xf32> to vector<4x286xf32>
    %401 = arith.mulf %399, %400 : vector<4x286xf32>
    %402 = arith.addf %396, %401 : vector<4x286xf32>
    %c0_246 = arith.constant 0 : index
    %c21_247 = arith.constant 21 : index
    %403 = vector.load %arg4[%c0_246, %c21_247] : memref<4x36xf32, #tpu.memory_space<vmem>>, vector<4x1xf32>
    %c1_248 = arith.constant 1 : index
    %c20_249 = arith.constant 20 : index
    %404 = vector.load %arg8[%c1_248, %c20_249] : memref<4x324xf32, #tpu.memory_space<vmem>>, vector<1x286xf32>
    %405 = vector.broadcast %403 : vector<4x1xf32> to vector<4x286xf32>
    %406 = vector.broadcast %404 : vector<1x286xf32> to vector<4x286xf32>
    %407 = arith.mulf %405, %406 : vector<4x286xf32>
    %408 = arith.addf %402, %407 : vector<4x286xf32>
    %c0_250 = arith.constant 0 : index
    %c22_251 = arith.constant 22 : index
    %409 = vector.load %arg4[%c0_250, %c22_251] : memref<4x36xf32, #tpu.memory_space<vmem>>, vector<4x1xf32>
    %c2_252 = arith.constant 2 : index
    %c20_253 = arith.constant 20 : index
    %410 = vector.load %arg8[%c2_252, %c20_253] : memref<4x324xf32, #tpu.memory_space<vmem>>, vector<1x286xf32>
    %411 = vector.broadcast %409 : vector<4x1xf32> to vector<4x286xf32>
    %412 = vector.broadcast %410 : vector<1x286xf32> to vector<4x286xf32>
    %413 = arith.mulf %411, %412 : vector<4x286xf32>
    %414 = arith.addf %408, %413 : vector<4x286xf32>
    %c0_254 = arith.constant 0 : index
    %c23_255 = arith.constant 23 : index
    %415 = vector.load %arg4[%c0_254, %c23_255] : memref<4x36xf32, #tpu.memory_space<vmem>>, vector<4x1xf32>
    %c3_256 = arith.constant 3 : index
    %c20_257 = arith.constant 20 : index
    %416 = vector.load %arg8[%c3_256, %c20_257] : memref<4x324xf32, #tpu.memory_space<vmem>>, vector<1x286xf32>
    %417 = vector.broadcast %415 : vector<4x1xf32> to vector<4x286xf32>
    %418 = vector.broadcast %416 : vector<1x286xf32> to vector<4x286xf32>
    %419 = arith.mulf %417, %418 : vector<4x286xf32>
    %420 = arith.addf %414, %419 : vector<4x286xf32>
    %c0_258 = arith.constant 0 : index
    %c24_259 = arith.constant 24 : index
    %421 = vector.load %arg4[%c0_258, %c24_259] : memref<4x36xf32, #tpu.memory_space<vmem>>, vector<4x1xf32>
    %c0_260 = arith.constant 0 : index
    %c36_261 = arith.constant 36 : index
    %422 = vector.load %arg8[%c0_260, %c36_261] : memref<4x324xf32, #tpu.memory_space<vmem>>, vector<1x286xf32>
    %423 = vector.broadcast %421 : vector<4x1xf32> to vector<4x286xf32>
    %424 = vector.broadcast %422 : vector<1x286xf32> to vector<4x286xf32>
    %425 = arith.mulf %423, %424 : vector<4x286xf32>
    %426 = arith.addf %420, %425 : vector<4x286xf32>
    %c0_262 = arith.constant 0 : index
    %c25_263 = arith.constant 25 : index
    %427 = vector.load %arg4[%c0_262, %c25_263] : memref<4x36xf32, #tpu.memory_space<vmem>>, vector<4x1xf32>
    %c1_264 = arith.constant 1 : index
    %c36_265 = arith.constant 36 : index
    %428 = vector.load %arg8[%c1_264, %c36_265] : memref<4x324xf32, #tpu.memory_space<vmem>>, vector<1x286xf32>
    %429 = vector.broadcast %427 : vector<4x1xf32> to vector<4x286xf32>
    %430 = vector.broadcast %428 : vector<1x286xf32> to vector<4x286xf32>
    %431 = arith.mulf %429, %430 : vector<4x286xf32>
    %432 = arith.addf %426, %431 : vector<4x286xf32>
    %c0_266 = arith.constant 0 : index
    %c26_267 = arith.constant 26 : index
    %433 = vector.load %arg4[%c0_266, %c26_267] : memref<4x36xf32, #tpu.memory_space<vmem>>, vector<4x1xf32>
    %c2_268 = arith.constant 2 : index
    %c36_269 = arith.constant 36 : index
    %434 = vector.load %arg8[%c2_268, %c36_269] : memref<4x324xf32, #tpu.memory_space<vmem>>, vector<1x286xf32>
    %435 = vector.broadcast %433 : vector<4x1xf32> to vector<4x286xf32>
    %436 = vector.broadcast %434 : vector<1x286xf32> to vector<4x286xf32>
    %437 = arith.mulf %435, %436 : vector<4x286xf32>
    %438 = arith.addf %432, %437 : vector<4x286xf32>
    %c0_270 = arith.constant 0 : index
    %c27_271 = arith.constant 27 : index
    %439 = vector.load %arg4[%c0_270, %c27_271] : memref<4x36xf32, #tpu.memory_space<vmem>>, vector<4x1xf32>
    %c3_272 = arith.constant 3 : index
    %c36_273 = arith.constant 36 : index
    %440 = vector.load %arg8[%c3_272, %c36_273] : memref<4x324xf32, #tpu.memory_space<vmem>>, vector<1x286xf32>
    %441 = vector.broadcast %439 : vector<4x1xf32> to vector<4x286xf32>
    %442 = vector.broadcast %440 : vector<1x286xf32> to vector<4x286xf32>
    %443 = arith.mulf %441, %442 : vector<4x286xf32>
    %444 = arith.addf %438, %443 : vector<4x286xf32>
    %c0_274 = arith.constant 0 : index
    %c28_275 = arith.constant 28 : index
    %445 = vector.load %arg4[%c0_274, %c28_275] : memref<4x36xf32, #tpu.memory_space<vmem>>, vector<4x1xf32>
    %c0_276 = arith.constant 0 : index
    %c37_277 = arith.constant 37 : index
    %446 = vector.load %arg8[%c0_276, %c37_277] : memref<4x324xf32, #tpu.memory_space<vmem>>, vector<1x286xf32>
    %447 = vector.broadcast %445 : vector<4x1xf32> to vector<4x286xf32>
    %448 = vector.broadcast %446 : vector<1x286xf32> to vector<4x286xf32>
    %449 = arith.mulf %447, %448 : vector<4x286xf32>
    %450 = arith.addf %444, %449 : vector<4x286xf32>
    %c0_278 = arith.constant 0 : index
    %c29_279 = arith.constant 29 : index
    %451 = vector.load %arg4[%c0_278, %c29_279] : memref<4x36xf32, #tpu.memory_space<vmem>>, vector<4x1xf32>
    %c1_280 = arith.constant 1 : index
    %c37_281 = arith.constant 37 : index
    %452 = vector.load %arg8[%c1_280, %c37_281] : memref<4x324xf32, #tpu.memory_space<vmem>>, vector<1x286xf32>
    %453 = vector.broadcast %451 : vector<4x1xf32> to vector<4x286xf32>
    %454 = vector.broadcast %452 : vector<1x286xf32> to vector<4x286xf32>
    %455 = arith.mulf %453, %454 : vector<4x286xf32>
    %456 = arith.addf %450, %455 : vector<4x286xf32>
    %c0_282 = arith.constant 0 : index
    %c30_283 = arith.constant 30 : index
    %457 = vector.load %arg4[%c0_282, %c30_283] : memref<4x36xf32, #tpu.memory_space<vmem>>, vector<4x1xf32>
    %c2_284 = arith.constant 2 : index
    %c37_285 = arith.constant 37 : index
    %458 = vector.load %arg8[%c2_284, %c37_285] : memref<4x324xf32, #tpu.memory_space<vmem>>, vector<1x286xf32>
    %459 = vector.broadcast %457 : vector<4x1xf32> to vector<4x286xf32>
    %460 = vector.broadcast %458 : vector<1x286xf32> to vector<4x286xf32>
    %461 = arith.mulf %459, %460 : vector<4x286xf32>
    %462 = arith.addf %456, %461 : vector<4x286xf32>
    %c0_286 = arith.constant 0 : index
    %c31_287 = arith.constant 31 : index
    %463 = vector.load %arg4[%c0_286, %c31_287] : memref<4x36xf32, #tpu.memory_space<vmem>>, vector<4x1xf32>
    %c3_288 = arith.constant 3 : index
    %c37_289 = arith.constant 37 : index
    %464 = vector.load %arg8[%c3_288, %c37_289] : memref<4x324xf32, #tpu.memory_space<vmem>>, vector<1x286xf32>
    %465 = vector.broadcast %463 : vector<4x1xf32> to vector<4x286xf32>
    %466 = vector.broadcast %464 : vector<1x286xf32> to vector<4x286xf32>
    %467 = arith.mulf %465, %466 : vector<4x286xf32>
    %468 = arith.addf %462, %467 : vector<4x286xf32>
    %c0_290 = arith.constant 0 : index
    %c32_291 = arith.constant 32 : index
    %469 = vector.load %arg4[%c0_290, %c32_291] : memref<4x36xf32, #tpu.memory_space<vmem>>, vector<4x1xf32>
    %c0_292 = arith.constant 0 : index
    %c38_293 = arith.constant 38 : index
    %470 = vector.load %arg8[%c0_292, %c38_293] : memref<4x324xf32, #tpu.memory_space<vmem>>, vector<1x286xf32>
    %471 = vector.broadcast %469 : vector<4x1xf32> to vector<4x286xf32>
    %472 = vector.broadcast %470 : vector<1x286xf32> to vector<4x286xf32>
    %473 = arith.mulf %471, %472 : vector<4x286xf32>
    %474 = arith.addf %468, %473 : vector<4x286xf32>
    %c0_294 = arith.constant 0 : index
    %c33_295 = arith.constant 33 : index
    %475 = vector.load %arg4[%c0_294, %c33_295] : memref<4x36xf32, #tpu.memory_space<vmem>>, vector<4x1xf32>
    %c1_296 = arith.constant 1 : index
    %c38_297 = arith.constant 38 : index
    %476 = vector.load %arg8[%c1_296, %c38_297] : memref<4x324xf32, #tpu.memory_space<vmem>>, vector<1x286xf32>
    %477 = vector.broadcast %475 : vector<4x1xf32> to vector<4x286xf32>
    %478 = vector.broadcast %476 : vector<1x286xf32> to vector<4x286xf32>
    %479 = arith.mulf %477, %478 : vector<4x286xf32>
    %480 = arith.addf %474, %479 : vector<4x286xf32>
    %c0_298 = arith.constant 0 : index
    %c34_299 = arith.constant 34 : index
    %481 = vector.load %arg4[%c0_298, %c34_299] : memref<4x36xf32, #tpu.memory_space<vmem>>, vector<4x1xf32>
    %c2_300 = arith.constant 2 : index
    %c38_301 = arith.constant 38 : index
    %482 = vector.load %arg8[%c2_300, %c38_301] : memref<4x324xf32, #tpu.memory_space<vmem>>, vector<1x286xf32>
    %483 = vector.broadcast %481 : vector<4x1xf32> to vector<4x286xf32>
    %484 = vector.broadcast %482 : vector<1x286xf32> to vector<4x286xf32>
    %485 = arith.mulf %483, %484 : vector<4x286xf32>
    %486 = arith.addf %480, %485 : vector<4x286xf32>
    %c0_302 = arith.constant 0 : index
    %c35_303 = arith.constant 35 : index
    %487 = vector.load %arg4[%c0_302, %c35_303] : memref<4x36xf32, #tpu.memory_space<vmem>>, vector<4x1xf32>
    %c3_304 = arith.constant 3 : index
    %c38_305 = arith.constant 38 : index
    %488 = vector.load %arg8[%c3_304, %c38_305] : memref<4x324xf32, #tpu.memory_space<vmem>>, vector<1x286xf32>
    %489 = vector.broadcast %487 : vector<4x1xf32> to vector<4x286xf32>
    %490 = vector.broadcast %488 : vector<1x286xf32> to vector<4x286xf32>
    %491 = arith.mulf %489, %490 : vector<4x286xf32>
    %492 = arith.addf %486, %491 : vector<4x286xf32>
    %c0_306 = arith.constant 0 : index
    %c0_307 = arith.constant 0 : index
    %493 = vector.load %arg5[%c0_306, %c0_307] : memref<4x2xf32, #tpu.memory_space<vmem>>, vector<4x1xf32>
    %494 = vector.broadcast %493 : vector<4x1xf32> to vector<4x286xf32>
    %495 = arith.mulf %492, %494 : vector<4x286xf32>
    %c0_308 = arith.constant 0 : index
    %c1_309 = arith.constant 1 : index
    %496 = vector.load %arg5[%c0_308, %c1_309] : memref<4x2xf32, #tpu.memory_space<vmem>>, vector<4x1xf32>
    %497 = vector.broadcast %496 : vector<4x1xf32> to vector<4x286xf32>
    %498 = arith.addf %495, %497 : vector<4x286xf32>
    %c0_310 = arith.constant 0 : index
    %c0_311 = arith.constant 0 : index
    %499 = vector.load %arg9[%c0_310, %c0_311] : memref<4x286xf32, #tpu.memory_space<vmem>>, vector<4x286xf32>
    %500 = arith.addf %498, %499 : vector<4x286xf32>
    %cst_312 = arith.constant 0.000000e+00 : f32
    %501 = vector.broadcast %cst_312 : f32 to vector<4x19xf32>
    %c0_313 = arith.constant 0 : index
    %c0_314 = arith.constant 0 : index
    %c0_315 = arith.constant 0 : index
    %502 = vector.load %arg7[%c0_313, %c0_314, %c0_315] : memref<1x4x324xf32, #tpu.memory_space<vmem>>, vector<1x4x19xf32>
    %503 = vector.shape_cast %502 : vector<1x4x19xf32> to vector<4x19xf32>
    %504 = vector.shape_cast %501 : vector<4x19xf32> to vector<1x4x19xf32>
    tpu.vector_store %arg7[%c0_313, %c0_314, %c0_315], %504 {strides = array<i32>} : memref<1x4x324xf32, #tpu.memory_space<vmem>>, vector<1x4x19xf32>,
    %cst_316 = arith.constant 0.000000e+00 : f32
    %505 = vector.broadcast %cst_316 : f32 to vector<4x19xf32>
    %c0_317 = arith.constant 0 : index
    %c0_318 = arith.constant 0 : index
    %c305_319 = arith.constant 305 : index
    %506 = vector.load %arg7[%c0_317, %c0_318, %c305_319] : memref<1x4x324xf32, #tpu.memory_space<vmem>>, vector<1x4x19xf32>
    %507 = vector.shape_cast %506 : vector<1x4x19xf32> to vector<4x19xf32>
    %508 = vector.shape_cast %505 : vector<4x19xf32> to vector<1x4x19xf32>
    tpu.vector_store %arg7[%c0_317, %c0_318, %c305_319], %508 {strides = array<i32>} : memref<1x4x324xf32, #tpu.memory_space<vmem>>, vector<1x4x19xf32>,
    %509 = vector.broadcast %0 : vector<1x286xf32> to vector<4x286xf32>
    %510 = arith.mulf %500, %509 : vector<4x286xf32>
    %c0_320 = arith.constant 0 : index
    %c0_321 = arith.constant 0 : index
    %c19_322 = arith.constant 19 : index
    %511 = vector.load %arg7[%c0_320, %c0_321, %c19_322] : memref<1x4x324xf32, #tpu.memory_space<vmem>>, vector<1x4x286xf32>
    %512 = vector.shape_cast %511 : vector<1x4x286xf32> to vector<4x286xf32>
    %513 = vector.shape_cast %510 : vector<4x286xf32> to vector<1x4x286xf32>
    tpu.vector_store %arg7[%c0_320, %c0_321, %c19_322], %513 {strides = array<i32>} : memref<1x4x324xf32, #tpu.memory_space<vmem>>, vector<1x4x286xf32>,
    return
  }
  func.func @transform_0(%arg0: i32) -> (i32, i32, i32) {
    %c0_i32 = arith.constant 0 : i32
    %c0_i32_0 = arith.constant 0 : i32
    %c0_i32_1 = arith.constant 0 : i32
    return %arg0, %c0_i32, %c0_i32_0 : i32, i32, i32
  }
  func.func @transform_1(%arg0: i32) -> (i32, i32) {
    %c0_i32 = arith.constant 0 : i32
    %c0_i32_0 = arith.constant 0 : i32
    %c0_i32_1 = arith.constant 0 : i32
    return %c0_i32, %c0_i32_0 : i32, i32
  }
  func.func @transform_2(%arg0: i32) -> (i32, i32) {
    %c0_i32 = arith.constant 0 : i32
    %c0_i32_0 = arith.constant 0 : i32
    %c0_i32_1 = arith.constant 0 : i32
    return %c0_i32, %c0_i32_0 : i32, i32
  }
  func.func @transform_3(%arg0: i32) -> (i32, i32) {
    %c0_i32 = arith.constant 0 : i32
    %c0_i32_0 = arith.constant 0 : i32
    %c0_i32_1 = arith.constant 0 : i32
    return %c0_i32, %c0_i32_0 : i32, i32
  }
  func.func @transform_4(%arg0: i32) -> (i32, i32) {
    %c0_i32 = arith.constant 0 : i32
    %c0_i32_0 = arith.constant 0 : i32
    %c0_i32_1 = arith.constant 0 : i32
    return %c0_i32, %c0_i32_0 : i32, i32
  }
  func.func @transform_5(%arg0: i32) -> (i32, i32) {
    %c0_i32 = arith.constant 0 : i32
    %c0_i32_0 = arith.constant 0 : i32
    %c0_i32_1 = arith.constant 0 : i32
    return %c0_i32, %c0_i32_0 : i32, i32
  }
  func.func @transform_6(%arg0: i32) -> (i32, i32, i32) {
    %c0_i32 = arith.constant 0 : i32
    %c0_i32_0 = arith.constant 0 : i32
    %c0_i32_1 = arith.constant 0 : i32
    return %arg0, %c0_i32, %c0_i32_0 : i32, i32, i32
  }
}

</mosaic_0001>

<bundles_post_ra>
// kernel: tpu_custom_call.1
= control target key start
LH: loop header
LB: loop body
LE: loop exit
PB: predicated region body
PF: predicated region fallthrough
CT: control target
= control target key end

     0   :  { %11 = vsyncpa [#allocation5], 0  ;;  %s4102_s0 = inlined_call_operand.hbm [shape: f32[2,4,324], index: 0, kind: input, shape index: {}]   ;;  %s4103_s1 = inlined_call_operand.vmem [shape: f32[4,36], index: 1, kind: input, shape index: {}]   ;;  %s4104_s2 = inlined_call_operand.vmem [shape: f32[4,2], index: 2, kind: input, shape index: {}]   ;;  %s4105_s3 = inlined_call_operand.vmem [shape: f32[4,36], index: 3, kind: input, shape index: {}]   ;;  %s4106_s4 = inlined_call_operand.vmem [shape: f32[4,2], index: 4, kind: input, shape index: {}]   ;;  %s4107_s5 = inlined_call_operand.vmem [shape: f32[1,286], index: 5, kind: input, shape index: {}]   ;;  %s4108_s6 = inlined_call_operand.hbm [shape: f32[2,4,324], index: 6, kind: output, shape index: {}]  }
   0x1   :  { %13 = vsyncpa [#allocation5 + $0x1], 0 }
   0x2   :  { %14 = vsyncpa [#allocation6], 0 }
   0x3   :  { %16 = vsyncpa [#allocation6 + $0x1], 0  ;;  %s2622_s21 = smov 0   ;;  %s2624_s22 = smov 0  }
   0x4   :  { %s2626_s23 = smov 0   ;;  %s2628_s24 = smov 0  }
   0x5 LB: > { %s2643_s25 = sadd.s32 4294967295, %s2537_s24   ;;  %s2262_s26 = sadd.s32 4294967294, %s2537_s24   ;;  %s2537_s24 = sphi %s2628_s24, %s4330_s24   ;;  %s2533_s23 = sphi %s2626_s23, %s4329_s23   ;;  %s2529_s22 = sphi %s2624_s22, %s4328_s22   ;;  %s2525_s21 = sphi %s2622_s21, %s4327_s21  }
   0x6   : > { %s2647_s27 = sadd.s32 1, %s2537_s24   ;;  %s29_s28 = sadd.s32 1, %s2533_s23 }
   0x7   : > { %s26_s29 = ssub.s32 %s2537_s24, %s2647_s27  ;;  %p36_p0 = scmp.ne.s32.totalorder %s2533_s23, %s2529_s22 }
   0x8   : > { %p27_p1 = scmp.eq.s32.totalorder %s26_s29, 0  ;;  %p37_p2 = scmp.eq.s32.totalorder %s2537_s24, 0 }
   0x9   : > { %p42_p3 = scmp.ne.s32.totalorder %s2529_s22, %s2525_s21  ;;  %p43_p4 = scmp.eq.s32.totalorder %s2643_s25, 0 }
   0xa   : > { %s2659_s30 = scalar_select %p27_p1, %s2533_s23, %s29_s28  }
   0xb   : > { %p38_p5 = por %p37_p2, %p36_p0  ;;  %p2661_p6 = por %p43_p4, %p42_p3 }
   0xc   : > { %p171_p7 = scmp.eq.s32.totalorder %s2643_s25, 1  ;;  %p177_p8 = scmp.eq.s32.totalorder %s2262_s26, 1 }
   0xd   : > { %s4184_s7 = scalar_select %p2661_p6, 1, 0 }
   0xe   : > { %p2289_p10 = scmp.lt.s32.totalorder %s2537_s24, 2  ;;  %p2668_p11 = por %p171_p7, %p36_p0 }
   0xf   : > { %p2672_p12 = por %p177_p8, %p42_p3  ;;  %s212_s10 = sand.u32 1, %s2533_s23  }
  0x10   : > { %s4185_s8 = scalar_select %p2668_p11, 1, 0 }
  0x11   : > { %s4186_s9 = scalar_select %p2672_p12, 1, 0 }
  0x12   : > { %s2274_s11 = smul.u32 192, %s2537_s24  ;;  %p2683_p13 = pnand %p2289_p10, %p38_p5 }
  0x13   : > { %s2273_s12 = smul.u32 12, %s212_s10  ;;  %s213_s19 = scalar_lea.sflag [#allocation5], %s212_s10 }
  0x14   : > { %s2681_s15 = scalar_lea.hbm %s4102_s0, %s2274_s11  ;;  %p2447_p3 = pneg %p2683_p13 }
  0x15   : > { %s216_s17 = scalar_lea.vmem [#allocation4], %s2273_s12  ;;  %s2445_s20 = scalar_lea.hbm %s2681_s15, 192 }
  0x16   : > { %s224_s18 = sshll.u32 %s216_s17, 4  ;;  %p2446_p2 = scmp.ne.s32.totalorder %s2681_s15, %s2445_s20  ;;  %s225_s18 = int_to_ptr.vmem [resolvable:$true] %s224_s18 }
  0x17   : > { %s2450_s29 = scalar_lea.hbm %s4102_s0, 384  ;;  %p2451_p5 = scmp.lt.s32.totalorder %s2681_s15, %s4102_s0 }
  0x18   : > { %p2448_p4 = pnand %p2447_p3, %p2446_p2  ;;  %p2452_p8 = scmp.lt.s32.totalorder %s2450_s29, %s2445_s20 }
  0x1a   : > { %p2449_p7 = pneg %p2448_p4  ;;  %p2453_p10 = por %p2452_p8, %p2451_p5 }
  0x1c   : > { %p2454_p9 = pnand %p2453_p10, %p2449_p7 }
  0x1e   : > { %2457 = shalt.err (!%p2454_p9)
}
  0x1f   : > { %s2458_s12 = scalar_lea.vmem %s225_s18, 192  ;;  %s2539_s10 = smov [#allocation4]  }
  0x20   : > { %p2459_p0 = scmp.ne.s32.totalorder %s225_s18, %s2458_s12  ;;  %s2463_s14 = sshll.u32 %s2539_s10, 4  ;;  %s2464_s14 = int_to_ptr.vmem [resolvable:$false] %s2463_s14 }
  0x21   : > { %s2465_s17 = scalar_lea.vmem %s2464_s14, 384  ;;  %p2466_p2 = scmp.lt.s32.totalorder %s225_s18, %s2464_s14 }
  0x22   : > { %p2461_p1 = pnand %p2459_p0, %p2447_p3  ;;  %p2467_p4 = scmp.lt.s32.totalorder %s2465_s17, %s2458_s12 }
  0x24   : > { %p2462_p12 = pneg %p2461_p1  ;;  %p2468_p11 = por %p2467_p4, %p2466_p2 }
  0x26   : > { %p2469_p6 = pnand %p2468_p11, %p2462_p12 }
  0x28   : > { %2472 = shalt.err (!%p2469_p6)
}
  0x29   : > { %2284 = dma.hbm_to_vmem [thread:$0]  (!%p2683_p13), %s2681_s15, 192, %s225_s18, %s213_s19  }
  0x2a   : > { %p4188_p9 = scmp.lt.s32.totalorder %s2537_s24, 3  ;;  %p4189_p7 = scmp.ge.s32.totalorder %s2537_s24, 1 }
  0x2c   : > { %p230_p5 = pnand %p4189_p7, %p4188_p9 }
  0x2e   : > { %233 = sbr.rel (%p230_p5) target bundleno = 2599 (0xa27), region = 44 }
  0x33   : > { %s2708_s20 = sand.u32 1, %s2529_s22   ;;  %p4190_p6 = scmp.ne.s32.totalorder %s4184_s7, 0 }
  0x34   : > { %s2275_s26 = smul.u32 12, %s2708_s20  ;;  %s236_s28 = scalar_lea.sflag [#allocation5], %s2708_s20 }
  0x36   : > { %s2714_s29 = scalar_lea.vmem [#allocation4], %s2275_s26 }
  0x37   : > { %2516 = dma.done.wait (%p4190_p6), %s236_s28, 192  }
  0x38   : > { %2518 = vsyncadd (%p4190_p6), %s236_s28, 4294967104  ;;  %v4137_v0 = vmov 2   ;;  %v4142_v1 = vmov 0   ;;  %v2725_v2 = vld [vmem:[%s4103_s1] sm:$0xf]  ;;  %v4140_v3 = vmov 3   ;;  %v277_v21 = vlaneseq }
  0x39   : > { %2370 = vset.pattern.permute.xlu1 %v4137_v0  ;;  %2369 = vset.pattern.permute.xlu0 %v4142_v1  ;;  %v4135_v4 = vmov 4   ;;  %v4138_v5 = vmov 5   ;;  %v4133_v6 = vmov 6   ;;  %v4132_v7 = vmov 7   ;;  %s2560_s7 = smov 127   ;;  %s2561_s18 = smov 126  }
  0x3a   : > { %329 = vperm.xlu1 %2370, %v2725_v2   ;;  %273 = vperm.xlu0 %2369, %v2725_v2   ;;  %v4130_v8 = vmov 8   ;;  %v4129_v9 = vmov 9   ;;  %v4128_v10 = vmov 10   ;;  %v4127_v11 = vmov 11   ;;  %s2562_s19 = smov 110   ;;  %s2563_s11 = smov 109  }
  0x3b   : > { %v4126_v12 = vmov 12   ;;  %v4124_v13 = vmov 13   ;;  %v4136_v14 = vmov 14   ;;  %v4122_v15 = vmov 15   ;;  %s2565_s13 = smov 108   ;;  %s2570_s12 = smov 92  }
  0x3c   : > { %v4116_v16 = vmov 16   ;;  %v4134_v17 = vmov 17   ;;  %v4114_v18 = vmov 18   ;;  %v4113_v19 = vmov 19   ;;  %s2575_s10 = smov 91   ;;  %s2583_s14 = smov 90  }
  0x3d   : > { %v4120_v20 = vmov 20   ;;  %v278_v23 = vshrl.u32 %v277_v21, 7  ;;  %v270_v24 = vld [vmem:[%s2714_s29] ss:$4 sm:$0x7]  ;;  %vm398_vm0 = vcmask 1039360  }
  0x3e   : > { %2371 = vset.pattern.permute.xlu1 %v4140_v3  ;;  %v2267_v31 = vld [vmem:[%s2714_s29 + $0x1] ss:$4 sm:$0x7]  ;;  %v2268_v40 = vld [vmem:[%s2714_s29 + $0x2] ss:$4 sm:$0x7] }
  0x3f   : > { %357 = vperm.xlu1 %2371, %v2725_v2   ;;  %v2767_v25 = vsub.s32 0, %v278_v23  ;;  %v2769_v26 = vsub.s32 1, %v278_v23  ;;  %v2779_v30 = vsub.s32 2, %v278_v23  ;;  %v2269_v46 = vld [vmem:[%s2714_s29 + $0x3] ss:$4 sm:$0x7] }
  0x40   : > { %vm495_vm1 = vcmask 1031168   ;;  %vm592_vm2 = vcmask 900096   ;;  %vm689_vm3 = vcmask 891904   ;;  %vm786_vm4 = vcmask 883712   ;;  %s2585_s28 = smov 19   ;;  %p4324_p12 = scmp.ne.s32.totalorder %s4185_s8, 0 }
  0x41   : > { %4191 = vst [vmem:[#allocation10_spill] sm:$0xff] %v2767_v25  ;;  %4192 = vst [vmem:[#allocation11_spill] sm:$0xff] %v2769_v26  ;;  %v2774_v28 = vrot.slane %v270_v24, %v2769_v26  ;;  %v2777_v29 = vrot.slane %v270_v24, %v2767_v25  ;;  %v2785_v35 = vrot.slane %v270_v24, %v2779_v30  ;;  %vm883_vm5 = vcmask 752640   ;;  %s2586_s15 = smov [#allocation7]  }
  0x42   : > { %4193 = vst [vmem:[#allocation12_spill] sm:$0xff] %v2779_v30  ;;  %v2788_v36 = vrot.slane %v2267_v31, %v2769_v26  ;;  %v2794_v39 = vrot.slane %v2267_v31, %v2767_v25  ;;  %v2801_v42 = vrot.slane %v2268_v40, %v2769_v26  ;;  %v2805_v44 = vrot.slane %v2267_v31, %v2779_v30  ;;  %s2477_s16 = sshll.u32 %s2586_s15, 4  ;;  %s2478_s16 = int_to_ptr.vmem [resolvable:$false] %s2477_s16 }
  0x43   : > { %2372 = vset.pattern.permute.xlu1 %v4135_v4  ;;  %v2813_v49 = vrot.slane %v2269_v46, %v2769_v26  ;;  %v2816_v50 = vrot.slane %v2268_v40, %v2767_v25  ;;  %v2823_v54 = vrot.slane %v2268_v40, %v2779_v30  ;;  %v2829_v58 = vrot.slane %v2269_v46, %v2767_v25 }
  0x44   : > { %383 = vperm.xlu1 %2372, %v2725_v2   ;;  %v2836_v62 = vrot.slane %v2269_v46, %v2779_v30  ;;  %vm980_vm6 = vcmask 744448   ;;  %vm1077_vm7 = vcmask 736256   ;;  %vm1209_vm8 = vcmask 150528  }
  0x45   : > { %vm1211_vm9 = vcmask 552328   ;;  %vm1207_vm10 = vcmask 240640   ;;  %vm1246_vm14 = vcmask 1043608   ;;  %vm1247_vm15 = vcmask 1047556  }
  0x48   : > { %2373 = vset.pattern.permute.xlu1 %v4138_v5 }
  0x49   : > { %408 = vperm.xlu1 %2373, %v2725_v2  }
  0x4d   : > { %2374 = vset.pattern.permute.xlu1 %v4133_v6  ;;  %v4139_v6 = vmov 32  }
  0x4e   : > { %432 = vperm.xlu1 %2374, %v2725_v2   ;;  %2400 = vset.pattern.permute.xlu0 %v4139_v6 }
  0x52   : > { %2375 = vset.pattern.permute.xlu1 %v4132_v7 }
  0x53   : > { %456 = vperm.xlu1 %2375, %v2725_v2  }
  0x57   : > { %2376 = vset.pattern.permute.xlu1 %v4130_v8 }
  0x58   : > { %480 = vperm.xlu1 %2376, %v2725_v2  }
  0x5c   : > { %2377 = vset.pattern.permute.xlu1 %v4129_v9 }
  0x5d   : > { %505 = vperm.xlu1 %2377, %v2725_v2  }
  0x61   : > { %2378 = vset.pattern.permute.xlu1 %v4128_v10 }
  0x62   : > { %529 = vperm.xlu1 %2378, %v2725_v2  }
  0x66   : > { %2379 = vset.pattern.permute.xlu1 %v4127_v11 }
  0x67   : > { %553 = vperm.xlu1 %2379, %v2725_v2  }
  0x6b   : > { %2380 = vset.pattern.permute.xlu1 %v4126_v12 }
  0x6c   : > { %577 = vperm.xlu1 %2380, %v2725_v2  }
  0x70   : > { %2381 = vset.pattern.permute.xlu1 %v4124_v13 }
  0x71   : > { %602 = vperm.xlu1 %2381, %v2725_v2  }
  0x75   : > { %2382 = vset.pattern.permute.xlu1 %v4136_v14 }
  0x76   : > { %626 = vperm.xlu1 %2382, %v2725_v2  }
  0x7a   : > { %2383 = vset.pattern.permute.xlu1 %v4122_v15 }
  0x7b   : > { %650 = vperm.xlu1 %2383, %v2725_v2  }
  0x7f   : > { %2384 = vset.pattern.permute.xlu1 %v4116_v16 }
  0x80   : > { %674 = vperm.xlu1 %2384, %v2725_v2  }
  0x84   : > { %2385 = vset.pattern.permute.xlu1 %v4134_v17  ;;  %v4141_v17 = vmov 31  }
  0x85   : > { %699 = vperm.xlu1 %2385, %v2725_v2  }
  0x89   : > { %2386 = vset.pattern.permute.xlu1 %v4114_v18 }
  0x8a   : > { %723 = vperm.xlu1 %2386, %v2725_v2  }
  0x8e   : > { %2387 = vset.pattern.permute.xlu1 %v4113_v19 }
  0x8f   : > { %747 = vperm.xlu1 %2387, %v2725_v2  }
  0x93   : > { %2388 = vset.pattern.permute.xlu1 %v4120_v20 }
  0xb5   : > { %v2764_v22 = vpop.permute.xlu1 %329 }
  0xba   : > { %v2771_v27 = vpop.permute.xlu1 %357 }
  0xbf   : > { %v384_v32 = vpop.permute.xlu1 %383 }
  0xc0   : > { %v387_v33 = vmul.f32 %v384_v32, %v2774_v28  ;;  %v386_v34 = vmul.f32 %v384_v32, %v2777_v29  ;;  %v388_v38 = vmul.f32 %v384_v32, %v2785_v35 }
  0xc2   : > { %394 = vrot.lane.b32.xlu1 %v387_v33, %s2560_s7  ;;  %392 = vrot.lane.b32.xlu0 %v386_v34, %s2560_s7 }
  0xc4   : > { %v409_v37 = vpop.permute.xlu1 %408 }
  0xc5   : > { %v412_v41 = vmul.f32 %v409_v37, %v2788_v36  ;;  %v411_v43 = vmul.f32 %v409_v37, %v2794_v39  ;;  %v413_v48 = vmul.f32 %v409_v37, %v2805_v44 }
  0xc6   : > { %396 = vrot.lane.b32.xlu0 %v388_v38, %s2560_s7 }
  0xc7   : > { %419 = vrot.lane.b32.xlu1 %v412_v41, %s2560_s7 }
  0xc9   : > { %v433_v45 = vpop.permute.xlu1 %432 }
  0xca   : > { %417 = vrot.lane.b32.xlu0 %v411_v43, %s2560_s7  ;;  %v436_v47 = vmul.f32 %v433_v45, %v2801_v42  ;;  %v435_v53 = vmul.f32 %v433_v45, %v2816_v50  ;;  %v437_v57 = vmul.f32 %v433_v45, %v2823_v54 }
  0xcc   : > { %443 = vrot.lane.b32.xlu1 %v436_v47, %s2560_s7 }
  0xce   : > { %v457_v51 = vpop.permute.xlu1 %456  ;;  %421 = vrot.lane.b32.xlu0 %v413_v48, %s2560_s7 }
  0xcf   : > { %v460_v52 = vmul.f32 %v457_v51, %v2813_v49  ;;  %v459_v60 = vmul.f32 %v457_v51, %v2829_v58  ;;  %v461_v63 = vmul.f32 %v457_v51, %v2836_v62 }
  0xd1   : > { %467 = vrot.lane.b32.xlu1 %v460_v52, %s2560_s7 }
  0xd2   : > { %441 = vrot.lane.b32.xlu0 %v435_v53, %s2560_s7 }
  0xd3   : > { %v481_v55 = vpop.permute.xlu1 %480 }
  0xd4   : > { %v484_v56 = vmul.f32 %v481_v55, %v2774_v28  ;;  %v483_v24 = vmul.f32 %v481_v55, %v2777_v29  ;;  %v485_v33 = vmul.f32 %v481_v55, %v2785_v35 }
  0xd6   : > { %491 = vrot.lane.b32.xlu1 %v484_v56, %s2561_s18  ;;  %445 = vrot.lane.b32.xlu0 %v437_v57, %s2560_s7 }
  0xd8   : > { %v506_v59 = vpop.permute.xlu1 %505 }
  0xd9   : > { %v509_v61 = vmul.f32 %v506_v59, %v2788_v36  ;;  %v508_v38 = vmul.f32 %v506_v59, %v2794_v39  ;;  %v510_v41 = vmul.f32 %v506_v59, %v2805_v44 }
  0xda   : > { %465 = vrot.lane.b32.xlu0 %v459_v60, %s2560_s7 }
  0xdb   : > { %516 = vrot.lane.b32.xlu1 %v509_v61, %s2561_s18 }
  0xdd   : > { %v530_v21 = vpop.permute.xlu1 %529 }
  0xde   : > { %469 = vrot.lane.b32.xlu0 %v461_v63, %s2560_s7  ;;  %v533_v23 = vmul.f32 %v530_v21, %v2801_v42  ;;  %v532_v45 = vmul.f32 %v530_v21, %v2816_v50  ;;  %v534_v48 = vmul.f32 %v530_v21, %v2823_v54 }
  0xe0   : > { %540 = vrot.lane.b32.xlu1 %v533_v23, %s2561_s18 }
  0xe2   : > { %v554_v31 = vpop.permute.xlu1 %553  ;;  %489 = vrot.lane.b32.xlu0 %v483_v24, %s2561_s18 }
  0xe3   : > { %v557_v32 = vmul.f32 %v554_v31, %v2813_v49  ;;  %v556_v53 = vmul.f32 %v554_v31, %v2829_v58  ;;  %v558_v57 = vmul.f32 %v554_v31, %v2836_v62 }
  0xe5   : > { %564 = vrot.lane.b32.xlu1 %v557_v32, %s2561_s18 }
  0xe6   : > { %493 = vrot.lane.b32.xlu0 %v485_v33, %s2561_s18 }
  0xe7   : > { %v578_v34 = vpop.permute.xlu1 %577 }
  0xe8   : > { %v581_v37 = vmul.f32 %v578_v34, %v2774_v28  ;;  %v580_v60 = vmul.f32 %v578_v34, %v2777_v29  ;;  %v582_v63 = vmul.f32 %v578_v34, %v2785_v35 }
  0xea   : > { %588 = vrot.lane.b32.xlu1 %v581_v37, %s2562_s19  ;;  %514 = vrot.lane.b32.xlu0 %v508_v38, %s2561_s18  ;;  %v4112_v38 = vmov 21  }
  0xec   : > { %v603_v40 = vpop.permute.xlu1 %602 }
  0xed   : > { %v606_v43 = vmul.f32 %v603_v40, %v2788_v36  ;;  %v605_v24 = vmul.f32 %v603_v40, %v2794_v39  ;;  %v607_v33 = vmul.f32 %v603_v40, %v2805_v44 }
  0xee   : > { %518 = vrot.lane.b32.xlu0 %v510_v41, %s2561_s18 }
  0xef   : > { %613 = vrot.lane.b32.xlu1 %v606_v43, %s2562_s19 }
  0xf1   : > { %v627_v46 = vpop.permute.xlu1 %626 }
  0xf2   : > { %538 = vrot.lane.b32.xlu0 %v532_v45, %s2561_s18  ;;  %v630_v47 = vmul.f32 %v627_v46, %v2801_v42  ;;  %v629_v34 = vmul.f32 %v627_v46, %v2816_v50  ;;  %v631_v37 = vmul.f32 %v627_v46, %v2823_v54 }
  0xf4   : > { %637 = vrot.lane.b32.xlu1 %v630_v47, %s2562_s19 }
  0xf6   : > { %v651_v51 = vpop.permute.xlu1 %650  ;;  %542 = vrot.lane.b32.xlu0 %v534_v48, %s2561_s18 }
  0xf7   : > { %v654_v52 = vmul.f32 %v651_v51, %v2813_v49  ;;  %v653_v41 = vmul.f32 %v651_v51, %v2829_v58  ;;  %v655_v40 = vmul.f32 %v651_v51, %v2836_v62 }
  0xf9   : > { %661 = vrot.lane.b32.xlu1 %v654_v52, %s2562_s19 }
  0xfa   : > { %562 = vrot.lane.b32.xlu0 %v556_v53, %s2561_s18 }
  0xfb   : > { %v675_v55 = vpop.permute.xlu1 %674 }
  0xfc   : > { %v678_v56 = vmul.f32 %v675_v55, %v2774_v28  ;;  %v677_v43 = vmul.f32 %v675_v55, %v2777_v29  ;;  %v679_v45 = vmul.f32 %v675_v55, %v2785_v35 }
  0xfe   : > { %685 = vrot.lane.b32.xlu1 %v678_v56, %s2563_s11  ;;  %566 = vrot.lane.b32.xlu0 %v558_v57, %s2561_s18 }
 0x100   : > { %v700_v59 = vpop.permute.xlu1 %699 }
 0x101   : > { %v703_v61 = vmul.f32 %v700_v59, %v2788_v36  ;;  %v702_v46 = vmul.f32 %v700_v59, %v2794_v39  ;;  %v704_v47 = vmul.f32 %v700_v59, %v2805_v44 }
 0x102   : > { %586 = vrot.lane.b32.xlu0 %v580_v60, %s2562_s19 }
 0x103   : > { %710 = vrot.lane.b32.xlu1 %v703_v61, %s2563_s11 }
 0x105   : > { %v724_v21 = vpop.permute.xlu1 %723 }
 0x106   : > { %590 = vrot.lane.b32.xlu0 %v582_v63, %s2562_s19  ;;  %v727_v23 = vmul.f32 %v724_v21, %v2801_v42  ;;  %v726_v48 = vmul.f32 %v724_v21, %v2816_v50  ;;  %v728_v52 = vmul.f32 %v724_v21, %v2823_v54 }
 0x108   : > { %734 = vrot.lane.b32.xlu1 %v727_v23, %s2563_s11 }
 0x10a   : > { %v748_v31 = vpop.permute.xlu1 %747  ;;  %611 = vrot.lane.b32.xlu0 %v605_v24, %s2562_s19 }
 0x10b   : > { %v751_v32 = vmul.f32 %v748_v31, %v2813_v49  ;;  %v750_v53 = vmul.f32 %v748_v31, %v2829_v58  ;;  %v752_v56 = vmul.f32 %v748_v31, %v2836_v62 }
 0x10d   : > { %758 = vrot.lane.b32.xlu1 %v751_v32, %s2563_s11 }
 0x10e   : > { %615 = vrot.lane.b32.xlu0 %v607_v33, %s2562_s19 }
 0x111   : > { %771 = vperm.xlu1 %2388, %v2725_v2  }
 0x112   : > { %635 = vrot.lane.b32.xlu0 %v629_v34, %s2562_s19 }
 0x115   : > { %2389 = vset.pattern.permute.xlu1 %v4112_v38 }
 0x116   : > { %639 = vrot.lane.b32.xlu0 %v631_v37, %s2562_s19 }
 0x11a   : > { %659 = vrot.lane.b32.xlu0 %v653_v41, %s2562_s19 }
 0x11e   : > { %663 = vrot.lane.b32.xlu0 %v655_v40, %s2562_s19 }
 0x122   : > { %683 = vrot.lane.b32.xlu0 %v677_v43, %s2563_s11 }
 0x126   : > { %687 = vrot.lane.b32.xlu0 %v679_v45, %s2563_s11 }
 0x12a   : > { %708 = vrot.lane.b32.xlu0 %v702_v46, %s2563_s11 }
 0x12e   : > { %712 = vrot.lane.b32.xlu0 %v704_v47, %s2563_s11  ;;  %v4111_v47 = vmov 22  }
 0x132   : > { %732 = vrot.lane.b32.xlu0 %v726_v48, %s2563_s11 }
 0x134   : > { %v2906_v51 = vpop.permute.xlu1 %394 }
 0x136   : > { %736 = vrot.lane.b32.xlu0 %v728_v52, %s2563_s11 }
 0x139   : > { %v2911_v55 = vpop.permute.xlu1 %419 }
 0x13a   : > { %756 = vrot.lane.b32.xlu0 %v750_v53, %s2563_s11 }
 0x13e   : > { %v2915_v57 = vpop.permute.xlu1 %443  ;;  %760 = vrot.lane.b32.xlu0 %v752_v56, %s2563_s11 }
 0x143   : > { %v2918_v59 = vpop.permute.xlu1 %467 }
 0x148   : > { %v2920_v60 = vpop.permute.xlu1 %491 }
 0x14d   : > { %v2922_v61 = vpop.permute.xlu1 %516 }
 0x152   : > { %v2924_v63 = vpop.permute.xlu1 %540 }
 0x157   : > { %v2926_v21 = vpop.permute.xlu1 %564 }
 0x15c   : > { %v2928_v23 = vpop.permute.xlu1 %588 }
 0x161   : > { %v2930_v24 = vpop.permute.xlu1 %613 }
 0x166   : > { %v2932_v32 = vpop.permute.xlu1 %637 }
 0x16b   : > { %v2934_v31 = vpop.permute.xlu1 %661 }
 0x170   : > { %v2936_v33 = vpop.permute.xlu1 %685 }
 0x171   : > { %4194 = vst [vmem:[#allocation13_spill] sm:$0xff] %v2936_v33 }
 0x175   : > { %v2938_v34 = vpop.permute.xlu1 %710 }
 0x176   : > { %4195 = vst [vmem:[#allocation14_spill] sm:$0xff] %v2938_v34 }
 0x17a   : > { %v2940_v37 = vpop.permute.xlu1 %734 }
 0x17b   : > { %4196 = vst [vmem:[#allocation15_spill] sm:$0xff] %v2940_v37 }
 0x17f   : > { %v2942_v41 = vpop.permute.xlu1 %758 }
 0x180   : > { %4197 = vst [vmem:[#allocation16_spill] sm:$0xff] %v2942_v41 }
 0x18c   : > { %v772_v40 = vpop.permute.xlu1 %771 }
 0x18d   : > { %v775_v43 = vmul.f32 %v772_v40, %v2774_v28  ;;  %v774_v45 = vmul.f32 %v772_v40, %v2777_v29  ;;  %v776_v46 = vmul.f32 %v772_v40, %v2785_v35 }
 0x18f   : > { %782 = vrot.lane.b32.xlu1 %v775_v43, %s2565_s13  ;;  %780 = vrot.lane.b32.xlu0 %v774_v45, %s2565_s13  ;;  %v4118_v43 = vmov 23  }
 0x193   : > { %796 = vperm.xlu1 %2389, %v2725_v2   ;;  %784 = vrot.lane.b32.xlu0 %v776_v46, %s2565_s13 }
 0x197   : > { %2390 = vset.pattern.permute.xlu1 %v4111_v47 }
 0x201   : > { %v2952_v48 = vpop.permute.xlu1 %782 }
 0x202   : > { %4198 = vst [vmem:[#allocation17_spill] sm:$0xff] %v2952_v48 }
 0x20e   : > { %v797_v52 = vpop.permute.xlu1 %796 }
 0x20f   : > { %v800_v53 = vmul.f32 %v797_v52, %v2788_v36  ;;  %v799_v56 = vmul.f32 %v797_v52, %v2794_v39  ;;  %v801_v40 = vmul.f32 %v797_v52, %v2805_v44 }
 0x211   : > { %807 = vrot.lane.b32.xlu1 %v800_v53, %s2565_s13  ;;  %805 = vrot.lane.b32.xlu0 %v799_v56, %s2565_s13  ;;  %v4115_v53 = vmov 24  }
 0x215   : > { %820 = vperm.xlu1 %2390, %v2725_v2   ;;  %809 = vrot.lane.b32.xlu0 %v801_v40, %s2565_s13 }
 0x219   : > { %2391 = vset.pattern.permute.xlu1 %v4118_v43 }
 0x283   : > { %v2962_v45 = vpop.permute.xlu1 %807 }
 0x284   : > { %4199 = vst [vmem:[#allocation18_spill] sm:$0xff] %v2962_v45 }
 0x290   : > { %v821_v46 = vpop.permute.xlu1 %820 }
 0x291   : > { %v824_v47 = vmul.f32 %v821_v46, %v2801_v42  ;;  %v823_v38 = vmul.f32 %v821_v46, %v2816_v50  ;;  %v825_v52 = vmul.f32 %v821_v46, %v2823_v54 }
 0x293   : > { %831 = vrot.lane.b32.xlu1 %v824_v47, %s2565_s13  ;;  %829 = vrot.lane.b32.xlu0 %v823_v38, %s2565_s13  ;;  %v4117_v47 = vmov 25  }
 0x297   : > { %844 = vperm.xlu1 %2391, %v2725_v2   ;;  %833 = vrot.lane.b32.xlu0 %v825_v52, %s2565_s13 }
 0x29b   : > { %2392 = vset.pattern.permute.xlu1 %v4115_v53 }
 0x305   : > { %v2972_v56 = vpop.permute.xlu1 %831 }
 0x306   : > { %4200 = vst [vmem:[#allocation19_spill] sm:$0xff] %v2972_v56 }
 0x312   : > { %v845_v40 = vpop.permute.xlu1 %844 }
 0x313   : > { %v848_v19 = vmul.f32 %v845_v40, %v2813_v49  ;;  %v847_v18 = vmul.f32 %v845_v40, %v2829_v58  ;;  %v849_v38 = vmul.f32 %v845_v40, %v2836_v62 }
 0x315   : > { %855 = vrot.lane.b32.xlu1 %v848_v19, %s2565_s13  ;;  %853 = vrot.lane.b32.xlu0 %v847_v18, %s2565_s13  ;;  %v4119_v19 = vmov 26  }
 0x319   : > { %868 = vperm.xlu1 %2392, %v2725_v2   ;;  %857 = vrot.lane.b32.xlu0 %v849_v38, %s2565_s13 }
 0x31d   : > { %2393 = vset.pattern.permute.xlu1 %v4117_v47 }
 0x387   : > { %v2982_v46 = vpop.permute.xlu1 %855 }
 0x388   : > { %4201 = vst [vmem:[#allocation20_spill] sm:$0xff] %v2982_v46 }
 0x394   : > { %v869_v52 = vpop.permute.xlu1 %868 }
 0x395   : > { %v872_v53 = vmul.f32 %v869_v52, %v2774_v28  ;;  %v871_v16 = vmul.f32 %v869_v52, %v2777_v29  ;;  %v873_v18 = vmul.f32 %v869_v52, %v2785_v35 }
 0x397   : > { %879 = vrot.lane.b32.xlu1 %v872_v53, %s2570_s12  ;;  %877 = vrot.lane.b32.xlu0 %v871_v16, %s2570_s12  ;;  %v4121_v53 = vmov 27  }
 0x39b   : > { %893 = vperm.xlu1 %2393, %v2725_v2   ;;  %881 = vrot.lane.b32.xlu0 %v873_v18, %s2570_s12 }
 0x39f   : > { %2394 = vset.pattern.permute.xlu1 %v4119_v19 }
 0x409   : > { %v2992_v40 = vpop.permute.xlu1 %879 }
 0x40a   : > { %4202 = vst [vmem:[#allocation21_spill] sm:$0xff] %v2992_v40 }
 0x416   : > { %v894_v38 = vpop.permute.xlu1 %893 }
 0x417   : > { %v897_v47 = vmul.f32 %v894_v38, %v2788_v36  ;;  %v896_v43 = vmul.f32 %v894_v38, %v2794_v39  ;;  %v898_v16 = vmul.f32 %v894_v38, %v2805_v44 }
 0x419   : > { %904 = vrot.lane.b32.xlu1 %v897_v47, %s2570_s12  ;;  %902 = vrot.lane.b32.xlu0 %v896_v43, %s2570_s12  ;;  %v4123_v47 = vmov 28  }
 0x41d   : > { %917 = vperm.xlu1 %2394, %v2725_v2   ;;  %906 = vrot.lane.b32.xlu0 %v898_v16, %s2570_s12 }
 0x421   : > { %2395 = vset.pattern.permute.xlu1 %v4121_v53 }
 0x48b   : > { %v3002_v52 = vpop.permute.xlu1 %904 }
 0x48c   : > { %4203 = vst [vmem:[#allocation22_spill] sm:$0xff] %v3002_v52 }
 0x498   : > { %v918_v18 = vpop.permute.xlu1 %917 }
 0x499   : > { %v921_v19 = vmul.f32 %v918_v18, %v2801_v42  ;;  %v920_v20 = vmul.f32 %v918_v18, %v2816_v50  ;;  %v922_v43 = vmul.f32 %v918_v18, %v2823_v54 }
 0x49b   : > { %928 = vrot.lane.b32.xlu1 %v921_v19, %s2570_s12  ;;  %926 = vrot.lane.b32.xlu0 %v920_v20, %s2570_s12  ;;  %v4125_v19 = vmov 29  }
 0x49f   : > { %941 = vperm.xlu1 %2395, %v2725_v2   ;;  %930 = vrot.lane.b32.xlu0 %v922_v43, %s2570_s12 }
 0x4a3   : > { %2396 = vset.pattern.permute.xlu1 %v4123_v47  ;;  %v3024_v47 = vpop.permute.xlu0 %273 }
 0x50d   : > { %v3012_v38 = vpop.permute.xlu1 %928 }
 0x50e   : > { %4204 = vst [vmem:[#allocation23_spill] sm:$0xff] %v3012_v38 }
 0x51a   : > { %v942_v16 = vpop.permute.xlu1 %941 }
 0x51b   : > { %v945_v53 = vmul.f32 %v942_v16, %v2813_v49  ;;  %v944_v15 = vmul.f32 %v942_v16, %v2829_v58  ;;  %v946_v20 = vmul.f32 %v942_v16, %v2836_v62  ;;  %v3031_v16 = vpop.permute.xlu0 %392 }
 0x51d   : > { %952 = vrot.lane.b32.xlu1 %v945_v53, %s2570_s12  ;;  %950 = vrot.lane.b32.xlu0 %v944_v15, %s2570_s12 }
 0x521   : > { %965 = vperm.xlu1 %2396, %v2725_v2   ;;  %954 = vrot.lane.b32.xlu0 %v946_v20, %s2570_s12  ;;  %v4131_v20 = vmov 30  }
 0x525   : > { %2397 = vset.pattern.permute.xlu1 %v4125_v19  ;;  %v3036_v19 = vpop.permute.xlu0 %396 }
 0x529   : > { %v3038_v12 = vpop.permute.xlu0 %417 }
 0x52d   : > { %v3040_v11 = vpop.permute.xlu0 %421 }
 0x58f   : > { %v3022_v18 = vpop.permute.xlu1 %952 }
 0x590   : > { %4205 = vst [vmem:[#allocation24_spill] sm:$0xff] %v3022_v18 }
 0x59c   : > { %v966_v43 = vpop.permute.xlu1 %965 }
 0x59d   : > { %v968_v13 = vmul.f32 %v966_v43, %v2777_v29  ;;  %v969_v53 = vmul.f32 %v966_v43, %v2774_v28  ;;  %v970_v15 = vmul.f32 %v966_v43, %v2785_v35 }
 0x59f   : > { %976 = vrot.lane.b32.xlu1 %v969_v53, %s2575_s10  ;;  %974 = vrot.lane.b32.xlu0 %v968_v13, %s2575_s10  ;;  %v3042_v53 = vpop.permute.xlu0 %441 }
 0x5a3   : > { %990 = vperm.xlu1 %2397, %v2725_v2   ;;  %978 = vrot.lane.b32.xlu0 %v970_v15, %s2575_s10  ;;  %v3044_v13 = vpop.permute.xlu0 %445 }
 0x5a7   : > { %2398 = vset.pattern.permute.xlu1 %v4131_v20  ;;  %v3048_v10 = vpop.permute.xlu0 %465 }
 0x5ab   : > { %v3055_v7 = vpop.permute.xlu0 %469 }
 0x5af   : > { %v3061_v4 = vpop.permute.xlu0 %489 }
 0x5b3   : > { %v3063_v14 = vpop.permute.xlu0 %493 }
 0x611   : > { %v3046_v43 = vpop.permute.xlu1 %976 }
 0x612   : > { %4206 = vst [vmem:[#allocation25_spill] sm:$0xff] %v3046_v43 }
 0x61e   : > { %v991_v9 = vpop.permute.xlu1 %990 }
 0x61f   : > { %v993_v15 = vmul.f32 %v991_v9, %v2794_v39  ;;  %v994_v8 = vmul.f32 %v991_v9, %v2788_v36  ;;  %v995_v20 = vmul.f32 %v991_v9, %v2805_v44 }
 0x621   : > { %1001 = vrot.lane.b32.xlu1 %v994_v8, %s2575_s10  ;;  %999 = vrot.lane.b32.xlu0 %v993_v15, %s2575_s10  ;;  %v3065_v8 = vpop.permute.xlu0 %514 }
 0x625   : > { %1014 = vperm.xlu1 %2398, %v2725_v2   ;;  %1003 = vrot.lane.b32.xlu0 %v995_v20, %s2575_s10  ;;  %v3067_v15 = vpop.permute.xlu0 %518 }
 0x629   : > { %2399 = vset.pattern.permute.xlu1 %v4141_v17  ;;  %v3069_v9 = vpop.permute.xlu0 %538 }
 0x62d   : > { %v3071_v0 = vpop.permute.xlu0 %542 }
 0x631   : > { %v3073_v5 = vpop.permute.xlu0 %562 }
 0x635   : > { %v3075_v20 = vpop.permute.xlu0 %566 }
 0x639   : > { %v3077_v6 = vpop.permute.xlu0 %586 }
 0x63d   : > { %v3079_v3 = vpop.permute.xlu0 %590 }
 0x641   : > { %v3081_v17 = vpop.permute.xlu0 %611 }
 0x645   : > { %v3083_v1 = vpop.permute.xlu0 %615 }
 0x649   : > { %v3085_v26 = vpop.permute.xlu0 %635 }
 0x64d   : > { %v3087_v25 = vpop.permute.xlu0 %639 }
 0x651   : > { %v3089_v30 = vpop.permute.xlu0 %659 }
 0x655   : > { %v3091_v43 = vpop.permute.xlu0 %663 }
 0x659   : > { %v3093_v18 = vpop.permute.xlu0 %683 }
 0x65a   : > { %4207 = vst [vmem:[#allocation26_spill] sm:$0xff] %v3093_v18 }
 0x65d   : > { %v3095_v38 = vpop.permute.xlu0 %687 }
 0x661   : > { %v3097_v52 = vpop.permute.xlu0 %708 }
 0x662   : > { %4208 = vst [vmem:[#allocation27_spill] sm:$0xff] %v3097_v52 }
 0x665   : > { %v3099_v40 = vpop.permute.xlu0 %712 }
 0x666   : > { %4209 = vst [vmem:[#allocation28_spill] sm:$0xff] %v3099_v40 }
 0x669   : > { %v3105_v41 = vpop.permute.xlu0 %732 }
 0x66a   : > { %4211 = vst [vmem:[#allocation30_spill] sm:$0xff] %v3105_v41 }
 0x66d   : > { %v3112_v52 = vpop.permute.xlu0 %736 }
 0x66e   : > { %4212 = vst [vmem:[#allocation31_spill] sm:$0xff] %v3112_v52 }
 0x671   : > { %v3117_v41 = vpop.permute.xlu0 %756 }
 0x672   : > { %4213 = vst [vmem:[#allocation32_spill] sm:$0xff] %v3117_v41 }
 0x693   : > { %v3101_v46 = vpop.permute.xlu1 %1001 }
 0x694   : > { %4210 = vst [vmem:[#allocation29_spill] sm:$0xff] %v3101_v46  ;;  %v4162_v46 = vmov 33  }
 0x6a0   : > { %v1015_v56 = vpop.permute.xlu1 %1014 }
 0x6a1   : > { %v1017_v45 = vmul.f32 %v1015_v56, %v2816_v50  ;;  %v1018_v48 = vmul.f32 %v1015_v56, %v2801_v42  ;;  %v1019_v37 = vmul.f32 %v1015_v56, %v2823_v54  ;;  %v4169_v56 = vmov 1  }
 0x6a3   : > { %1025 = vrot.lane.b32.xlu1 %v1018_v48, %s2575_s10  ;;  %1023 = vrot.lane.b32.xlu0 %v1017_v45, %s2575_s10  ;;  %v4164_v48 = vmov 35   ;;  %v4166_v45 = vmov 34  }
 0x6a7   : > { %1038 = vperm.xlu1 %2399, %v2725_v2   ;;  %1027 = vrot.lane.b32.xlu0 %v1019_v37, %s2575_s10  ;;  %v3123_v37 = vpop.permute.xlu0 %760 }
 0x6a8   : > { %4214 = vst [vmem:[#allocation33_spill] sm:$0xff] %v3123_v37 }
 0x6ab   : > { %1062 = vperm.xlu0 %2400, %v2725_v2   ;;  %2401 = vset.pattern.permute.xlu1 %v4162_v46  ;;  %v4215_v46 = vmov 0   ;;  %v3128_v41 = vpop.permute.xlu0 %780 }
 0x6ac   : > { %1087 = vperm.xlu1 %2401, %v2725_v2   ;;  %4216 = vst [vmem:[#allocation34_spill] sm:$0xff] %v3128_v41 }
 0x6af   : > { %2403 = vset.pattern.permute.xlu0 %v4164_v48  ;;  %v3130_v34 = vpop.permute.xlu0 %784 }
 0x6b0   : > { %1135 = vperm.xlu0 %2403, %v2725_v2   ;;  %2402 = vset.pattern.permute.xlu1 %v4166_v45  ;;  %4217 = vst [vmem:[#allocation35_spill] sm:$0xff] %v3130_v34 }
 0x6b1   : > { %1111 = vperm.xlu1 %2402, %v2725_v2  }
 0x6b3   : > { %v3132_v48 = vpop.permute.xlu0 %805 }
 0x6b4   : > { %2404 = vset.pattern.permute.xlu0 %v4169_v56  ;;  %4218 = vst [vmem:[#allocation36_spill] sm:$0xff] %v3132_v48 }
 0x6b5   : > { %301 = vperm.xlu0 %2404, %v2725_v2   ;;  %2405 = vset.pattern.permute.xlu1 %v4215_v46 }
 0x6b7   : > { %v3134_v52 = vpop.permute.xlu0 %809 }
 0x6b8   : > { %4219 = vst [vmem:[#allocation37_spill] sm:$0xff] %v3134_v52 }
 0x6bb   : > { %v3136_v45 = vpop.permute.xlu0 %829 }
 0x6bc   : > { %4220 = vst [vmem:[#allocation38_spill] sm:$0xff] %v3136_v45 }
 0x6bf   : > { %v3138_v18 = vpop.permute.xlu0 %833 }
 0x6c0   : > { %4221 = vst [vmem:[#allocation39_spill] sm:$0xff] %v3138_v18 }
 0x6c3   : > { %v3140_v37 = vpop.permute.xlu0 %853 }
 0x6c4   : > { %4222 = vst [vmem:[#allocation40_spill] sm:$0xff] %v3140_v37 }
 0x6c7   : > { %v3142_v33 = vpop.permute.xlu0 %857 }
 0x6c8   : > { %4223 = vst [vmem:[#allocation41_spill] sm:$0xff] %v3142_v33 }
 0x6cb   : > { %v3144_v56 = vpop.permute.xlu0 %877 }
 0x6cc   : > { %4224 = vst [vmem:[#allocation42_spill] sm:$0xff] %v3144_v56 }
 0x6cf   : > { %v3146_v2 = vpop.permute.xlu0 %881 }
 0x6d0   : > { %4225 = vst [vmem:[#allocation43_spill] sm:$0xff] %v3146_v2 }
 0x6d3   : > { %v3148_v46 = vpop.permute.xlu0 %902 }
 0x6d4   : > { %4226 = vst [vmem:[#allocation44_spill] sm:$0xff] %v3148_v46 }
 0x6d7   : > { %v3150_v41 = vpop.permute.xlu0 %906 }
 0x6d8   : > { %4227 = vst [vmem:[#allocation45_spill] sm:$0xff] %v3150_v41 }
 0x6db   : > { %v3152_v34 = vpop.permute.xlu0 %926 }
 0x6dc   : > { %4228 = vst [vmem:[#allocation46_spill] sm:$0xff] %v3152_v34 }
 0x6df   : > { %v3154_v48 = vpop.permute.xlu0 %930 }
 0x6e0   : > { %4229 = vst [vmem:[#allocation47_spill] sm:$0xff] %v3154_v48 }
 0x6e3   : > { %v3156_v52 = vpop.permute.xlu0 %950 }
 0x6e4   : > { %4230 = vst [vmem:[#allocation48_spill] sm:$0xff] %v3156_v52 }
 0x6e7   : > { %v3158_v45 = vpop.permute.xlu0 %954 }
 0x6e8   : > { %4231 = vst [vmem:[#allocation49_spill] sm:$0xff] %v3158_v45 }
 0x6eb   : > { %v3160_v18 = vpop.permute.xlu0 %974 }
 0x6ec   : > { %4232 = vst [vmem:[#allocation50_spill] sm:$0xff] %v3160_v18 }
 0x6ef   : > { %v3162_v37 = vpop.permute.xlu0 %978 }
 0x6f0   : > { %4233 = vst [vmem:[#allocation51_spill] sm:$0xff] %v3162_v37 }
 0x6f3   : > { %v3164_v33 = vpop.permute.xlu0 %999 }
 0x6f4   : > { %4234 = vst [vmem:[#allocation52_spill] sm:$0xff] %v3164_v33 }
 0x6f7   : > { %v3166_v56 = vpop.permute.xlu0 %1003 }
 0x6f8   : > { %4235 = vst [vmem:[#allocation53_spill] sm:$0xff] %v3166_v56 }
 0x715   : > { %v3168_v2 = vpop.permute.xlu0 %1023  ;;  %v3170_v46 = vpop.permute.xlu1 %1025 }
 0x716   : > { %4236 = vst [vmem:[#allocation54_spill] sm:$0xff] %v3168_v2  ;;  %4237 = vst [vmem:[#allocation55_spill] sm:$0xff] %v3170_v46 }
 0x719   : > { %v3172_v41 = vpop.permute.xlu0 %1027 }
 0x71a   : > { %4238 = vst [vmem:[#allocation56_spill] sm:$0xff] %v3172_v41 }
 0x722   : > { %v1039_v34 = vpop.permute.xlu1 %1038 }
 0x723   : > { %v1041_v48 = vmul.f32 %v1039_v34, %v2829_v58  ;;  %v1043_v52 = vmul.f32 %v1039_v34, %v2836_v62  ;;  %v1042_v33 = vmul.f32 %v1039_v34, %v2813_v49 }
 0x725   : > { %1047 = vrot.lane.b32.xlu1 %v1041_v48, %s2575_s10  ;;  %1051 = vrot.lane.b32.xlu0 %v1043_v52, %s2575_s10 }
 0x726   : > { %v1063_v18 = vpop.permute.xlu0 %1062 }
 0x727   : > { %v1066_v56 = vmul.f32 %v1063_v18, %v2774_v28  ;;  %v1088_v37 = vpop.permute.xlu1 %1087  ;;  %v1065_v2 = vmul.f32 %v1063_v18, %v2777_v29  ;;  %v1067_v34 = vmul.f32 %v1063_v18, %v2785_v35 }
 0x728   : > { %v1090_v46 = vmul.f32 %v1088_v37, %v2794_v39  ;;  %v1092_v41 = vmul.f32 %v1088_v37, %v2805_v44  ;;  %v1091_v45 = vmul.f32 %v1088_v37, %v2788_v36 }
 0x729   : > { %1049 = vrot.lane.b32.xlu1 %v1042_v33, %s2575_s10  ;;  %1073 = vrot.lane.b32.xlu0 %v1066_v56, %s2583_s14 }
 0x72b   : > { %v1136_v48 = vpop.permute.xlu0 %1135 }
 0x72c   : > { %v1112_v52 = vpop.permute.xlu1 %1111  ;;  %v1138_v56 = vmul.f32 %v1136_v48, %v2829_v58  ;;  %v1140_v18 = vmul.f32 %v1136_v48, %v2836_v62 }
 0x72d   : > { %1096 = vrot.lane.b32.xlu0 %v1090_v46, %s2583_s14  ;;  %1071 = vrot.lane.b32.xlu1 %v1065_v2, %s2583_s14  ;;  %v1115_v33 = vmul.f32 %v1112_v52, %v2801_v42  ;;  %v1114_v40 = vmul.f32 %v1112_v52, %v2816_v50  ;;  %v1116_v37 = vmul.f32 %v1112_v52, %v2823_v54 }
 0x72e   : > { %v292_v52 = vmul.f32 %v2777_v29, %v3024_v47  ;;  %v349_v29 = vmul.f32 %v2801_v42, %v2764_v22 }
 0x730   : > { %v302_v46 = vpop.permute.xlu0 %301 }
 0x731   : > { %1100 = vrot.lane.b32.xlu0 %v1092_v41, %s2583_s14  ;;  %1075 = vrot.lane.b32.xlu1 %v1067_v34, %s2583_s14  ;;  %v322_v2 = vmul.f32 %v2805_v44, %v302_v46  ;;  %v294_v41 = vmul.f32 %v2785_v35, %v3024_v47  ;;  %v1139_v34 = vmul.f32 %v1136_v48, %v2813_v49  ;;  %v1158_v44 = vld [vmem:[%s4104_s2] sm:$0xf] }
 0x732   : > { %v321_v35 = vmul.f32 %v2788_v36, %v302_v46 }
 0x735   : > { %1122 = vrot.lane.b32.xlu0 %v1115_v33, %s2583_s14  ;;  %1098 = vrot.lane.b32.xlu1 %v1091_v45, %s2583_s14  ;;  %v325_v33 = vadd.f32 %v322_v2, %v294_v41  ;;  %v320_v45 = vmul.f32 %v2794_v39, %v302_v46  ;;  %v378_v2 = vmul.f32 %v2836_v62, %v2771_v27  ;;  %v1174_v46 = vld [vmem:[%s2714_s29] sm:$0xff] }
 0x736   : > { %v348_v39 = vmul.f32 %v2816_v50, %v2764_v22 }
 0x739   : > { %1120 = vrot.lane.b32.xlu1 %v1114_v40, %s2583_s14  ;;  %1144 = vrot.lane.b32.xlu0 %v1138_v56, %s2583_s14  ;;  %v350_v40 = vmul.f32 %v2823_v54, %v2764_v22  ;;  %v293_v56 = vmul.f32 %v2774_v28, %v3024_v47  ;;  %v323_v54 = vadd.f32 %v320_v45, %v292_v52  ;;  %v3230_v28 = vld [vmem:[%s4105_s3] sm:$0xf] }
 0x73a   : > { %v377_v22 = vmul.f32 %v2813_v49, %v2771_v27  ;;  %v400_v45 = vsel %vm398_vm0, %v2906_v51, %v3036_v19  ;;  %v423_v52 = vsel %vm398_vm0, %v3038_v12, %v2911_v55  ;;  %v448_v12 = vsel %vm398_vm0, %v2915_v57, %v3044_v13 }
 0x73b   : > { %v353_v48 = vadd.f32 %v350_v40, %v325_v33  ;;  %v324_v41 = vadd.f32 %v321_v35, %v293_v56  ;;  %v351_v47 = vadd.f32 %v348_v39, %v323_v54  ;;  %v4239_v40 = vmov 3  }
 0x73c   : > { %v471_v39 = vsel %vm398_vm0, %v3048_v10, %v2918_v59  ;;  %v497_v10 = vsel %vm495_vm1, %v2920_v60, %v3063_v14 }
 0x73d   : > { %1124 = vrot.lane.b32.xlu1 %v1116_v37, %s2583_s14  ;;  %1148 = vrot.lane.b32.xlu0 %v1140_v18, %s2583_s14  ;;  %v1175_v18 = vld [vmem:[%s2714_s29 + $0x8] sm:$0xf]  ;;  %v381_v36 = vadd.f32 %v378_v2, %v353_v48  ;;  %v352_v62 = vadd.f32 %v349_v29, %v324_v41  ;;  %v376_v37 = vmul.f32 %v2829_v58, %v2771_v27  ;;  %v4240_v48 = vmov 5   ;;  %s2479_s29 = scalar_lea.vmem %s2478_s16, 384 }
 0x73e   : > { %v399_v58 = vsel %vm398_vm0, %v3031_v16, %v2906_v51  ;;  %v424_v16 = vsel %vm398_vm0, %v2911_v55, %v3040_v11  ;;  %v447_v2 = vsel %vm398_vm0, %v3042_v53, %v2915_v57  ;;  %v472_v53 = vsel %vm398_vm0, %v2918_v59, %v3055_v7 }
 0x73f   : > { %v406_v50 = vadd.f32 %v3036_v19, %v381_v36  ;;  %v379_v42 = vadd.f32 %v376_v37, %v351_v47  ;;  %v380_v33 = vadd.f32 %v377_v22, %v352_v62  ;;  %v4243_v36 = vmov 4  }
 0x740   : > { %v4244_v29 = vmov 17   ;;  %v496_v47 = vsel %vm495_vm1, %v3061_v4, %v2920_v60  ;;  %v4245_v37 = vmov 6   ;;  %v521_v4 = vsel %vm495_vm1, %v2922_v61, %v3067_v15 }
 0x741   : > { %1146 = vrot.lane.b32.xlu1 %v1139_v34, %s2583_s14  ;;  %1168 = vperm.xlu0 %2404, %v1158_v44   ;;  %v1178_v34 = vcombine.high %v1174_v46, %v1174_v46  ;;  %v404_v27 = vadd.f32 %v399_v58, %v379_v42  ;;  %v405_v49 = vadd.f32 %v400_v45, %v380_v33  ;;  %v4246_v42 = vmov 7  }
 0x742   : > { %v544_v60 = vsel %vm495_vm1, %v3069_v9, %v2924_v63  ;;  %v569_v9 = vsel %vm495_vm1, %v2926_v21, %v3075_v20 }
 0x743   : > { %v428_v56 = vadd.f32 %v423_v52, %v404_v27  ;;  %v429_v51 = vadd.f32 %v424_v16, %v405_v49  ;;  %v4248_v27 = vmov 9  }
 0x745   : > { %1161 = vperm.xlu1 %2405, %v1158_v44   ;;  %1183 = vrot.lane.b32.xlu0 %v1175_v18, %s2563_s11  ;;  %v430_v44 = vadd.f32 %v3040_v11, %v406_v50  ;;  %v4241_v18 = vmov 2   ;;  %v452_v54 = vadd.f32 %v447_v2, %v428_v56  ;;  %v4242_v11 = vmov 14  }
 0x746   : > { %v453_v55 = vadd.f32 %v448_v12, %v429_v51  ;;  %v520_v50 = vsel %vm495_vm1, %v3065_v8, %v2922_v61  ;;  %v545_v8 = vsel %vm495_vm1, %v2924_v63, %v3071_v0  ;;  %v593_v63 = vsel %vm592_vm2, %v3077_v6, %v2928_v23 }
 0x747   : > { %v454_v35 = vadd.f32 %v3044_v13, %v430_v44  ;;  %v476_v57 = vadd.f32 %v471_v39, %v452_v54  ;;  %v618_v6 = vsel %vm592_vm2, %v2930_v24, %v3083_v1  ;;  %v4252_v12 = vmov 12   ;;  %v4253_v54 = vld [vmem:[#allocation13_spill] sm:$0xff] }
 0x748   : > { %v477_v13 = vadd.f32 %v472_v53, %v453_v55  ;;  %v4257_v53 = vld [vmem:[#allocation27_spill] sm:$0xff] }
 0x749   : > { %1179 = vrot.lane.b32.xlu1 %v1174_v46, %s2563_s11  ;;  %1284 = vperm.xlu0 %2404, %v3230_v28   ;;  %v478_v19 = vadd.f32 %v3055_v7, %v454_v35  ;;  %v501_v62 = vadd.f32 %v496_v47, %v476_v57 }
 0x74a   : > { %v502_v7 = vadd.f32 %v497_v10, %v477_v13  ;;  %v4258_v13 = vmov 13   ;;  %v4259_v10 = vld [vmem:[#allocation33_spill] sm:$0xff] }
 0x74b   : > { %v503_v41 = vadd.f32 %v3063_v14, %v478_v19  ;;  %v4250_v19 = vmov 11  }
 0x74c   : > { %v526_v22 = vadd.f32 %v521_v4, %v502_v7  ;;  %v4262_v4 = vmov 15  }
 0x74d   : > { %1181 = vrot.lane.b32.xlu1 %v1178_v34, %s2563_s11  ;;  %2407 = vset.pattern.permute.xlu0 %v4239_v40  ;;  %v527_v46 = vadd.f32 %v3067_v15, %v503_v41  ;;  %v525_v34 = vadd.f32 %v520_v50, %v501_v62  ;;  %v4247_v15 = vmov 8   ;;  %v568_v40 = vsel %vm495_vm1, %v3073_v5, %v2926_v21  ;;  %v4260_v62 = vld [vmem:[#allocation15_spill] sm:$0xff] }
 0x74e   : > { %1340 = vperm.xlu0 %2407, %v3230_v28   ;;  %v550_v44 = vadd.f32 %v545_v8, %v526_v22  ;;  %v594_v5 = vsel %vm592_vm2, %v2928_v23, %v3079_v3  ;;  %v641_v23 = vsel %vm592_vm2, %v3085_v26, %v2932_v32  ;;  %v666_v26 = vsel %vm592_vm2, %v2934_v31, %v3091_v43  ;;  %v4263_v22 = vld [vmem:[#allocation35_spill] sm:$0xff] }
 0x74f   : > { %v551_v59 = vadd.f32 %v3071_v0, %v527_v46  ;;  %v549_v33 = vadd.f32 %v544_v60, %v525_v34  ;;  %v4265_v60 = vld [vmem:[#allocation32_spill] sm:$0xff] }
 0x750   : > { %v574_v45 = vadd.f32 %v569_v9, %v550_v44  ;;  %v4267_v9 = vld [vmem:[#allocation17_spill] sm:$0xff] }
 0x751   : > { %1256 = vperm.xlu1 %2405, %v3230_v28   ;;  %v575_v14 = vadd.f32 %v3075_v20, %v551_v59  ;;  %v573_v58 = vadd.f32 %v568_v40, %v549_v33  ;;  %v617_v20 = vsel %vm592_vm2, %v3081_v17, %v2930_v24  ;;  %v642_v17 = vsel %vm592_vm2, %v2932_v32, %v3087_v25 }
 0x752   : > { %2409 = vset.pattern.permute.xlu0 %v4240_v48  ;;  %v599_v35 = vadd.f32 %v594_v5, %v574_v45  ;;  %v4249_v48 = vmov 10   ;;  %v665_v24 = vsel %vm592_vm2, %v3089_v30, %v2934_v31  ;;  %v691_v30 = vsel %vm689_vm3, %v4253_v54, %v3095_v38  ;;  %v4255_v31 = vld [vmem:[#allocation31_spill] sm:$0xff] }
 0x753   : > { %1390 = vperm.xlu0 %2409, %v3230_v28   ;;  %v600_v61 = vadd.f32 %v3079_v3, %v575_v14  ;;  %v598_v49 = vadd.f32 %v593_v63, %v573_v58  ;;  %v739_v59 = vsel %vm689_vm3, %v4260_v62, %v4255_v31  ;;  %v4264_v14 = vld [vmem:[#allocation16_spill] sm:$0xff]  ;;  %v4268_v58 = vld [vmem:[#allocation34_spill] sm:$0xff]  ;;  %v4269_v5 = vld [vmem:[#allocation39_spill] sm:$0xff] }
 0x754   : > { %v623_v16 = vadd.f32 %v618_v6, %v599_v35  ;;  %v762_v8 = vsel %vm689_vm3, %v4265_v60, %v4264_v14  ;;  %v763_v33 = vsel %vm689_vm3, %v4264_v14, %v4259_v10  ;;  %v787_v45 = vsel %vm786_vm4, %v4268_v58, %v4267_v9  ;;  %v4270_v35 = vld [vmem:[#allocation18_spill] sm:$0xff]  ;;  %v4285_v14 = vld [vmem:[#allocation23_spill] sm:$0xff]  ;;  %v4288_v58 = vld [vmem:[#allocation24_spill] sm:$0xff] }
 0x755   : > { %2406 = vset.pattern.permute.xlu1 %v4241_v18  ;;  %v624_v0 = vadd.f32 %v3083_v1, %v600_v61  ;;  %v622_v52 = vadd.f32 %v617_v20, %v598_v49  ;;  %v4286_v60 = vld [vmem:[#allocation46_spill] sm:$0xff] }
 0x756   : > { %1312 = vperm.xlu1 %2406, %v3230_v28   ;;  %v647_v51 = vadd.f32 %v642_v17, %v623_v16  ;;  %v4272_v16 = vld [vmem:[#allocation41_spill] sm:$0xff]  ;;  %v4274_v17 = vld [vmem:[#allocation38_spill] sm:$0xff] }
 0x757   : > { %2418 = vset.pattern.permute.xlu0 %v4242_v11  ;;  %v648_v21 = vadd.f32 %v3087_v25, %v624_v0  ;;  %v646_v56 = vadd.f32 %v641_v23, %v622_v52  ;;  %v4251_v25 = vld [vmem:[#allocation28_spill] sm:$0xff]  ;;  %v4254_v11 = vld [vmem:[#allocation26_spill] sm:$0xff]  ;;  %v788_v0 = vsel %vm786_vm4, %v4267_v9, %v4263_v22  ;;  %v4273_v23 = vld [vmem:[#allocation19_spill] sm:$0xff] }
 0x758   : > { %1606 = vperm.xlu0 %2418, %v3230_v28   ;;  %v671_v2 = vadd.f32 %v666_v26, %v647_v51  ;;  %v690_v55 = vsel %vm689_vm3, %v4254_v11, %v4253_v54  ;;  %v836_v51 = vsel %vm786_vm4, %v4273_v23, %v4269_v5 }
 0x759   : > { %v672_v3 = vadd.f32 %v3091_v43, %v648_v21  ;;  %v670_v18 = vadd.f32 %v665_v24, %v646_v56  ;;  %v4271_v21 = vld [vmem:[#allocation36_spill] sm:$0xff]  ;;  %v835_v56 = vsel %vm786_vm4, %v4274_v17, %v4273_v23 }
 0x75a   : > { %2408 = vset.pattern.permute.xlu1 %v4243_v36  ;;  %v696_v39 = vadd.f32 %v691_v30, %v671_v2  ;;  %v4256_v36 = vld [vmem:[#allocation14_spill] sm:$0xff]  ;;  %v811_v20 = vsel %vm786_vm4, %v4271_v21, %v4270_v35 }
 0x75b   : > { %1366 = vperm.xlu1 %2408, %v3230_v28   ;;  %v697_v1 = vadd.f32 %v3095_v38, %v672_v3  ;;  %v695_v41 = vadd.f32 %v690_v55, %v670_v18  ;;  %v714_v57 = vsel %vm689_vm3, %v4257_v53, %v4256_v36  ;;  %v4275_v18 = vld [vmem:[#allocation43_spill] sm:$0xff] }
 0x75c   : > { %2421 = vset.pattern.permute.xlu0 %v4244_v29  ;;  %v715_v29 = vsel %vm689_vm3, %v4256_v36, %v4251_v25  ;;  %v4280_v36 = vld [vmem:[#allocation42_spill] sm:$0xff] }
 0x75d   : > { %v721_v32 = vadd.f32 %v4251_v25, %v697_v1  ;;  %v719_v46 = vadd.f32 %v714_v57, %v695_v41  ;;  %v720_v47 = vadd.f32 %v715_v29, %v696_v39  ;;  %v4276_v25 = vld [vmem:[#allocation20_spill] sm:$0xff]  ;;  %v4278_v39 = vld [vmem:[#allocation45_spill] sm:$0xff] }
 0x75e   : > { %v860_v54 = vsel %vm786_vm4, %v4276_v25, %v4272_v16 }
 0x75f   : > { %2410 = vset.pattern.permute.xlu1 %v4245_v37  ;;  %v745_v43 = vadd.f32 %v4255_v31, %v721_v32  ;;  %v4261_v37 = vld [vmem:[#allocation30_spill] sm:$0xff]  ;;  %v744_v34 = vadd.f32 %v739_v59, %v720_v47  ;;  %v4277_v32 = vld [vmem:[#allocation40_spill] sm:$0xff]  ;;  %v4281_v47 = vld [vmem:[#allocation47_spill] sm:$0xff] }
 0x760   : > { %1414 = vperm.xlu1 %2410, %v3230_v28   ;;  %v738_v7 = vsel %vm689_vm3, %v4261_v37, %v4260_v62  ;;  %v4283_v62 = vld [vmem:[#allocation44_spill] sm:$0xff] }
 0x761   : > { %v769_v38 = vadd.f32 %v4259_v10, %v745_v43  ;;  %v743_v50 = vadd.f32 %v738_v7, %v719_v46  ;;  %v768_v61 = vadd.f32 %v763_v33, %v744_v34  ;;  %v4279_v43 = vld [vmem:[#allocation21_spill] sm:$0xff]  ;;  %v933_v33 = vsel %vm883_vm5, %v4285_v14, %v4281_v47 }
 0x762   : > { %v884_v53 = vsel %vm883_vm5, %v4280_v36, %v4279_v43  ;;  %v885_v57 = vsel %vm883_vm5, %v4279_v43, %v4275_v18 }
 0x763   : > { %v767_v44 = vadd.f32 %v762_v8, %v743_v50  ;;  %v932_v8 = vsel %vm883_vm5, %v4286_v60, %v4285_v14 }
 0x764   : > { %2411 = vset.pattern.permute.xlu1 %v4246_v42  ;;  %v794_v42 = vadd.f32 %v4263_v22, %v769_v38  ;;  %v4282_v38 = vld [vmem:[#allocation22_spill] sm:$0xff]  ;;  %v4284_v22 = vld [vmem:[#allocation49_spill] sm:$0xff] }
 0x765   : > { %1438 = vperm.xlu1 %2411, %v3230_v28   ;;  %v792_v63 = vadd.f32 %v787_v45, %v767_v44  ;;  %v908_v37 = vsel %vm883_vm5, %v4283_v62, %v4282_v38  ;;  %v909_v59 = vsel %vm883_vm5, %v4282_v38, %v4278_v39  ;;  %v4289_v45 = vld [vmem:[#allocation48_spill] sm:$0xff] }
 0x767   : > { %v816_v52 = vadd.f32 %v811_v20, %v792_v63  ;;  %v4291_v20 = vld [vmem:[#allocation25_spill] sm:$0xff] }
 0x769   : > { %2412 = vset.pattern.permute.xlu1 %v4247_v15  ;;  %v4266_v15 = vld [vmem:[#allocation37_spill] sm:$0xff]  ;;  %v840_v1 = vadd.f32 %v835_v56, %v816_v52  ;;  %v4293_v56 = vld [vmem:[#allocation56_spill] sm:$0xff] }
 0x76a   : > { %1462 = vperm.xlu1 %2412, %v3230_v28   ;;  %v818_v40 = vadd.f32 %v4266_v15, %v794_v42  ;;  %v812_v6 = vsel %vm786_vm4, %v4270_v35, %v4266_v15  ;;  %v4290_v35 = vld [vmem:[#allocation53_spill] sm:$0xff] }
 0x76c   : > { %v842_v49 = vadd.f32 %v4269_v5, %v818_v40  ;;  %v4287_v40 = vld [vmem:[#allocation51_spill] sm:$0xff] }
 0x76e   : > { %2413 = vset.pattern.permute.xlu1 %v4248_v27  ;;  %v793_v27 = vadd.f32 %v788_v0, %v768_v61  ;;  %v866_v3 = vadd.f32 %v4272_v16, %v842_v49  ;;  %v956_v0 = vsel %vm883_vm5, %v4289_v45, %v4288_v58  ;;  %v982_v16 = vsel %vm980_vm6, %v4291_v20, %v4287_v40 }
 0x76f   : > { %1486 = vperm.xlu1 %2413, %v3230_v28  }
 0x770   : > { %v891_v2 = vadd.f32 %v4275_v18, %v866_v3 }
 0x772   : > { %v915_v31 = vadd.f32 %v4278_v39, %v891_v2  ;;  %v4297_v39 = vld [vmem:[#allocation54_spill] sm:$0xff] }
 0x773   : > { %2414 = vset.pattern.permute.xlu1 %v4249_v48  ;;  %v817_v48 = vadd.f32 %v812_v6, %v793_v27  ;;  %v957_v27 = vsel %vm883_vm5, %v4288_v58, %v4284_v22  ;;  %v4292_v6 = vld [vmem:[#allocation50_spill] sm:$0xff] }
 0x774   : > { %1510 = vperm.xlu1 %2414, %v3230_v28   ;;  %v939_v10 = vadd.f32 %v4281_v47, %v915_v31  ;;  %v981_v52 = vsel %vm980_vm6, %v4292_v6, %v4291_v20 }
 0x775   : > { %v841_v26 = vadd.f32 %v836_v51, %v817_v48 }
 0x776   : > { %v963_v42 = vadd.f32 %v4284_v22, %v939_v10 }
 0x777   : > { %v865_v30 = vadd.f32 %v860_v54, %v841_v26  ;;  %v4295_v26 = vld [vmem:[#allocation52_spill] sm:$0xff] }
 0x778   : > { %2415 = vset.pattern.permute.xlu1 %v4250_v19  ;;  %v988_v9 = vadd.f32 %v4287_v40, %v963_v42 }
 0x779   : > { %1534 = vperm.xlu1 %2415, %v3230_v28   ;;  %v890_v46 = vadd.f32 %v885_v57, %v865_v30  ;;  %v4296_v30 = vld [vmem:[#allocation55_spill] sm:$0xff] }
 0x77a   : > { %v1012_v21 = vadd.f32 %v4290_v35, %v988_v9  ;;  %v1029_v31 = vsel %vm980_vm6, %v4297_v39, %v4296_v30 }
 0x77c   : > { %v1036_v51 = vadd.f32 %v4293_v56, %v1012_v21  ;;  %v4298_v21 = vld [vmem:[#allocation12_spill] sm:$0xff] }
 0x77d   : > { %2416 = vset.pattern.permute.xlu1 %v4252_v12  ;;  %v859_v12 = vsel %vm786_vm4, %v4277_v32, %v4276_v25 }
 0x77e   : > { %1558 = vperm.xlu1 %2416, %v3230_v28   ;;  %v864_v55 = vadd.f32 %v859_v12, %v840_v1  ;;  %v4294_v1 = vld [vmem:[#allocation29_spill] sm:$0xff] }
 0x77f   : > { %v1005_v18 = vsel %vm980_vm6, %v4295_v26, %v4294_v1  ;;  %v1006_v2 = vsel %vm980_vm6, %v4294_v1, %v4290_v35  ;;  %v4299_v26 = vld [vmem:[#allocation10_spill] sm:$0xff] }
 0x782   : > { %2417 = vset.pattern.permute.xlu1 %v4258_v13  ;;  %v889_v13 = vadd.f32 %v884_v53, %v864_v55  ;;  %v1030_v53 = vsel %vm980_vm6, %v4296_v30, %v4293_v56 }
 0x783   : > { %1582 = vperm.xlu1 %2417, %v3230_v28  }
 0x784   : > { %v913_v50 = vadd.f32 %v908_v37, %v889_v13 }
 0x786   : > { %v937_v44 = vadd.f32 %v932_v8, %v913_v50 }
 0x787   : > { %2419 = vset.pattern.permute.xlu1 %v4262_v4  ;;  %v914_v4 = vadd.f32 %v909_v59, %v890_v46 }
 0x788   : > { %v961_v5 = vadd.f32 %v956_v0, %v937_v44  ;;  %v268_v0 = vld [vmem:[%s4107_s5] sm:$0x7] }
 0x789   : > { %v938_v61 = vadd.f32 %v933_v33, %v914_v4  ;;  %v2584_v33 = vmov 0.0   ;;  %v3475_v20 = vrot.slane %v268_v0, %v4298_v21 }
 0x78a   : > { %v986_v3 = vadd.f32 %v981_v52, %v961_v5  ;;  %1210 = vst.msk [vmem:[#allocation2] sm:$0xf] %vm1209_vm8, %v2584_v33 }
 0x78b   : > { %v962_v49 = vadd.f32 %v957_v27, %v938_v61  ;;  %1212 = vst.msk [vmem:[#allocation2 + $0x8] sm:$0xf] %vm1211_vm9, %v2584_v33 }
 0x78c   : > { %v1010_v32 = vadd.f32 %v1005_v18, %v986_v3  ;;  %v3481_v18 = vrot.slane %v268_v0, %v4299_v26 }
 0x78d   : > { %v987_v23 = vadd.f32 %v982_v16, %v962_v49 }
 0x78e   : > { %v1034_v57 = vadd.f32 %v1029_v31, %v1010_v32 }
 0x78f   : > { %v1011_v12 = vadd.f32 %v1006_v2, %v987_v23  ;;  %v4300_v2 = vld [vmem:[#allocation11_spill] sm:$0xff] }
 0x791   : > { %v1035_v46 = vadd.f32 %v1030_v53, %v1011_v12  ;;  %v4302_v53 = vmov 23  }
 0x797   : > { %v1048_v19 = vpop.permute.xlu1 %1047  ;;  %v1052_v24 = vpop.permute.xlu0 %1051 }
 0x798   : > { %v1060_v25 = vadd.f32 %v1052_v24, %v1036_v51 }
 0x79b   : > { %v1050_v11 = vpop.permute.xlu1 %1049  ;;  %v1074_v41 = vpop.permute.xlu0 %1073 }
 0x79c   : > { %v1053_v43 = vsel %vm980_vm6, %v1048_v19, %v1050_v11  ;;  %v1054_v13 = vsel %vm980_vm6, %v1050_v11, %v1052_v24 }
 0x79d   : > { %v1058_v10 = vadd.f32 %v1053_v43, %v1034_v57  ;;  %v1059_v37 = vadd.f32 %v1054_v13, %v1035_v46  ;;  %v4303_v57 = vmov 16   ;;  %v4304_v13 = vmov 26  }
 0x79e   : > { %v4305_v46 = vmov 18  }
 0x79f   : > { %v1072_v29 = vpop.permute.xlu1 %1071  ;;  %v1097_v7 = vpop.permute.xlu0 %1096 }
 0x7a0   : > { %v1078_v47 = vsel %vm1077_vm7, %v1072_v29, %v1074_v41 }
 0x7a1   : > { %v1083_v19 = vadd.f32 %v1078_v47, %v1058_v10  ;;  %v4306_v47 = vmov 29   ;;  %v4307_v10 = vmov 19  }
 0x7a3   : > { %v1076_v34 = vpop.permute.xlu1 %1075  ;;  %v1101_v15 = vpop.permute.xlu0 %1100 }
 0x7a4   : > { %v1085_v55 = vadd.f32 %v1076_v34, %v1060_v25  ;;  %v1079_v38 = vsel %vm1077_vm7, %v1074_v41, %v1076_v34  ;;  %v3484_v25 = vrot.slane %v268_v0, %v4300_v2 }
 0x7a5   : > { %v1084_v42 = vadd.f32 %v1079_v38, %v1059_v37  ;;  %v4308_v38 = vmov 32   ;;  %v4310_v37 = vmov 35  }
 0x7a6   : > { %v1109_v62 = vadd.f32 %v1101_v15, %v1085_v55 }
 0x7a7   : > { %v1099_v63 = vpop.permute.xlu1 %1098  ;;  %v1123_v48 = vpop.permute.xlu0 %1122 }
 0x7a8   : > { %v1102_v59 = vsel %vm1077_vm7, %v1097_v7, %v1099_v63  ;;  %v1103_v4 = vsel %vm1077_vm7, %v1099_v63, %v1101_v15 }
 0x7a9   : > { %v1107_v60 = vadd.f32 %v1102_v59, %v1083_v19  ;;  %v1108_v29 = vadd.f32 %v1103_v4, %v1084_v42  ;;  %v4311_v59 = vmov 22   ;;  %v4313_v19 = vmov 24  }
 0x7aa   : > { %v4314_v4 = vmov 25   ;;  %v4316_v42 = vmov 28  }
 0x7ab   : > { %v1121_v17 = vpop.permute.xlu1 %1120  ;;  %v1145_v54 = vpop.permute.xlu0 %1144 }
 0x7ac   : > { %v1126_v24 = vsel %vm1077_vm7, %v1121_v17, %v1123_v48 }
 0x7ad   : > { %v1131_v44 = vadd.f32 %v1126_v24, %v1107_v60  ;;  %v4317_v60 = vmov 30  }
 0x7af   : > { %v1125_v36 = vpop.permute.xlu1 %1124  ;;  %v1149_v50 = vpop.permute.xlu0 %1148 }
 0x7b0   : > { %v1133_v22 = vadd.f32 %v1125_v36, %v1109_v62  ;;  %v1127_v11 = vsel %vm1077_vm7, %v1123_v48, %v1125_v36  ;;  %v4301_v36 = vmov 20   ;;  %v4309_v62 = vmov 21  }
 0x7b1   : > { %v1132_v61 = vadd.f32 %v1127_v11, %v1108_v29  ;;  %v4318_v11 = vmov 31  }
 0x7b2   : > { %v1157_v41 = vadd.f32 %v1149_v50, %v1133_v22  ;;  %v4315_v22 = vmov 27  }
 0x7b3   : > { %v1147_v14 = vpop.permute.xlu1 %1146 }
 0x7b4   : > { %v1150_v34 = vsel %vm1077_vm7, %v1145_v54, %v1147_v14  ;;  %v1151_v7 = vsel %vm1077_vm7, %v1147_v14, %v1149_v50  ;;  %v4312_v50 = vmov 0  }
 0x7b5   : > { %v1155_v9 = vadd.f32 %v1150_v34, %v1131_v44  ;;  %v1156_v58 = vadd.f32 %v1151_v7, %v1132_v61  ;;  %v4320_v34 = vmov 34   ;;  %v4321_v44 = vmov 1  }
 0x7bc   : > { %v1169_v8 = vpop.permute.xlu0 %1168 }
 0x7c0   : > { %v1162_v15 = vpop.permute.xlu1 %1161  ;;  %v1184_v5 = vpop.permute.xlu0 %1183 }
 0x7c1   : > { %v1166_v40 = vmul.f32 %v1162_v15, %v1157_v41  ;;  %v1164_v63 = vmul.f32 %v1162_v15, %v1155_v9  ;;  %v1165_v27 = vmul.f32 %v1162_v15, %v1156_v58 }
 0x7c3   : > { %v1173_v45 = vadd.f32 %v1169_v8, %v1166_v40  ;;  %v1171_v48 = vadd.f32 %v1169_v8, %v1164_v63  ;;  %v1172_v16 = vadd.f32 %v1169_v8, %v1165_v27  ;;  %v4319_v8 = vmov 33  }
 0x7c4   : > { %v1180_v49 = vpop.permute.xlu1 %1179  ;;  %v1285_v9 = vpop.permute.xlu0 %1284 }
 0x7c5   : > { %v1192_v35 = vadd.f32 %v1184_v5, %v1173_v45 }
 0x7c7   : > { %vm1195_vm11 = vcmp.ge.f32.partialorder %v1192_v35, 0.0  ;;  %v1198_v6 = vmul.f32 0.1, %v1192_v35 }
 0x7c8   : > { %v1182_v52 = vpop.permute.xlu1 %1181 }
 0x7c9   : > { %v1201_v3 = vsel %vm1195_vm11, %v1192_v35, %v1198_v6  ;;  %v1185_v23 = vsel %vm689_vm3, %v1180_v49, %v1182_v52  ;;  %v1186_v17 = vsel %vm689_vm3, %v1182_v52, %v1184_v5  ;;  %v3548_v45 = vpop.permute.xlu0 %1340  ;;  %vm3556_vm11 = vmor %vm1247_vm15, %vm1246_vm14 }
 0x7ca   : > { %1208 = vst.msk [vmem:[#allocation3 + $0x8] sm:$0xf] %vm1207_vm10, %v1201_v3  ;;  %v1190_v56 = vadd.f32 %v1185_v23, %v1171_v48  ;;  %v1191_v51 = vadd.f32 %v1186_v17, %v1172_v16  ;;  %v1231_v1 = vmul.f32 %v3475_v20, %v1201_v3  ;;  %vm1241_vm10 = vcmask 154624  }
 0x7cc   : > { %vm1193_vm12 = vcmp.ge.f32.partialorder %v1190_v56, 0.0  ;;  %vm1194_vm13 = vcmp.ge.f32.partialorder %v1191_v51, 0.0  ;;  %v1196_v32 = vmul.f32 0.1, %v1190_v56  ;;  %v1197_v12 = vmul.f32 0.1, %v1191_v51  ;;  %1238 = vrot.lane.b32.xlu0 %v1231_v1, %s2585_s28  ;;  %v3523_v14 = vpop.permute.xlu1 %1256 }
 0x7ce   : > { %v1199_v54 = vsel %vm1193_vm12, %v1190_v56, %v1196_v32  ;;  %v1200_v55 = vsel %vm1194_vm13, %v1191_v51, %v1197_v12  ;;  %v1391_v63 = vpop.permute.xlu0 %1390  ;;  %vm1250_vm12 = vcmask 396288  }
 0x7cf   : > { %v1204_v30 = vcombine.low %v1199_v54, %v1200_v55  ;;  %v1229_v39 = vmul.f32 %v3481_v18, %v1199_v54  ;;  %v1230_v31 = vmul.f32 %v3484_v25, %v1200_v55 }
 0x7d0   : > { %1678 = vperm.xlu0 %2421, %v3230_v28  }
 0x7d1   : > { %1206 = vst [vmem:[#allocation3] sm:$0xff] %v1204_v30  ;;  %v1235_v43 = vcombine.low %v1229_v39, %v1230_v31  ;;  %v3527_v24 = vpop.permute.xlu1 %1312 }
 0x7d3   : > { %1236 = vrot.lane.b32.xlu1 %v1235_v43, %s2585_s28 }
 0x7d4   : > { %2424 = vset.pattern.permute.xlu0 %v4301_v36 }
 0x7d5   : > { %1750 = vperm.xlu0 %2424, %v3230_v28  }
 0x7d6   : > { %v1367_v29 = vpop.permute.xlu1 %1366 }
 0x7d7   : > { %1630 = vperm.xlu1 %2419, %v3230_v28  }
 0x7d9   : > { %2427 = vset.pattern.permute.xlu0 %v4302_v53 }
 0x7da   : > { %1822 = vperm.xlu0 %2427, %v3230_v28  }
 0x7db   : > { %2420 = vset.pattern.permute.xlu1 %v4303_v57  ;;  %v3533_v41 = vpop.permute.xlu1 %1414 }
 0x7dc   : > { %1654 = vperm.xlu1 %2420, %v3230_v28  }
 0x7de   : > { %2430 = vset.pattern.permute.xlu0 %v4304_v13 }
 0x7df   : > { %1894 = vperm.xlu0 %2430, %v3230_v28  }
 0x7e0   : > { %2422 = vset.pattern.permute.xlu1 %v4305_v46  ;;  %v3537_v7 = vpop.permute.xlu1 %1438 }
 0x7e1   : > { %1702 = vperm.xlu1 %2422, %v3230_v28  }
 0x7e3   : > { %2433 = vset.pattern.permute.xlu0 %v4306_v47 }
 0x7e4   : > { %1966 = vperm.xlu0 %2433, %v3230_v28  }
 0x7e5   : > { %2423 = vset.pattern.permute.xlu1 %v4307_v10  ;;  %v3540_v61 = vpop.permute.xlu1 %1462 }
 0x7e6   : > { %1726 = vperm.xlu1 %2423, %v3230_v28  }
 0x7e8   : > { %2436 = vset.pattern.permute.xlu0 %v4308_v38 }
 0x7e9   : > { %2038 = vperm.xlu0 %2436, %v3230_v28  }
 0x7ea   : > { %2425 = vset.pattern.permute.xlu1 %v4309_v62  ;;  %v3542_v15 = vpop.permute.xlu1 %1486 }
 0x7eb   : > { %1774 = vperm.xlu1 %2425, %v3230_v28  }
 0x7ed   : > { %2439 = vset.pattern.permute.xlu0 %v4310_v37 }
 0x7ee   : > { %2110 = vperm.xlu0 %2439, %v3230_v28  }
 0x7ef   : > { %2426 = vset.pattern.permute.xlu1 %v4311_v59  ;;  %v3544_v40 = vpop.permute.xlu1 %1510 }
 0x7f0   : > { %1798 = vperm.xlu1 %2426, %v3230_v28  }
 0x7f2   : > { %2440 = vset.pattern.permute.xlu0 %v4312_v50 }
 0x7f4   : > { %2428 = vset.pattern.permute.xlu1 %v4313_v19  ;;  %v3546_v58 = vpop.permute.xlu1 %1534 }
 0x7f5   : > { %1846 = vperm.xlu1 %2428, %v3230_v28  }
 0x7f9   : > { %2429 = vset.pattern.permute.xlu1 %v4314_v4  ;;  %v3550_v0 = vpop.permute.xlu1 %1558 }
 0x7fa   : > { %1870 = vperm.xlu1 %2429, %v3230_v28  }
 0x7fe   : > { %2431 = vset.pattern.permute.xlu1 %v4315_v22  ;;  %v3552_v27 = vpop.permute.xlu1 %1582 }
 0x7ff   : > { %1918 = vperm.xlu1 %2431, %v3230_v28  }
 0x803   : > { %2432 = vset.pattern.permute.xlu1 %v4316_v42 }
 0x804   : > { %1942 = vperm.xlu1 %2432, %v3230_v28  }
 0x808   : > { %2434 = vset.pattern.permute.xlu1 %v4317_v60 }
 0x809   : > { %1990 = vperm.xlu1 %2434, %v3230_v28  }
 0x80d   : > { %2435 = vset.pattern.permute.xlu1 %v4318_v11 }
 0x80e   : > { %2014 = vperm.xlu1 %2435, %v3230_v28  }
 0x812   : > { %2437 = vset.pattern.permute.xlu1 %v4319_v8 }
 0x813   : > { %2062 = vperm.xlu1 %2437, %v3230_v28  }
 0x817   : > { %2438 = vset.pattern.permute.xlu1 %v4320_v34 }
 0x818   : > { %2086 = vperm.xlu1 %2438, %v3230_v28   ;;  %v3554_v28 = vpop.permute.xlu0 %1606 }
 0x81c   : > { %2441 = vset.pattern.permute.xlu1 %v4321_v44 }
 0x83e   : > { %v1239_v6 = vpop.permute.xlu0 %1238 }
 0x845   : > { %v1237_v5 = vpop.permute.xlu1 %1236 }
 0x846   : > { %v1240_v35 = vrot.slane %v1237_v5, 4 }
 0x848   : > { %v1242_v52 = vsel %vm1241_vm10, %v1240_v35, %v1237_v5  ;;  %v1243_v48 = vsel %vm1241_vm10, %v1240_v35, %v1239_v6 }
 0x849   : > { %1249 = vst.msk [vmem:[#allocation2] sm:$0xff] %vm3556_vm11, %v1242_v52 }
 0x84a   : > { %1251 = vst.msk [vmem:[#allocation2 + $0x8] sm:$0xf] %vm1250_vm12, %v1243_v48 }
 0x851   : > { %v1253_v16 = vld [vmem:[#allocation2] ss:$4 sm:$0x7]  ;;  %v1282_v17 = vld [vmem:[#allocation2 + $0x1] ss:$4 sm:$0x7] }
 0x852   : > { %v3566_v3 = vrot.slane %v1253_v16, %v4299_v26  ;;  %v3569_v23 = vrot.slane %v1253_v16, %v4300_v2  ;;  %v3572_v56 = vrot.slane %v1253_v16, %v4298_v21  ;;  %v3575_v51 = vrot.slane %v1282_v17, %v4298_v21  ;;  %v1310_v12 = vld [vmem:[#allocation2 + $0x2] ss:$4 sm:$0x7]  ;;  %v1338_v57 = vld [vmem:[#allocation2 + $0x3] ss:$4 sm:$0x7] }
 0x853   : > { %v3582_v54 = vrot.slane %v1282_v17, %v4299_v26  ;;  %v3585_v55 = vrot.slane %v1310_v12, %v4299_v26  ;;  %v3592_v31 = vrot.slane %v1282_v17, %v4300_v2  ;;  %v3595_v43 = vrot.slane %v1310_v12, %v4298_v21 }
 0x854   : > { %v1370_v1 = vmul.f32 %v1367_v29, %v3569_v23  ;;  %v1369_v32 = vmul.f32 %v1367_v29, %v3566_v3  ;;  %v1395_v30 = vmul.f32 %v1391_v63, %v3575_v51  ;;  %v1371_v39 = vmul.f32 %v1367_v29, %v3572_v56 }
 0x855   : > { %v1417_v36 = vmul.f32 %v3533_v41, %v3585_v55  ;;  %v1393_v53 = vmul.f32 %v1391_v63, %v3582_v54  ;;  %v3603_v13 = vrot.slane %v1310_v12, %v4300_v2  ;;  %v3606_v46 = vrot.slane %v1338_v57, %v4299_v26  ;;  %v1631_v12 = vpop.permute.xlu1 %1630 }
 0x856   : > { %1377 = vrot.lane.b32.xlu0 %v1370_v1, %s2560_s7  ;;  %1375 = vrot.lane.b32.xlu1 %v1369_v32, %s2560_s7  ;;  %v1419_v47 = vmul.f32 %v3533_v41, %v3595_v43  ;;  %v1394_v10 = vmul.f32 %v1391_v63, %v3592_v31  ;;  %v1275_v38 = vmul.f32 %v3566_v3, %v3523_v14 }
 0x857   : > { %v1303_v62 = vmul.f32 %v3582_v54, %v1285_v9  ;;  %v1276_v37 = vmul.f32 %v3569_v23, %v3523_v14  ;;  %v3617_v59 = vrot.slane %v1338_v57, %v4300_v2  ;;  %v3620_v50 = vrot.slane %v1338_v57, %v4298_v21 }
 0x858   : > { %v1331_v26 = vmul.f32 %v3585_v55, %v3527_v24  ;;  %v1277_v4 = vmul.f32 %v3572_v56, %v3523_v14  ;;  %v1304_v22 = vmul.f32 %v3592_v31, %v1285_v9  ;;  %v1305_v42 = vmul.f32 %v3575_v51, %v1285_v9 }
 0x859   : > { %v1306_v19 = vadd.f32 %v1303_v62, %v1275_v38  ;;  %v1441_v2 = vmul.f32 %v3537_v7, %v3606_v46  ;;  %v1418_v21 = vmul.f32 %v3533_v41, %v3603_v13  ;;  %v1359_v11 = vmul.f32 %v3606_v46, %v3548_v45 }
 0x85a   : > { %1403 = vrot.lane.b32.xlu0 %v1395_v30, %s2560_s7  ;;  %1379 = vrot.lane.b32.xlu1 %v1371_v39, %s2560_s7  ;;  %v1307_v29 = vadd.f32 %v1304_v22, %v1276_v37  ;;  %v1308_v8 = vadd.f32 %v1305_v42, %v1277_v4  ;;  %v1332_v14 = vmul.f32 %v3603_v13, %v3527_v24  ;;  %v1655_v39 = vpop.permute.xlu1 %1654 }
 0x85b   : > { %v1334_v60 = vadd.f32 %v1331_v26, %v1306_v19  ;;  %v1333_v34 = vmul.f32 %v3595_v43, %v3527_v24  ;;  %v1443_v9 = vmul.f32 %v3537_v7, %v3620_v50  ;;  %v1442_v41 = vmul.f32 %v3537_v7, %v3617_v59 }
 0x85c   : > { %v1335_v5 = vadd.f32 %v1332_v14, %v1307_v29  ;;  %v1360_v6 = vmul.f32 %v3617_v59, %v3548_v45  ;;  %v1361_v52 = vmul.f32 %v3620_v50, %v3548_v45  ;;  %v1465_v7 = vmul.f32 %v3540_v61, %v3566_v3  ;;  %v1679_v29 = vpop.permute.xlu0 %1678 }
 0x85d   : > { %v3646_v63 = vadd.f32 %v1359_v11, %v1334_v60  ;;  %v1336_v35 = vadd.f32 %v1333_v34, %v1308_v8  ;;  %v1466_v16 = vmul.f32 %v3540_v61, %v3569_v23  ;;  %v1467_v45 = vmul.f32 %v3540_v61, %v3572_v56 }
 0x85e   : > { %1423 = vrot.lane.b32.xlu0 %v1417_v36, %s2560_s7  ;;  %1399 = vrot.lane.b32.xlu1 %v1393_v53, %s2560_s7  ;;  %v3654_v24 = vadd.f32 %v1360_v6, %v1335_v5  ;;  %v1490_v17 = vmul.f32 %v3542_v15, %v3592_v31  ;;  %v1489_v1 = vmul.f32 %v3542_v15, %v3582_v54 }
 0x85f   : > { %v3656_v48 = vadd.f32 %v1361_v52, %v1336_v35  ;;  %v1514_v32 = vmul.f32 %v3544_v40, %v3603_v13  ;;  %v1491_v61 = vmul.f32 %v3542_v15, %v3575_v51  ;;  %v1538_v30 = vmul.f32 %v3546_v58, %v3617_v59 }
 0x860   : > { %v1513_v36 = vmul.f32 %v3544_v40, %v3585_v55  ;;  %v1562_v53 = vmul.f32 %v3550_v0, %v3569_v23  ;;  %v1515_v15 = vmul.f32 %v3544_v40, %v3595_v43  ;;  %v1585_v57 = vmul.f32 %v3552_v27, %v3582_v54  ;;  %v1751_v5 = vpop.permute.xlu0 %1750 }
 0x861   : > { %v1586_v38 = vmul.f32 %v3552_v27, %v3592_v31  ;;  %v1539_v40 = vmul.f32 %v3546_v58, %v3620_v50  ;;  %v1609_v37 = vmul.f32 %v3554_v28, %v3585_v55  ;;  %v1561_v26 = vmul.f32 %v3550_v0, %v3566_v3 }
 0x862   : > { %1427 = vrot.lane.b32.xlu0 %v1419_v47, %s2560_s7  ;;  %1401 = vrot.lane.b32.xlu1 %v1394_v10, %s2560_s7  ;;  %v1703_v47 = vpop.permute.xlu1 %1702  ;;  %v1537_v10 = vmul.f32 %v3546_v58, %v3606_v46  ;;  %v1611_v19 = vmul.f32 %v3554_v28, %v3595_v43  ;;  %v1634_v58 = vmul.f32 %v1631_v12, %v3617_v59 }
 0x863   : > { %v1563_v22 = vmul.f32 %v3550_v0, %v3572_v56  ;;  %v1657_v42 = vmul.f32 %v1655_v39, %v3566_v3  ;;  %v1659_v60 = vmul.f32 %v1655_v39, %v3572_v56  ;;  %v1610_v0 = vmul.f32 %v3554_v28, %v3603_v13 }
 0x864   : > { %v1682_v8 = vmul.f32 %v1679_v29, %v3592_v31  ;;  %v1635_v14 = vmul.f32 %v1631_v12, %v3620_v50  ;;  %v1705_v34 = vmul.f32 %v1703_v47, %v3585_v55  ;;  %v1681_v6 = vmul.f32 %v1679_v29, %v3582_v54 }
 0x866   : > { %1447 = vrot.lane.b32.xlu0 %v1441_v2, %s2560_s7  ;;  %1425 = vrot.lane.b32.xlu1 %v1418_v21, %s2560_s7  ;;  %v1727_v62 = vpop.permute.xlu1 %1726  ;;  %v1587_v21 = vmul.f32 %v3552_v27, %v3575_v51  ;;  %v1633_v27 = vmul.f32 %v1631_v12, %v3606_v46 }
 0x867   : > { %v1730_v52 = vmul.f32 %v1727_v62, %v3617_v59 }
 0x86a   : > { %1451 = vrot.lane.b32.xlu0 %v1443_v9, %s2560_s7  ;;  %1449 = vrot.lane.b32.xlu1 %v1442_v41, %s2560_s7  ;;  %v3710_v4 = vpop.permute.xlu1 %1774  ;;  %v1658_v9 = vmul.f32 %v1655_v39, %v3569_v23  ;;  %v1707_v41 = vmul.f32 %v1703_v47, %v3595_v43 }
 0x86b   : > { %v1778_v39 = vmul.f32 %v3710_v4, %v3592_v31 }
 0x86e   : > { %1471 = vrot.lane.b32.xlu0 %v1465_v7, %s2561_s18  ;;  %1473 = vrot.lane.b32.xlu1 %v1466_v16, %s2561_s18  ;;  %v3720_v2 = vpop.permute.xlu1 %1798  ;;  %v1683_v7 = vmul.f32 %v1679_v29, %v3575_v51  ;;  %v1753_v16 = vmul.f32 %v1751_v5, %v3566_v3 }
 0x872   : > { %1475 = vrot.lane.b32.xlu0 %v1467_v45, %s2561_s18  ;;  %1497 = vrot.lane.b32.xlu1 %v1490_v17, %s2561_s18  ;;  %v3729_v11 = vpop.permute.xlu1 %1846  ;;  %v1823_v45 = vpop.permute.xlu0 %1822 }
 0x876   : > { %1495 = vrot.lane.b32.xlu0 %v1489_v1, %s2561_s18  ;;  %1521 = vrot.lane.b32.xlu1 %v1514_v32, %s2561_s18  ;;  %v3739_v28 = vpop.permute.xlu1 %1870  ;;  %v1755_v1 = vmul.f32 %v1751_v5, %v3572_v56  ;;  %v1706_v32 = vmul.f32 %v1703_v47, %v3603_v13  ;;  %v3761_v12 = vpop.permute.xlu0 %1894  ;;  %v1754_v47 = vmul.f32 %v1751_v5, %v3569_v23 }
 0x877   : > { %v1897_v5 = vmul.f32 %v3761_v12, %v3585_v55 }
 0x87a   : > { %1499 = vrot.lane.b32.xlu0 %v1491_v61, %s2561_s18  ;;  %1545 = vrot.lane.b32.xlu1 %v1538_v30, %s2561_s18  ;;  %v3745_v35 = vpop.permute.xlu1 %1918  ;;  %v1729_v30 = vmul.f32 %v1727_v62, %v3606_v46 }
 0x87e   : > { %1519 = vrot.lane.b32.xlu0 %v1513_v36, %s2561_s18  ;;  %1569 = vrot.lane.b32.xlu1 %v1562_v53, %s2562_s19  ;;  %v3772_v36 = vpop.permute.xlu0 %1966  ;;  %v1731_v53 = vmul.f32 %v1727_v62, %v3620_v50  ;;  %v1826_v62 = vmul.f32 %v1823_v45, %v3617_v59 }
 0x87f   : > { %v3755_v17 = vpop.permute.xlu1 %1942 }
 0x882   : > { %1523 = vrot.lane.b32.xlu0 %v1515_v15, %s2561_s18  ;;  %1591 = vrot.lane.b32.xlu1 %v1585_v57, %s2562_s19  ;;  %v1801_v15 = vmul.f32 %v3720_v2, %v3585_v55 }
 0x884   : > { %v3763_v61 = vpop.permute.xlu1 %1990 }
 0x886   : > { %1543 = vrot.lane.b32.xlu0 %v1537_v10, %s2561_s18  ;;  %1593 = vrot.lane.b32.xlu1 %v1586_v38, %s2562_s19  ;;  %v1803_v10 = vmul.f32 %v3720_v2, %v3595_v43  ;;  %v3784_v38 = vpop.permute.xlu0 %2038 }
 0x889   : > { %v3777_v57 = vpop.permute.xlu1 %2014 }
 0x88a   : > { %1547 = vrot.lane.b32.xlu0 %v1539_v40, %s2561_s18  ;;  %1615 = vrot.lane.b32.xlu1 %v1609_v37, %s2562_s19  ;;  %v1777_v37 = vmul.f32 %v3710_v4, %v3582_v54 }
 0x88e   : > { %1567 = vrot.lane.b32.xlu0 %v1561_v26, %s2562_s19  ;;  %1619 = vrot.lane.b32.xlu1 %v1611_v19, %s2562_s19  ;;  %v3786_v40 = vpop.permute.xlu1 %2062  ;;  %v1779_v26 = vmul.f32 %v3710_v4, %v3575_v51  ;;  %v3797_v19 = vpop.permute.xlu0 %2110 }
 0x892   : > { %1571 = vrot.lane.b32.xlu0 %v1563_v22, %s2562_s19  ;;  %1641 = vrot.lane.b32.xlu1 %v1634_v58, %s2562_s19  ;;  %v1849_v58 = vmul.f32 %v3729_v11, %v3566_v3 }
 0x893   : > { %v3801_v22 = vpop.permute.xlu1 %2086 }
 0x896   : > { %1595 = vrot.lane.b32.xlu0 %v1587_v21, %s2562_s19  ;;  %1663 = vrot.lane.b32.xlu1 %v1657_v42, %s2563_s11  ;;  %v1802_v42 = vmul.f32 %v3720_v2, %v3603_v13  ;;  %v1851_v21 = vmul.f32 %v3729_v11, %v3572_v56 }
 0x89a   : > { %1617 = vrot.lane.b32.xlu0 %v1610_v0, %s2562_s19  ;;  %1667 = vrot.lane.b32.xlu1 %v1659_v60, %s2563_s11 }
 0x89e   : > { %1639 = vrot.lane.b32.xlu0 %v1633_v27, %s2562_s19  ;;  %1689 = vrot.lane.b32.xlu1 %v1682_v8, %s2563_s11  ;;  %v1825_v8 = vmul.f32 %v1823_v45, %v3606_v46  ;;  %v1874_v27 = vmul.f32 %v3739_v28, %v3592_v31 }
 0x8a2   : > { %1643 = vrot.lane.b32.xlu0 %v1635_v14, %s2562_s19  ;;  %1711 = vrot.lane.b32.xlu1 %v1705_v34, %s2563_s11  ;;  %s4033_s19 = scalar_lea.vmem [#allocation7], %s2275_s26  ;;  %s2276_s26 = smul.u32 192, %s2643_s25 }
 0x8a3   : > { %2157 = vst.msk [vmem:[%s4033_s19] sm:$0xf] %vm1209_vm8, %v2584_v33  ;;  %s2178_s25 = scalar_lea.sflag [#allocation6], %s2708_s20 }
 0x8a4   : > { %2158 = vst.msk [vmem:[%s4033_s19 + $0x8] sm:$0xf] %vm1211_vm9, %v2584_v33 }
 0x8a6   : > { %1665 = vrot.lane.b32.xlu0 %v1658_v9, %s2563_s11  ;;  %1715 = vrot.lane.b32.xlu1 %v1707_v41, %s2563_s11 }
 0x8aa   : > { %1687 = vrot.lane.b32.xlu0 %v1681_v6, %s2563_s11  ;;  %1737 = vrot.lane.b32.xlu1 %v1730_v52, %s2563_s11 }
 0x8ae   : > { %1691 = vrot.lane.b32.xlu0 %v1683_v7, %s2563_s11  ;;  %1759 = vrot.lane.b32.xlu1 %v1753_v16, %s2565_s13 }
 0x8b2   : > { %1713 = vrot.lane.b32.xlu0 %v1706_v32, %s2563_s11  ;;  %1763 = vrot.lane.b32.xlu1 %v1755_v1, %s2565_s13 }
 0x8b6   : > { %1735 = vrot.lane.b32.xlu0 %v1729_v30, %s2563_s11  ;;  %1785 = vrot.lane.b32.xlu1 %v1778_v39, %s2565_s13 }
 0x8ba   : > { %1739 = vrot.lane.b32.xlu0 %v1731_v53, %s2563_s11  ;;  %1807 = vrot.lane.b32.xlu1 %v1801_v15, %s2565_s13  ;;  %v1873_v15 = vmul.f32 %v3739_v28, %v3582_v54  ;;  %s2192_s11 = sshll.u32 %s4033_s19, 4  ;;  %s4054_s11 = int_to_ptr.vmem [resolvable:$true] %s2192_s11 }
 0x8bb   : > { %p2480_p1 = scmp.lt.s32.totalorder %s4054_s11, %s2478_s16 }
 0x8be   : > { %1761 = vrot.lane.b32.xlu0 %v1754_v47, %s2565_s13  ;;  %1811 = vrot.lane.b32.xlu1 %v1803_v10, %s2565_s13  ;;  %v1922_v47 = vmul.f32 %v3745_v35, %v3617_v59 }
 0x8c2   : > { %1783 = vrot.lane.b32.xlu0 %v1777_v37, %s2565_s13  ;;  %1833 = vrot.lane.b32.xlu1 %v1826_v62, %s2565_s13 }
 0x8c6   : > { %1787 = vrot.lane.b32.xlu0 %v1779_v26, %s2565_s13  ;;  %1855 = vrot.lane.b32.xlu1 %v1849_v58, %s2570_s12 }
 0x8c8   : > { %v1378_v60 = vpop.permute.xlu0 %1377  ;;  %v1376_v0 = vpop.permute.xlu1 %1375 }
 0x8c9   : > { %v1381_v4 = vsel %vm398_vm0, %v1376_v0, %v1378_v60 }
 0x8ca   : > { %v1386_v29 = vadd.f32 %v1381_v4, %v3646_v63  ;;  %1809 = vrot.lane.b32.xlu0 %v1802_v42, %s2565_s13  ;;  %1859 = vrot.lane.b32.xlu1 %v1851_v21, %s2570_s12  ;;  %v1827_v63 = vmul.f32 %v1823_v45, %v3620_v50  ;;  %v1875_v42 = vmul.f32 %v3739_v28, %v3575_v51 }
 0x8cb   : > { %v1945_v21 = vmul.f32 %v3755_v17, %v3566_v3  ;;  %v1947_v28 = vmul.f32 %v3755_v17, %v3572_v56 }
 0x8cc   : > { %v1404_v14 = vpop.permute.xlu0 %1403  ;;  %v1380_v2 = vpop.permute.xlu1 %1379 }
 0x8cd   : > { %v1382_v34 = vsel %vm398_vm0, %v1378_v60, %v1380_v2  ;;  %v1388_v9 = vadd.f32 %v1380_v2, %v3656_v48  ;;  %v1899_v48 = vmul.f32 %v3761_v12, %v3595_v43  ;;  %v1898_v2 = vmul.f32 %v3761_v12, %v3603_v13 }
 0x8ce   : > { %v1387_v41 = vadd.f32 %v1382_v34, %v3654_v24  ;;  %1831 = vrot.lane.b32.xlu0 %v1825_v8, %s2565_s13  ;;  %1881 = vrot.lane.b32.xlu1 %v1874_v27, %s2570_s12  ;;  %v1850_v24 = vmul.f32 %v3729_v11, %v3569_v23 }
 0x8cf   : > { %v1412_v7 = vadd.f32 %v1404_v14, %v1388_v9 }
 0x8d0   : > { %v1424_v6 = vpop.permute.xlu0 %1423  ;;  %v1400_v52 = vpop.permute.xlu1 %1399 }
 0x8d2   : > { %1835 = vrot.lane.b32.xlu0 %v1827_v63, %s2565_s13  ;;  %1903 = vrot.lane.b32.xlu1 %v1897_v5, %s2570_s12  ;;  %v1970_v5 = vmul.f32 %v3772_v36, %v3592_v31 }
 0x8d4   : > { %v1428_v16 = vpop.permute.xlu0 %1427  ;;  %v1402_v1 = vpop.permute.xlu1 %1401 }
 0x8d5   : > { %v1436_v32 = vadd.f32 %v1428_v16, %v1412_v7  ;;  %v1405_v45 = vsel %vm398_vm0, %v1400_v52, %v1402_v1  ;;  %v1406_v30 = vsel %vm398_vm0, %v1402_v1, %v1404_v14  ;;  %v1993_v1 = vmul.f32 %v3763_v61, %v3585_v55 }
 0x8d6   : > { %v1410_v39 = vadd.f32 %v1405_v45, %v1386_v29  ;;  %v1411_v53 = vadd.f32 %v1406_v30, %v1387_v41  ;;  %1857 = vrot.lane.b32.xlu0 %v1850_v24, %s2570_s12  ;;  %1907 = vrot.lane.b32.xlu1 %v1899_v48, %s2570_s12 }
 0x8d8   : > { %v1448_v11 = vpop.permute.xlu0 %1447  ;;  %v1426_v10 = vpop.permute.xlu1 %1425 }
 0x8d9   : > { %v1429_v62 = vsel %vm398_vm0, %v1424_v6, %v1426_v10  ;;  %v1430_v37 = vsel %vm398_vm0, %v1426_v10, %v1428_v16  ;;  %v1921_v6 = vmul.f32 %v3745_v35, %v3606_v46  ;;  %v1923_v16 = vmul.f32 %v3745_v35, %v3620_v50 }
 0x8da   : > { %v1434_v26 = vadd.f32 %v1429_v62, %v1410_v39  ;;  %v1435_v58 = vadd.f32 %v1430_v37, %v1411_v53  ;;  %1879 = vrot.lane.b32.xlu0 %v1873_v15, %s2570_s12  ;;  %1929 = vrot.lane.b32.xlu1 %v1922_v47, %s2570_s12  ;;  %v1946_v53 = vmul.f32 %v3755_v17, %v3569_v23 }
 0x8db   : > { %v1995_v15 = vmul.f32 %v3763_v61, %v3595_v43  ;;  %v1969_v37 = vmul.f32 %v3772_v36, %v3582_v54 }
 0x8dc   : > { %v1452_v60 = vpop.permute.xlu0 %1451  ;;  %v1450_v0 = vpop.permute.xlu1 %1449 }
 0x8dd   : > { %v1460_v4 = vadd.f32 %v1452_v60, %v1436_v32  ;;  %v1453_v29 = vsel %vm398_vm0, %v1448_v11, %v1450_v0  ;;  %v1454_v8 = vsel %vm398_vm0, %v1450_v0, %v1452_v60  ;;  %v1971_v60 = vmul.f32 %v3772_v36, %v3575_v51 }
 0x8de   : > { %v1458_v27 = vadd.f32 %v1453_v29, %v1434_v26  ;;  %v1459_v14 = vadd.f32 %v1454_v8, %v1435_v58  ;;  %1883 = vrot.lane.b32.xlu0 %v1875_v42, %s2570_s12  ;;  %1951 = vrot.lane.b32.xlu1 %v1945_v21, %s2575_s10  ;;  %v2018_v26 = vmul.f32 %v3777_v57, %v3617_v59 }
 0x8df   : > { %v2041_v0 = vmul.f32 %v3784_v38, %v3566_v3 }
 0x8e0   : > { %v1472_v34 = vpop.permute.xlu0 %1471  ;;  %v1474_v9 = vpop.permute.xlu1 %1473 }
 0x8e1   : > { %v1477_v41 = vsel %vm495_vm1, %v1472_v34, %v1474_v9 }
 0x8e2   : > { %v1482_v63 = vadd.f32 %v1477_v41, %v1458_v27  ;;  %1905 = vrot.lane.b32.xlu0 %v1898_v2, %s2570_s12  ;;  %1955 = vrot.lane.b32.xlu1 %v1947_v28, %s2575_s10  ;;  %v2043_v2 = vmul.f32 %v3784_v38, %v3572_v56  ;;  %v1994_v28 = vmul.f32 %v3763_v61, %v3603_v13 }
 0x8e3   : > { %v2066_v56 = vmul.f32 %v3786_v40, %v3592_v31 }
 0x8e4   : > { %v1476_v52 = vpop.permute.xlu0 %1475  ;;  %v1498_v12 = vpop.permute.xlu1 %1497 }
 0x8e5   : > { %v1478_v7 = vsel %vm495_vm1, %v1474_v9, %v1476_v52  ;;  %v1484_v48 = vadd.f32 %v1476_v52, %v1460_v4 }
 0x8e6   : > { %v1483_v24 = vadd.f32 %v1478_v7, %v1459_v14  ;;  %1927 = vrot.lane.b32.xlu0 %v1921_v6, %s2570_s12  ;;  %1977 = vrot.lane.b32.xlu1 %v1970_v5, %s2575_s10  ;;  %v2019_v7 = vmul.f32 %v3777_v57, %v3620_v50 }
 0x8e8   : > { %v1496_v32 = vpop.permute.xlu0 %1495  ;;  %v1522_v45 = vpop.permute.xlu1 %1521 }
 0x8e9   : > { %v1501_v30 = vsel %vm495_vm1, %v1496_v32, %v1498_v12  ;;  %v2042_v32 = vmul.f32 %v3784_v38, %v3569_v23  ;;  %v2065_v23 = vmul.f32 %v3786_v40, %v3582_v54 }
 0x8ea   : > { %v1506_v39 = vadd.f32 %v1501_v30, %v1482_v63  ;;  %1931 = vrot.lane.b32.xlu0 %v1923_v16, %s2570_s12  ;;  %1999 = vrot.lane.b32.xlu1 %v1993_v1, %s2575_s10  ;;  %v2017_v63 = vmul.f32 %v3777_v57, %v3606_v46 }
 0x8ec   : > { %v1500_v47 = vpop.permute.xlu0 %1499  ;;  %v1546_v35 = vpop.permute.xlu1 %1545 }
 0x8ed   : > { %v1502_v11 = vsel %vm495_vm1, %v1498_v12, %v1500_v47  ;;  %v1508_v10 = vadd.f32 %v1500_v47, %v1484_v48  ;;  %v2089_v48 = vmul.f32 %v3801_v22, %v3585_v55  ;;  %v2113_v47 = vmul.f32 %v3797_v19, %v3606_v46 }
 0x8ee   : > { %v1507_v62 = vadd.f32 %v1502_v11, %v1483_v24  ;;  %1953 = vrot.lane.b32.xlu0 %v1946_v53, %s2575_s10  ;;  %2003 = vrot.lane.b32.xlu1 %v1995_v15, %s2575_s10  ;;  %v2067_v46 = vmul.f32 %v3786_v40, %v3575_v51  ;;  %v2133_v51 = vld [vmem:[%s4106_s4] sm:$0xf] }
 0x8f0   : > { %v1520_v17 = vpop.permute.xlu0 %1519  ;;  %v1570_v58 = vpop.permute.xlu1 %1569 }
 0x8f1   : > { %v1525_v42 = vsel %vm495_vm1, %v1520_v17, %v1522_v45 }
 0x8f2   : > { %v1530_v21 = vadd.f32 %v1525_v42, %v1506_v39  ;;  %1975 = vrot.lane.b32.xlu0 %v1969_v37, %s2575_s10  ;;  %2025 = vrot.lane.b32.xlu1 %v2018_v26, %s2575_s10  ;;  %v2114_v37 = vmul.f32 %v3797_v19, %v3617_v59 }
 0x8f4   : > { %v1524_v4 = vpop.permute.xlu0 %1523  ;;  %v1592_v29 = vpop.permute.xlu1 %1591 }
 0x8f5   : > { %v1526_v8 = vsel %vm495_vm1, %v1522_v45, %v1524_v4  ;;  %v1532_v27 = vadd.f32 %v1524_v4, %v1508_v10  ;;  %v2091_v45 = vmul.f32 %v3801_v22, %v3595_v43 }
 0x8f6   : > { %v1531_v14 = vadd.f32 %v1526_v8, %v1507_v62  ;;  %1979 = vrot.lane.b32.xlu0 %v1971_v60, %s2575_s10  ;;  %2047 = vrot.lane.b32.xlu1 %v2041_v0, %s2583_s14  ;;  %v2090_v60 = vmul.f32 %v3801_v22, %v3603_v13  ;;  %v2115_v22 = vmul.f32 %v3797_v19, %v3620_v50 }
 0x8f8   : > { %v1544_v36 = vpop.permute.xlu0 %1543  ;;  %v1594_v34 = vpop.permute.xlu1 %1593 }
 0x8f9   : > { %v1549_v3 = vsel %vm495_vm1, %v1544_v36, %v1546_v35  ;;  %v1597_v9 = vsel %vm592_vm2, %v1592_v29, %v1594_v34 }
 0x8fa   : > { %v1554_v41 = vadd.f32 %v1549_v3, %v1530_v21  ;;  %2001 = vrot.lane.b32.xlu0 %v1994_v28, %s2575_s10  ;;  %2051 = vrot.lane.b32.xlu1 %v2043_v2, %s2583_s14 }
 0x8fc   : > { %v1548_v5 = vpop.permute.xlu0 %1547  ;;  %v1616_v6 = vpop.permute.xlu1 %1615 }
 0x8fd   : > { %v1550_v61 = vsel %vm495_vm1, %v1546_v35, %v1548_v5  ;;  %v1556_v52 = vadd.f32 %v1548_v5, %v1532_v27 }
 0x8fe   : > { %v1555_v12 = vadd.f32 %v1550_v61, %v1531_v14  ;;  %2023 = vrot.lane.b32.xlu0 %v2017_v63, %s2575_s10  ;;  %2073 = vrot.lane.b32.xlu1 %v2066_v56, %s2583_s14 }
 0x900   : > { %v1568_v24 = vpop.permute.xlu0 %1567  ;;  %v1620_v16 = vpop.permute.xlu1 %1619 }
 0x901   : > { %v1573_v31 = vsel %vm592_vm2, %v1568_v24, %v1570_v58 }
 0x902   : > { %v1578_v1 = vadd.f32 %v1573_v31, %v1554_v41  ;;  %2027 = vrot.lane.b32.xlu0 %v2019_v7, %s2575_s10  ;;  %2095 = vrot.lane.b32.xlu1 %v2089_v48, %s2583_s14  ;;  %s4052_s10 = scalar_lea.hbm %s4108_s6, %s2276_s26 }
 0x904   : > { %v1572_v30 = vpop.permute.xlu0 %1571  ;;  %v1642_v57 = vpop.permute.xlu1 %1641  ;;  %v1602_v39 = vadd.f32 %v1597_v9, %v1578_v1 }
 0x905   : > { %v1574_v55 = vsel %vm592_vm2, %v1570_v58, %v1572_v30  ;;  %v1580_v53 = vadd.f32 %v1572_v30, %v1556_v52 }
 0x906   : > { %v1579_v15 = vadd.f32 %v1574_v55, %v1555_v12  ;;  %2049 = vrot.lane.b32.xlu0 %v2042_v32, %s2583_s14  ;;  %2099 = vrot.lane.b32.xlu1 %v2091_v45, %s2583_s14 }
 0x908   : > { %v1596_v38 = vpop.permute.xlu0 %1595  ;;  %v1664_v35 = vpop.permute.xlu1 %1663 }
 0x909   : > { %v1598_v43 = vsel %vm592_vm2, %v1594_v34, %v1596_v38  ;;  %v1604_v11 = vadd.f32 %v1596_v38, %v1580_v53 }
 0x90a   : > { %v1603_v10 = vadd.f32 %v1598_v43, %v1579_v15  ;;  %2071 = vrot.lane.b32.xlu0 %v2065_v23, %s2583_s14  ;;  %2119 = vrot.lane.b32.xlu1 %v2113_v47, %s2583_s14 }
 0x90b   : > { %v1628_v62 = vadd.f32 %v1620_v16, %v1604_v11 }
 0x90c   : > { %v1618_v26 = vpop.permute.xlu0 %1617  ;;  %v1668_v17 = vpop.permute.xlu1 %1667 }
 0x90d   : > { %v1621_v54 = vsel %vm592_vm2, %v1616_v6, %v1618_v26  ;;  %v1622_v58 = vsel %vm592_vm2, %v1618_v26, %v1620_v16 }
 0x90e   : > { %v1626_v42 = vadd.f32 %v1621_v54, %v1602_v39  ;;  %v1627_v21 = vadd.f32 %v1622_v58, %v1603_v10  ;;  %2075 = vrot.lane.b32.xlu0 %v2067_v46, %s2583_s14  ;;  %2121 = vrot.lane.b32.xlu1 %v2114_v37, %s2583_s14 }
 0x910   : > { %v1640_v0 = vpop.permute.xlu0 %1639  ;;  %v1690_v59 = vpop.permute.xlu1 %1689 }
 0x911   : > { %v1645_v4 = vsel %vm592_vm2, %v1640_v0, %v1642_v57 }
 0x912   : > { %v1650_v40 = vadd.f32 %v1645_v4, %v1626_v42  ;;  %2097 = vrot.lane.b32.xlu0 %v2090_v60, %s2583_s14  ;;  %2143 = vperm.xlu1 %2441, %v2133_v51  }
 0x914   : > { %v1644_v29 = vpop.permute.xlu0 %1643  ;;  %v1712_v8 = vpop.permute.xlu1 %1711 }
 0x915   : > { %v1646_v27 = vsel %vm592_vm2, %v1642_v57, %v1644_v29  ;;  %v1652_v14 = vadd.f32 %v1644_v29, %v1628_v62 }
 0x916   : > { %v1651_v2 = vadd.f32 %v1646_v27, %v1627_v21  ;;  %2136 = vperm.xlu0 %2440, %v2133_v51  }
 0x917   : > { %v1676_v13 = vadd.f32 %v1668_v17, %v1652_v14 }
 0x918   : > { %v1666_v28 = vpop.permute.xlu0 %1665  ;;  %v1716_v36 = vpop.permute.xlu1 %1715 }
 0x919   : > { %v1669_v34 = vsel %vm689_vm3, %v1664_v35, %v1666_v28  ;;  %v1670_v3 = vsel %vm689_vm3, %v1666_v28, %v1668_v17 }
 0x91a   : > { %v1674_v9 = vadd.f32 %v1669_v34, %v1650_v40  ;;  %v1675_v41 = vadd.f32 %v1670_v3, %v1651_v2  ;;  %2123 = vrot.lane.b32.xlu0 %v2115_v22, %s2583_s14  ;;  %s2473_s14 = scalar_lea.vmem %s4054_s11, 192 }
 0x91b   : > { %2442 = vset.pattern.permute.xlu0 %v4321_v44  ;;  %p2474_p11 = scmp.ne.s32.totalorder %s4054_s11, %s2473_s14  ;;  %p2481_p3 = scmp.lt.s32.totalorder %s2479_s29, %s2473_s14 }
 0x91c   : > { %v1688_v63 = vpop.permute.xlu0 %1687  ;;  %v1738_v56 = vpop.permute.xlu1 %1737 }
 0x91d   : > { %v1693_v5 = vsel %vm689_vm3, %v1688_v63, %v1690_v59  ;;  %p2475_p13 = pnand %p2474_p11, %p4324_p12  ;;  %p2482_p8 = por %p2481_p3, %p2480_p1 }
 0x91e   : > { %v1698_v6 = vadd.f32 %v1693_v5, %v1674_v9 }
 0x91f   : > { %p2476_p0 = pneg %p2475_p13 }
 0x920   : > { %v1692_v61 = vpop.permute.xlu0 %1691  ;;  %v1760_v52 = vpop.permute.xlu1 %1759 }
 0x921   : > { %v1694_v50 = vsel %vm689_vm3, %v1690_v59, %v1692_v61  ;;  %v1700_v19 = vadd.f32 %v1692_v61, %v1676_v13  ;;  %p2483_p10 = pnand %p2482_p8, %p2476_p0 }
 0x922   : > { %v1699_v12 = vadd.f32 %v1694_v50, %v1675_v41 }
 0x923   : > { %v1724_v7 = vadd.f32 %v1716_v36, %v1700_v19 }
 0x924   : > { %v1714_v48 = vpop.permute.xlu0 %1713  ;;  %v1764_v24 = vpop.permute.xlu1 %1763 }
 0x925   : > { %v1717_v16 = vsel %vm689_vm3, %v1712_v8, %v1714_v48  ;;  %v1718_v31 = vsel %vm689_vm3, %v1714_v48, %v1716_v36 }
 0x926   : > { %v1722_v1 = vadd.f32 %v1717_v16, %v1698_v6  ;;  %v1723_v44 = vadd.f32 %v1718_v31, %v1699_v12 }
 0x928   : > { %v1736_v32 = vpop.permute.xlu0 %1735  ;;  %v1786_v45 = vpop.permute.xlu1 %1785 }
 0x929   : > { %v1741_v30 = vsel %vm689_vm3, %v1736_v32, %v1738_v56 }
 0x92a   : > { %v1746_v57 = vadd.f32 %v1741_v30, %v1722_v1 }
 0x92c   : > { %v1740_v39 = vpop.permute.xlu0 %1739  ;;  %v1808_v55 = vpop.permute.xlu1 %1807 }
 0x92d   : > { %v1742_v53 = vsel %vm689_vm3, %v1738_v56, %v1740_v39  ;;  %v1748_v15 = vadd.f32 %v1740_v39, %v1724_v7 }
 0x92e   : > { %v1747_v47 = vadd.f32 %v1742_v53, %v1723_v44 }
 0x92f   : > { %v1772_v9 = vadd.f32 %v1764_v24, %v1748_v15 }
 0x930   : > { %v1762_v23 = vpop.permute.xlu0 %1761  ;;  %v1812_v38 = vpop.permute.xlu1 %1811 }
 0x931   : > { %v1765_v35 = vsel %vm786_vm4, %v1760_v52, %v1762_v23  ;;  %v1766_v31 = vsel %vm786_vm4, %v1762_v23, %v1764_v24 }
 0x932   : > { %v1770_v43 = vadd.f32 %v1765_v35, %v1746_v57  ;;  %v1771_v53 = vadd.f32 %v1766_v31, %v1747_v47 }
 0x934   : > { %v1784_v11 = vpop.permute.xlu0 %1783  ;;  %v1834_v10 = vpop.permute.xlu1 %1833 }
 0x935   : > { %v1789_v5 = vsel %vm786_vm4, %v1784_v11, %v1786_v45 }
 0x936   : > { %v1794_v19 = vadd.f32 %v1789_v5, %v1770_v43 }
 0x938   : > { %v1788_v62 = vpop.permute.xlu0 %1787  ;;  %v1856_v37 = vpop.permute.xlu1 %1855 }
 0x939   : > { %v1796_v41 = vadd.f32 %v1788_v62, %v1772_v9  ;;  %v1790_v30 = vsel %vm786_vm4, %v1786_v45, %v1788_v62 }
 0x93a   : > { %v1795_v11 = vadd.f32 %v1790_v30, %v1771_v53 }
 0x93b   : > { %v1820_v6 = vadd.f32 %v1812_v38, %v1796_v41 }
 0x93c   : > { %v1810_v46 = vpop.permute.xlu0 %1809  ;;  %v1860_v26 = vpop.permute.xlu1 %1859 }
 0x93d   : > { %v1813_v52 = vsel %vm786_vm4, %v1808_v55, %v1810_v46  ;;  %v1814_v35 = vsel %vm786_vm4, %v1810_v46, %v1812_v38 }
 0x93e   : > { %v1818_v48 = vadd.f32 %v1813_v52, %v1794_v19 }
 0x940   : > { %v1832_v17 = vpop.permute.xlu0 %1831  ;;  %v1882_v54 = vpop.permute.xlu1 %1881 }
 0x941   : > { %v1837_v12 = vsel %vm786_vm4, %v1832_v17, %v1834_v10 }
 0x942   : > { %v1842_v32 = vadd.f32 %v1837_v12, %v1818_v48 }
 0x944   : > { %v1836_v58 = vpop.permute.xlu0 %1835  ;;  %v1904_v42 = vpop.permute.xlu1 %1903 }
 0x945   : > { %v1844_v50 = vadd.f32 %v1836_v58, %v1820_v6  ;;  %v1838_v24 = vsel %vm786_vm4, %v1834_v10, %v1836_v58 }
 0x947   : > { %v1868_v44 = vadd.f32 %v1860_v26, %v1844_v50 }
 0x948   : > { %v1858_v21 = vpop.permute.xlu0 %1857  ;;  %v3957_v60 = vpop.permute.xlu1 %1907 }
 0x949   : > { %v1861_v1 = vsel %vm883_vm5, %v1856_v37, %v1858_v21  ;;  %v1819_v37 = vadd.f32 %v1814_v35, %v1795_v11  ;;  %v1862_v47 = vsel %vm883_vm5, %v1858_v21, %v1860_v26 }
 0x94a   : > { %v1866_v15 = vadd.f32 %v1861_v1, %v1842_v32 }
 0x94b   : > { %v1843_v46 = vadd.f32 %v1838_v24, %v1819_v37 }
 0x94c   : > { %v1880_v0 = vpop.permute.xlu0 %1879  ;;  %v3959_v59 = vpop.permute.xlu1 %1929 }
 0x94d   : > { %v1885_v57 = vsel %vm883_vm5, %v1880_v0, %v1882_v54  ;;  %v1867_v58 = vadd.f32 %v1862_v47, %v1843_v46 }
 0x94e   : > { %v1890_v17 = vadd.f32 %v1885_v57, %v1866_v15 }
 0x950   : > { %v1884_v4 = vpop.permute.xlu0 %1883  ;;  %v1952_v51 = vpop.permute.xlu1 %1951 }
 0x951   : > { %v1892_v39 = vadd.f32 %v1884_v4, %v1868_v44  ;;  %v1886_v5 = vsel %vm883_vm5, %v1882_v54, %v1884_v4 }
 0x953   : > { %v1916_v45 = vadd.f32 %v3957_v60, %v1892_v39 }
 0x954   : > { %v1906_v40 = vpop.permute.xlu0 %1905  ;;  %v3961_v29 = vpop.permute.xlu1 %1955 }
 0x955   : > { %v1909_v43 = vsel %vm883_vm5, %v1904_v42, %v1906_v40  ;;  %v1910_v50 = vsel %vm883_vm5, %v1906_v40, %v3957_v60 }
 0x956   : > { %v1914_v0 = vadd.f32 %v1909_v43, %v1890_v17 }
 0x958   : > { %v1928_v8 = vpop.permute.xlu0 %1927  ;;  %v3963_v27 = vpop.permute.xlu1 %1977 }
 0x959   : > { %v1933_v23 = vsel %vm883_vm5, %v1928_v8, %v3959_v59 }
 0x95a   : > { %v1938_v42 = vadd.f32 %v1933_v23, %v1914_v0 }
 0x95c   : > { %v1932_v14 = vpop.permute.xlu0 %1931  ;;  %v2000_v2 = vpop.permute.xlu1 %1999 }
 0x95d   : > { %v1940_v41 = vadd.f32 %v1932_v14, %v1916_v45  ;;  %v1934_v54 = vsel %vm883_vm5, %v3959_v59, %v1932_v14 }
 0x95f   : > { %v1964_v26 = vadd.f32 %v3961_v29, %v1940_v41 }
 0x960   : > { %v3965_v13 = vpop.permute.xlu0 %1953  ;;  %v3967_v22 = vpop.permute.xlu1 %2003 }
 0x961   : > { %v1957_v38 = vsel %vm980_vm6, %v1952_v51, %v3965_v13  ;;  %v1891_v51 = vadd.f32 %v1886_v5, %v1867_v58  ;;  %v1958_v60 = vsel %vm980_vm6, %v3965_v13, %v3961_v29 }
 0x962   : > { %v1962_v8 = vadd.f32 %v1957_v38, %v1938_v42  ;;  %v2149_v38 = vld [vmem:[#allocation3] sm:$0xff] }
 0x963   : > { %v1915_v12 = vadd.f32 %v1910_v50, %v1891_v51 }
 0x964   : > { %v1976_v28 = vpop.permute.xlu0 %1975  ;;  %v3969_v36 = vpop.permute.xlu1 %2025 }
 0x965   : > { %v1981_v10 = vsel %vm980_vm6, %v1976_v28, %v3963_v27  ;;  %v1939_v31 = vadd.f32 %v1934_v54, %v1915_v12 }
 0x966   : > { %v1986_v19 = vadd.f32 %v1981_v10, %v1962_v8  ;;  %v2152_v10 = vcombine.high %v2149_v38, %v2149_v38  ;;  %v2150_v8 = vld [vmem:[#allocation3 + $0x8] sm:$0xf] }
 0x967   : > { %v1963_v32 = vadd.f32 %v1958_v60, %v1939_v31 }
 0x968   : > { %v3971_v34 = vpop.permute.xlu0 %1979  ;;  %v2048_v3 = vpop.permute.xlu1 %2047 }
 0x969   : > { %v1988_v4 = vadd.f32 %v3971_v34, %v1964_v26  ;;  %v1982_v59 = vsel %vm980_vm6, %v3963_v27, %v3971_v34 }
 0x96a   : > { %v1987_v57 = vadd.f32 %v1982_v59, %v1963_v32 }
 0x96b   : > { %v2012_v14 = vadd.f32 %v3967_v22, %v1988_v4 }
 0x96c   : > { %v3973_v63 = vpop.permute.xlu0 %2001  ;;  %v3975_v56 = vpop.permute.xlu1 %2051 }
 0x96d   : > { %v2005_v21 = vsel %vm980_vm6, %v2000_v2, %v3973_v63  ;;  %v2006_v29 = vsel %vm980_vm6, %v3973_v63, %v3967_v22 }
 0x96e   : > { %v2010_v48 = vadd.f32 %v2005_v21, %v1986_v19  ;;  %v2011_v27 = vadd.f32 %v2006_v29, %v1987_v57 }
 0x970   : > { %v2024_v61 = vpop.permute.xlu0 %2023  ;;  %v3980_v16 = vpop.permute.xlu1 %2073 }
 0x971   : > { %v2029_v28 = vsel %vm980_vm6, %v2024_v61, %v3969_v36 }
 0x972   : > { %v2034_v2 = vadd.f32 %v2029_v28, %v2010_v48 }
 0x974   : > { %v2028_v7 = vpop.permute.xlu0 %2027  ;;  %v2096_v9 = vpop.permute.xlu1 %2095 }
 0x975   : > { %v2036_v13 = vadd.f32 %v2028_v7, %v2012_v14  ;;  %v2030_v53 = vsel %vm980_vm6, %v3969_v36, %v2028_v7 }
 0x976   : > { %v2035_v11 = vadd.f32 %v2030_v53, %v2011_v27 }
 0x977   : > { %v2060_v43 = vadd.f32 %v3975_v56, %v2036_v13 }
 0x978   : > { %v2050_v55 = vpop.permute.xlu0 %2049  ;;  %v2100_v6 = vpop.permute.xlu1 %2099 }
 0x979   : > { %v2053_v40 = vsel %vm1077_vm7, %v2048_v3, %v2050_v55  ;;  %v2054_v35 = vsel %vm1077_vm7, %v2050_v55, %v3975_v56 }
 0x97a   : > { %v2058_v30 = vadd.f32 %v2053_v40, %v2034_v2 }
 0x97c   : > { %v2072_v62 = vpop.permute.xlu0 %2071  ;;  %v2120_v1 = vpop.permute.xlu1 %2119 }
 0x97d   : > { %v2077_v61 = vsel %vm1077_vm7, %v2072_v62, %v3980_v16 }
 0x97e   : > { %v2082_v39 = vadd.f32 %v2077_v61, %v2058_v30 }
 0x980   : > { %v2076_v52 = vpop.permute.xlu0 %2075  ;;  %v2122_v34 = vpop.permute.xlu1 %2121 }
 0x981   : > { %v2078_v22 = vsel %vm1077_vm7, %v3980_v16, %v2076_v52  ;;  %v2084_v63 = vadd.f32 %v2076_v52, %v2060_v43  ;;  %v2125_v17 = vsel %vm1077_vm7, %v2120_v1, %v2122_v34 }
 0x983   : > { %v2108_v16 = vadd.f32 %v2100_v6, %v2084_v63 }
 0x984   : > { %v2098_v44 = vpop.permute.xlu0 %2097 }
 0x985   : > { %v2101_v3 = vsel %vm1077_vm7, %v2096_v9, %v2098_v44  ;;  %v2059_v9 = vadd.f32 %v2054_v35, %v2035_v11  ;;  %v2102_v36 = vsel %vm1077_vm7, %v2098_v44, %v2100_v6 }
 0x986   : > { %v2106_v15 = vadd.f32 %v2101_v3, %v2082_v39 }
 0x987   : > { %v2083_v7 = vadd.f32 %v2078_v22, %v2059_v9 }
 0x988   : > { %v2130_v24 = vadd.f32 %v2125_v17, %v2106_v15 }
 0x989   : > { %v2107_v55 = vadd.f32 %v2102_v36, %v2083_v7 }
 0x98d   : > { %v2144_v56 = vpop.permute.xlu1 %2143 }
 0x991   : > { %v2137_v23 = vpop.permute.xlu0 %2136 }
 0x992   : > { %v2139_v45 = vmul.f32 %v2137_v23, %v2130_v24 }
 0x994   : > { %v2146_v47 = vadd.f32 %v2144_v56, %v2139_v45 }
 0x995   : > { %v2124_v62 = vpop.permute.xlu0 %2123 }
 0x996   : > { %v2126_v37 = vsel %vm1077_vm7, %v2122_v34, %v2124_v62  ;;  %v2132_v0 = vadd.f32 %v2124_v62, %v2108_v16  ;;  %v2154_v58 = vadd.f32 %v2149_v38, %v2146_v47 }
 0x997   : > { %v2131_v41 = vadd.f32 %v2126_v37, %v2107_v55 }
 0x998   : > { %v2141_v46 = vmul.f32 %v2137_v23, %v2132_v0  ;;  %v2159_v26 = vmul.f32 %v2154_v58, %v3481_v18 }
 0x999   : > { %v2140_v42 = vmul.f32 %v2137_v23, %v2131_v41 }
 0x99a   : > { %v2148_v5 = vadd.f32 %v2144_v56, %v2141_v46 }
 0x99b   : > { %v2147_v52 = vadd.f32 %v2144_v56, %v2140_v42 }
 0x99c   : > { %v2156_v33 = vadd.f32 %v2150_v8, %v2148_v5 }
 0x99d   : > { %v2155_v50 = vadd.f32 %v2152_v10, %v2147_v52 }
 0x99e   : > { %v2161_v6 = vmul.f32 %v2156_v33, %v3475_v20 }
 0x99f   : > { %v2160_v21 = vmul.f32 %v2155_v50, %v3484_v25 }
 0x9a0   : > { %2168 = vrot.lane.b32.xlu1 %v2161_v6, %s2585_s28 }
 0x9a1   : > { %v2165_v51 = vcombine.low %v2159_v26, %v2160_v21 }
 0x9a3   : > { %2166 = vrot.lane.b32.xlu0 %v2165_v51, %s2585_s28 }
 0xa12   : > { %v2169_v4 = vpop.permute.xlu1 %2168 }
 0xa15   : > { %v2167_v19 = vpop.permute.xlu0 %2166 }
 0xa16   : > { %v2170_v54 = vrot.slane %v2167_v19, 4 }
 0xa18   : > { %v2171_v20 = vsel %vm1241_vm10, %v2170_v54, %v2167_v19  ;;  %v2172_v18 = vsel %vm1241_vm10, %v2170_v54, %v2169_v4 }
 0xa19   : > { %2175 = vst.msk [vmem:[%s4033_s19] sm:$0xff] %vm3556_vm11, %v2171_v20 }
 0xa1a   : > { %2176 = vst.msk [vmem:[%s4033_s19 + $0x8] sm:$0xf] %vm1250_vm12, %v2172_v18 }
 0xa1b   : > { %2486 = shalt.err (!%p2483_p10)
}
 0xa1c   : > { %s2487_s17 = scalar_lea.hbm %s4052_s10, 192  ;;  %s2491_s7 = scalar_lea.hbm %s4108_s6, 384 }
 0xa1d   : > { %p2488_p2 = scmp.ne.s32.totalorder %s4052_s10, %s2487_s17  ;;  %p2492_p7 = scmp.lt.s32.totalorder %s4052_s10, %s4108_s6 }
 0xa1e   : > { %p2493_p5 = scmp.lt.s32.totalorder %s2491_s7, %s2487_s17 }
 0xa1f   : > { %p2489_p4 = pnand %p2488_p2, %p4324_p12 }
 0xa20   : > { %p2494_p6 = por %p2493_p5, %p2492_p7 }
 0xa21   : > { %p2490_p9 = pneg %p2489_p4 }
 0xa23   : > { %p2495_p11 = pnand %p2494_p6, %p2490_p9 }
 0xa25   : > { %2498 = shalt.err (!%p2495_p11)
}
 0xa26   : > { %2279 = dma.vmem_to_hbm [thread:$0]  (%p4324_p12), %s4054_s11, 192, %s4052_s10, %s2178_s25  }
 0xa27 PF: > { %s2204_s26 = sand.u32 1, %s2525_s21   ;;  %p4325_p13 = scmp.ne.s32.totalorder %s4186_s9, 0 }
 0xa28   : > { %p4326_p0 = scmp.ge.s32.totalorder %s2537_s24, 2  ;;  %s2205_s13 = scalar_lea.sflag [#allocation6], %s2204_s26 }
 0xa2a   : > { %p2286_p1 = pnand %p4326_p0, %p4325_p13 }
 0xa2c   : > { %p2287_p3 = pneg %p2286_p1 }
 0xa2e   : > { %2520 = dma.done.wait (%p2287_p3), %s2205_s13, 192  }
 0xa2f   : > { %2522 = vsyncadd (%p2287_p3), %s2205_s13, 4294967104  ;;  %p19_p8 = scmp.ge.s32.totalorder %s2647_s27, 4   ;;  %s4327_s21 = smov %s2529_s22 }
 0xa30   : > { %s4328_s22 = smov %s2533_s23  ;;  %s4329_s23 = smov %s2659_s30 }
 0xa31   : > { %s4330_s24 = smov %s2647_s27  ;;  %21 = sbr.rel (!%p19_p8) target bundleno = 5 (0x5), region = 95 }
 0xa36   :  { %2210 = vsyncpa [#allocation5], 1 }
 0xa37   :  { %2212 = vsyncpa [#allocation5 + $0x1], 1 }
 0xa38   :  { %2213 = vsyncpa [#allocation6], 1 }
 0xa39   :  { %2215 = vsyncpa [#allocation6 + $0x1], 1 }

</bundles_post_ra>
